<compile_context>
chip_gen: v5e
topology: v5e:2x2
jax: 0.10.0
libtpu: 0.0.40
codegen_flags: <defaults>
</compile_context>

<pallas_src>
import jax
import jax.numpy as jnp
from jax.experimental import pallas as pl
from jax.experimental.pallas import tpu as pltpu


def _round_up(x, m):
    return (x + m - 1) // m * m


# ------------------------------ fused Pallas kernel ---------------------------------
def _make_kernel(SW, Lh, Lu):
    """SW: scanline row stride (= Wo + 2). Lh: padded-h scanline length (VMEM scratch).
    Lu: per-phase output scanline length (= Ho * SW)."""
    taps_down = [(kh, kw) for kh in range(4) for kw in range(4)]

    def kernel(xs_ref, wd_ref, wu_ref, bd_ref, bu_ref, mask_ref, out_ref, hpad_ref):
        # ---- down: Conv2d(k=4,s=2,p=1) applied to LeakyReLU(x).  Activation, zero-pad
        #      and the 2x2 stride-parity split were done in the cheap JAX pre-pass; each
        #      of the 16 taps is a statically shifted scanline window of that block.
        inner_p = wd_ref.shape[-1]
        h = jnp.zeros((Lh, inner_p), jnp.float32)
        for t, (kh, kw) in enumerate(taps_down):
            off = (kh // 2) * SW + (kw // 2)          # row/col shift inside the parity plane
            p_idx = (kh % 2) * 2 + (kw % 2)           # which of the 4 stride-parity planes
            win = xs_ref[p_idx, pl.ds(off, Lh), :].astype(jnp.bfloat16)   # (Lh, Cin_p)
            h = h + jnp.dot(win, wd_ref[t], preferred_element_type=jnp.float32)
        # bias + ReLU (the uprelu); mask zeroes the pad/garbage scanline positions so the
        # scratch holds pad(relu(h), 1) in stride-SW scanline layout.  h never touches HBM.
        hpad_ref[...] = jnp.maximum(h + bd_ref[...], 0.0) * mask_ref[...]

        # ---- up: ConvTranspose2d(k=4,s=2,p=1); all 4 sub-pixel phases fused here, each
        #      phase = 4 taps that are +/-1 shifted windows of the padded h scratch.
        outer_p = wu_ref.shape[-1]
        for ph in range(2):
            for pw in range(2):
                acc = jnp.zeros((Lu, outer_p), jnp.float32)
                for a in range(2):
                    for b in range(2):
                        off = (ph + a) * SW + (pw + b)
                        hwin = hpad_ref[pl.ds(off, Lu), :].astype(jnp.bfloat16)  # (Lu, inner_p)
                        w = wu_ref[(ph * 2 + pw) * 4 + a * 2 + b]                # (inner_p, outer_p)
                        acc = acc + jnp.dot(hwin, w, preferred_element_type=jnp.float32)
                out_ref[ph * 2 + pw, :, :] = acc + bu_ref[...]

    return kernel


# ------------------------------------ wrapper ---------------------------------------
@jax.jit
def unet_innermost_forward(x, down_w, down_b, up_w, up_b):
    N, Cin, H, W = x.shape
    assert H % 2 == 0 and W % 2 == 0
    inner_nc = down_w.shape[0]
    outer_nc = up_w.shape[1]
    Ho, Wo = H // 2, W // 2

    SW = Wo + 2                                   # scanline row stride (= padded-h width)
    Lh = _round_up((Ho + 2) * SW + 2, 8)          # padded-h scanline length (VMEM scratch)
    rows_x = -(-(Lh + SW + 1) // SW)              # parity-plane rows incl. top pad + tail zeros
    Lx = rows_x * SW                              # input scanline length per parity plane
    Lu = Ho * SW                                  # per-phase output scanline length
    Cin_p = _round_up(Cin, 8)
    inner_p = _round_up(inner_nc, 8)
    outer_p = _round_up(outer_nc, 8)

    # ---- JAX pre-pass (one fused XLA copy over x): LeakyReLU, conv zero-padding,
    #      2x2 stride-parity split, stride-SW scanline layout.  ~1.3x of x in bytes,
    #      NOT the 4x im2col patch matrix of the previous version.
    lk = jnp.where(x > 0, x, 0.2 * x)
    XP = jnp.pad(lk, ((0, 0), (0, 0), (3, 2 * rows_x - 3 - H), (3, 2 * SW - 3 - W)))
    g = XP.reshape(N, Cin, rows_x, 2, SW, 2)                       # [n, c, R, ph, S, pw]
    xs = jnp.transpose(g, (0, 3, 5, 2, 4, 1)).reshape(N, 4, Lx, Cin)
    if Cin_p != Cin:
        xs = jnp.pad(xs, ((0, 0), (0, 0), (0, 0), (0, Cin_p - Cin)))

    # down-conv weights per tap: wd[kh*4+kw, ci, co] = down_w[co, ci, kh, kw]
    wd = jnp.transpose(down_w, (2, 3, 1, 0)).reshape(16, Cin, inner_nc)
    wd = jnp.pad(wd, ((0, 0), (0, Cin_p - Cin), (0, inner_p - inner_nc))).astype(jnp.bfloat16)
    # up-conv weights per (phase, tap): wu[(ph*2+pw)*4+a*2+b, ci, co] = up_w[ci, co, 3-ph-2a, 3-pw-2b]
    wu_rows = []
    for ph in range(2):
        for pw in range(2):
            for a in range(2):
                for b in range(2):
                    wu_rows.append(up_w[:, :, 3 - ph - 2 * a, 3 - pw - 2 * b])
    wu = jnp.stack(wu_rows, axis=0)
    wu = jnp.pad(wu, ((0, 0), (0, inner_p - inner_nc), (0, outer_p - outer_nc))).astype(jnp.bfloat16)
    bd = jnp.pad(down_b.reshape(1, inner_nc), ((0, 0), (0, inner_p - inner_nc)))
    bu = jnp.pad(up_b.reshape(1, outer_nc), ((0, 0), (0, outer_p - outer_nc)))
    # scanline-position mask selecting the real (non-pad) h entries
    k = jnp.arange(Lh)
    R, S = k // SW, k % SW
    mask = ((R >= 1) & (R <= Ho) & (S >= 1) & (S <= Wo)).astype(jnp.float32).reshape(Lh, 1)

    kernel = _make_kernel(SW, Lh, Lu)
    out = pl.pallas_call(
        kernel,
        out_shape=jax.ShapeDtypeStruct((N, 4, Lu, outer_p), jnp.float32),
        grid=(N,),
        in_specs=[
            pl.BlockSpec((None, 4, Lx, Cin_p), lambda n: (n, 0, 0, 0)),   # activation scanlines: streamed per batch
            pl.BlockSpec((16, Cin_p, inner_p), lambda n: (0, 0, 0)),      # down tap weights: VMEM resident
            pl.BlockSpec((16, inner_p, outer_p), lambda n: (0, 0, 0)),    # up phase weights: VMEM resident
            pl.BlockSpec((1, inner_p), lambda n: (0, 0)),                 # down bias
            pl.BlockSpec((1, outer_p), lambda n: (0, 0)),                 # up bias
            pl.BlockSpec((Lh, 1), lambda n: (0, 0)),                      # h-scanline validity mask
        ],
        out_specs=pl.BlockSpec((None, 4, Lu, outer_p), lambda n: (n, 0, 0, 0)),
        scratch_shapes=[pltpu.VMEM((Lh, inner_p), jnp.float32)],          # h (padded) lives here, never in HBM
        compiler_params=pltpu.CompilerParams(
            dimension_semantics=("parallel",),            # batch steps can split across v7x TensorCores
            vmem_limit_bytes=16 * 1024 * 1024,            # actual usage is a few KiB; keep well under v7x 64 MiB
        ),
    )(xs, wd, wu, bd, bu, mask)

    # ---- single output reassembly pass: drop garbage scanline columns, interleave the
    #      2x2 sub-pixel phases back into NCHW, then the skip concat.
    u = out.reshape(N, 2, 2, Ho, SW, outer_p)[:, :, :, :, :Wo, :outer_nc]  # [n, ph, pw, m, j, co]
    u = jnp.transpose(u, (0, 5, 3, 1, 4, 2)).reshape(N, outer_nc, H, W)
    return jnp.concatenate([u, x], axis=1)                # torch.cat([model(x), x], 1)


# ---------------------------------- reference (lax) ----------------------------------
def _reference(x, down_w, down_b, up_w, up_b):
    lk = jnp.where(x > 0, x, 0.2 * x)
    h = jax.lax.conv_general_dilated(
        lk, down_w, (2, 2), ((1, 1), (1, 1)),
        dimension_numbers=("NCHW", "OIHW", "NCHW")) + down_b[None, :, None, None]
    r = jnp.maximum(h, 0.0)
    u = jax.lax.conv_general_dilated(
        r, up_w[:, :, ::-1, ::-1], (1, 1), ((2, 2), (2, 2)), lhs_dilation=(2, 2),
        dimension_numbers=("NCHW", "IOHW", "NCHW")) + up_b[None, :, None, None]
    return jnp.concatenate([u, x], axis=1)


if __name__ == "__main__":
    N, outer_nc, inner_nc, H, W = 2, 4, 8, 16, 16
    key = jax.random.PRNGKey(0)
    kx, k1, k2, k3, k4 = jax.random.split(key, 5)

    x = jax.random.normal(kx, (N, outer_nc, H, W), jnp.float32)
    # Conv2d(outer_nc -> inner_nc, k=4): weight (inner_nc, outer_nc, 4, 4), bias (inner_nc,)
    down_w = 0.05 * jax.random.normal(k1, (inner_nc, outer_nc, 4, 4), jnp.float32)
    down_b = 0.05 * jax.random.normal(k2, (inner_nc,), jnp.float32)
    # ConvTranspose2d(inner_nc -> outer_nc, k=4): weight (inner_nc, outer_nc, 4, 4), bias (outer_nc,)
    up_w = 0.05 * jax.random.normal(k3, (inner_nc, outer_nc, 4, 4), jnp.float32)
    up_b = 0.05 * jax.random.normal(k4, (outer_nc,), jnp.float32)

    out = unet_innermost_forward(x, down_w, down_b, up_w, up_b)
    out = jax.block_until_ready(out)
    assert out.shape == (N, 2 * outer_nc, H, W), out.shape

    ref = _reference(x, down_w, down_b, up_w, up_b)
    # skip branch must be bit-exact; conv path uses bf16 MXU operands (f32 accumulation)
    assert jnp.array_equal(out[:, outer_nc:], x)
    assert jnp.allclose(out, ref, rtol=2e-2, atol=2e-2)

    print("KERNEL_OK")
</pallas_src>

<mosaic_0001>
module attributes {stable_mosaic.version = 11 : i64} {
  func.func @kernel(%arg0: i32, %arg1: memref<1x4x120x8xf32, #tpu.memory_space<vmem>>, %arg2: memref<16x8x8xbf16, #tpu.memory_space<vmem>>, %arg3: memref<16x8x8xbf16, #tpu.memory_space<vmem>>, %arg4: memref<1x8xf32, #tpu.memory_space<vmem>>, %arg5: memref<1x8xf32, #tpu.memory_space<vmem>>, %arg6: memref<104x1xf32, #tpu.memory_space<vmem>>, %arg7: memref<1x4x80x8xf32, #tpu.memory_space<vmem>>, %arg8: memref<104x8xf32, #tpu.memory_space<vmem>>) attributes {dimension_semantics = [#tpu.dimension_semantics<parallel>], iteration_bounds = array<i64: 2>, scalar_prefetch = 0 : i64, scratch_operands = 1 : i64, tpu.core_type = #tpu.core_type<tc>, window_params = [{transform_indices = @transform_0, window_bounds = array<i64: 1, 4, 120, 8>}, {pipeline_mode = #tpu.pipeline_mode<synchronous>, transform_indices = @transform_1, window_bounds = array<i64: 16, 8, 8>}, {pipeline_mode = #tpu.pipeline_mode<synchronous>, transform_indices = @transform_2, window_bounds = array<i64: 16, 8, 8>}, {pipeline_mode = #tpu.pipeline_mode<synchronous>, transform_indices = @transform_3, window_bounds = array<i64: 1, 8>}, {pipeline_mode = #tpu.pipeline_mode<synchronous>, transform_indices = @transform_4, window_bounds = array<i64: 1, 8>}, {pipeline_mode = #tpu.pipeline_mode<synchronous>, transform_indices = @transform_5, window_bounds = array<i64: 104, 1>}, {transform_indices = @transform_6, window_bounds = array<i64: 1, 4, 80, 8>}]} {
    %cst = arith.constant 0.000000e+00 : f32
    %0 = vector.broadcast %cst : f32 to vector<104x8xf32>
    %c0 = arith.constant 0 : index
    %c0_0 = arith.constant 0 : index
    %c0_1 = arith.constant 0 : index
    %c0_2 = arith.constant 0 : index
    %1 = vector.load %arg1[%c0, %c0_0, %c0_1, %c0_2] : memref<1x4x120x8xf32, #tpu.memory_space<vmem>>, vector<1x1x104x8xf32>
    %2 = vector.shape_cast %1 : vector<1x1x104x8xf32> to vector<104x8xf32>
    %3 = arith.truncf %2 : vector<104x8xf32> to vector<104x8xbf16>
    %c0_3 = arith.constant 0 : index
    %c0_4 = arith.constant 0 : index
    %c0_5 = arith.constant 0 : index
    %4 = vector.load %arg2[%c0_3, %c0_4, %c0_5] : memref<16x8x8xbf16, #tpu.memory_space<vmem>>, vector<1x8x8xbf16>
    %5 = vector.shape_cast %4 : vector<1x8x8xbf16> to vector<8x8xbf16>
    %cst_6 = arith.constant dense<0.000000e+00> : vector<104x8xf32>
    %6 = tpu.matmul %3, %5, %cst_6 {dimension_numbers = #tpu.dot_dimension_numbers<[1], [0], [0], [1], [0, 0, 1, 1], [], []>} : vector<104x8xbf16>, vector<8x8xbf16>, vector<104x8xf32> -> vector<104x8xf32>
    %7 = arith.addf %0, %6 : vector<104x8xf32>
    %c0_7 = arith.constant 0 : index
    %c1 = arith.constant 1 : index
    %c0_8 = arith.constant 0 : index
    %c0_9 = arith.constant 0 : index
    %8 = vector.load %arg1[%c0_7, %c1, %c0_8, %c0_9] : memref<1x4x120x8xf32, #tpu.memory_space<vmem>>, vector<1x1x104x8xf32>
    %9 = vector.shape_cast %8 : vector<1x1x104x8xf32> to vector<104x8xf32>
    %10 = arith.truncf %9 : vector<104x8xf32> to vector<104x8xbf16>
    %c1_10 = arith.constant 1 : index
    %c0_11 = arith.constant 0 : index
    %c0_12 = arith.constant 0 : index
    %11 = vector.load %arg2[%c1_10, %c0_11, %c0_12] : memref<16x8x8xbf16, #tpu.memory_space<vmem>>, vector<1x8x8xbf16>
    %12 = vector.shape_cast %11 : vector<1x8x8xbf16> to vector<8x8xbf16>
    %cst_13 = arith.constant dense<0.000000e+00> : vector<104x8xf32>
    %13 = tpu.matmul %10, %12, %cst_13 {dimension_numbers = #tpu.dot_dimension_numbers<[1], [0], [0], [1], [0, 0, 1, 1], [], []>} : vector<104x8xbf16>, vector<8x8xbf16>, vector<104x8xf32> -> vector<104x8xf32>
    %14 = arith.addf %7, %13 : vector<104x8xf32>
    %c0_14 = arith.constant 0 : index
    %c0_15 = arith.constant 0 : index
    %c1_16 = arith.constant 1 : index
    %c0_17 = arith.constant 0 : index
    %15 = vector.load %arg1[%c0_14, %c0_15, %c1_16, %c0_17] : memref<1x4x120x8xf32, #tpu.memory_space<vmem>>, vector<1x1x104x8xf32>
    %16 = vector.shape_cast %15 : vector<1x1x104x8xf32> to vector<104x8xf32>
    %17 = arith.truncf %16 : vector<104x8xf32> to vector<104x8xbf16>
    %c2 = arith.constant 2 : index
    %c0_18 = arith.constant 0 : index
    %c0_19 = arith.constant 0 : index
    %18 = vector.load %arg2[%c2, %c0_18, %c0_19] : memref<16x8x8xbf16, #tpu.memory_space<vmem>>, vector<1x8x8xbf16>
    %19 = vector.shape_cast %18 : vector<1x8x8xbf16> to vector<8x8xbf16>
    %cst_20 = arith.constant dense<0.000000e+00> : vector<104x8xf32>
    %20 = tpu.matmul %17, %19, %cst_20 {dimension_numbers = #tpu.dot_dimension_numbers<[1], [0], [0], [1], [0, 0, 1, 1], [], []>} : vector<104x8xbf16>, vector<8x8xbf16>, vector<104x8xf32> -> vector<104x8xf32>
    %21 = arith.addf %14, %20 : vector<104x8xf32>
    %c0_21 = arith.constant 0 : index
    %c1_22 = arith.constant 1 : index
    %c1_23 = arith.constant 1 : index
    %c0_24 = arith.constant 0 : index
    %22 = vector.load %arg1[%c0_21, %c1_22, %c1_23, %c0_24] : memref<1x4x120x8xf32, #tpu.memory_space<vmem>>, vector<1x1x104x8xf32>
    %23 = vector.shape_cast %22 : vector<1x1x104x8xf32> to vector<104x8xf32>
    %24 = arith.truncf %23 : vector<104x8xf32> to vector<104x8xbf16>
    %c3 = arith.constant 3 : index
    %c0_25 = arith.constant 0 : index
    %c0_26 = arith.constant 0 : index
    %25 = vector.load %arg2[%c3, %c0_25, %c0_26] : memref<16x8x8xbf16, #tpu.memory_space<vmem>>, vector<1x8x8xbf16>
    %26 = vector.shape_cast %25 : vector<1x8x8xbf16> to vector<8x8xbf16>
    %cst_27 = arith.constant dense<0.000000e+00> : vector<104x8xf32>
    %27 = tpu.matmul %24, %26, %cst_27 {dimension_numbers = #tpu.dot_dimension_numbers<[1], [0], [0], [1], [0, 0, 1, 1], [], []>} : vector<104x8xbf16>, vector<8x8xbf16>, vector<104x8xf32> -> vector<104x8xf32>
    %28 = arith.addf %21, %27 : vector<104x8xf32>
    %c0_28 = arith.constant 0 : index
    %c2_29 = arith.constant 2 : index
    %c0_30 = arith.constant 0 : index
    %c0_31 = arith.constant 0 : index
    %29 = vector.load %arg1[%c0_28, %c2_29, %c0_30, %c0_31] : memref<1x4x120x8xf32, #tpu.memory_space<vmem>>, vector<1x1x104x8xf32>
    %30 = vector.shape_cast %29 : vector<1x1x104x8xf32> to vector<104x8xf32>
    %31 = arith.truncf %30 : vector<104x8xf32> to vector<104x8xbf16>
    %c4 = arith.constant 4 : index
    %c0_32 = arith.constant 0 : index
    %c0_33 = arith.constant 0 : index
    %32 = vector.load %arg2[%c4, %c0_32, %c0_33] : memref<16x8x8xbf16, #tpu.memory_space<vmem>>, vector<1x8x8xbf16>
    %33 = vector.shape_cast %32 : vector<1x8x8xbf16> to vector<8x8xbf16>
    %cst_34 = arith.constant dense<0.000000e+00> : vector<104x8xf32>
    %34 = tpu.matmul %31, %33, %cst_34 {dimension_numbers = #tpu.dot_dimension_numbers<[1], [0], [0], [1], [0, 0, 1, 1], [], []>} : vector<104x8xbf16>, vector<8x8xbf16>, vector<104x8xf32> -> vector<104x8xf32>
    %35 = arith.addf %28, %34 : vector<104x8xf32>
    %c0_35 = arith.constant 0 : index
    %c3_36 = arith.constant 3 : index
    %c0_37 = arith.constant 0 : index
    %c0_38 = arith.constant 0 : index
    %36 = vector.load %arg1[%c0_35, %c3_36, %c0_37, %c0_38] : memref<1x4x120x8xf32, #tpu.memory_space<vmem>>, vector<1x1x104x8xf32>
    %37 = vector.shape_cast %36 : vector<1x1x104x8xf32> to vector<104x8xf32>
    %38 = arith.truncf %37 : vector<104x8xf32> to vector<104x8xbf16>
    %c5 = arith.constant 5 : index
    %c0_39 = arith.constant 0 : index
    %c0_40 = arith.constant 0 : index
    %39 = vector.load %arg2[%c5, %c0_39, %c0_40] : memref<16x8x8xbf16, #tpu.memory_space<vmem>>, vector<1x8x8xbf16>
    %40 = vector.shape_cast %39 : vector<1x8x8xbf16> to vector<8x8xbf16>
    %cst_41 = arith.constant dense<0.000000e+00> : vector<104x8xf32>
    %41 = tpu.matmul %38, %40, %cst_41 {dimension_numbers = #tpu.dot_dimension_numbers<[1], [0], [0], [1], [0, 0, 1, 1], [], []>} : vector<104x8xbf16>, vector<8x8xbf16>, vector<104x8xf32> -> vector<104x8xf32>
    %42 = arith.addf %35, %41 : vector<104x8xf32>
    %c0_42 = arith.constant 0 : index
    %c2_43 = arith.constant 2 : index
    %c1_44 = arith.constant 1 : index
    %c0_45 = arith.constant 0 : index
    %43 = vector.load %arg1[%c0_42, %c2_43, %c1_44, %c0_45] : memref<1x4x120x8xf32, #tpu.memory_space<vmem>>, vector<1x1x104x8xf32>
    %44 = vector.shape_cast %43 : vector<1x1x104x8xf32> to vector<104x8xf32>
    %45 = arith.truncf %44 : vector<104x8xf32> to vector<104x8xbf16>
    %c6 = arith.constant 6 : index
    %c0_46 = arith.constant 0 : index
    %c0_47 = arith.constant 0 : index
    %46 = vector.load %arg2[%c6, %c0_46, %c0_47] : memref<16x8x8xbf16, #tpu.memory_space<vmem>>, vector<1x8x8xbf16>
    %47 = vector.shape_cast %46 : vector<1x8x8xbf16> to vector<8x8xbf16>
    %cst_48 = arith.constant dense<0.000000e+00> : vector<104x8xf32>
    %48 = tpu.matmul %45, %47, %cst_48 {dimension_numbers = #tpu.dot_dimension_numbers<[1], [0], [0], [1], [0, 0, 1, 1], [], []>} : vector<104x8xbf16>, vector<8x8xbf16>, vector<104x8xf32> -> vector<104x8xf32>
    %49 = arith.addf %42, %48 : vector<104x8xf32>
    %c0_49 = arith.constant 0 : index
    %c3_50 = arith.constant 3 : index
    %c1_51 = arith.constant 1 : index
    %c0_52 = arith.constant 0 : index
    %50 = vector.load %arg1[%c0_49, %c3_50, %c1_51, %c0_52] : memref<1x4x120x8xf32, #tpu.memory_space<vmem>>, vector<1x1x104x8xf32>
    %51 = vector.shape_cast %50 : vector<1x1x104x8xf32> to vector<104x8xf32>
    %52 = arith.truncf %51 : vector<104x8xf32> to vector<104x8xbf16>
    %c7 = arith.constant 7 : index
    %c0_53 = arith.constant 0 : index
    %c0_54 = arith.constant 0 : index
    %53 = vector.load %arg2[%c7, %c0_53, %c0_54] : memref<16x8x8xbf16, #tpu.memory_space<vmem>>, vector<1x8x8xbf16>
    %54 = vector.shape_cast %53 : vector<1x8x8xbf16> to vector<8x8xbf16>
    %cst_55 = arith.constant dense<0.000000e+00> : vector<104x8xf32>
    %55 = tpu.matmul %52, %54, %cst_55 {dimension_numbers = #tpu.dot_dimension_numbers<[1], [0], [0], [1], [0, 0, 1, 1], [], []>} : vector<104x8xbf16>, vector<8x8xbf16>, vector<104x8xf32> -> vector<104x8xf32>
    %56 = arith.addf %49, %55 : vector<104x8xf32>
    %c0_56 = arith.constant 0 : index
    %c0_57 = arith.constant 0 : index
    %c10 = arith.constant 10 : index
    %c0_58 = arith.constant 0 : index
    %57 = vector.load %arg1[%c0_56, %c0_57, %c10, %c0_58] : memref<1x4x120x8xf32, #tpu.memory_space<vmem>>, vector<1x1x104x8xf32>
    %58 = vector.shape_cast %57 : vector<1x1x104x8xf32> to vector<104x8xf32>
    %59 = arith.truncf %58 : vector<104x8xf32> to vector<104x8xbf16>
    %c8 = arith.constant 8 : index
    %c0_59 = arith.constant 0 : index
    %c0_60 = arith.constant 0 : index
    %60 = vector.load %arg2[%c8, %c0_59, %c0_60] : memref<16x8x8xbf16, #tpu.memory_space<vmem>>, vector<1x8x8xbf16>
    %61 = vector.shape_cast %60 : vector<1x8x8xbf16> to vector<8x8xbf16>
    %cst_61 = arith.constant dense<0.000000e+00> : vector<104x8xf32>
    %62 = tpu.matmul %59, %61, %cst_61 {dimension_numbers = #tpu.dot_dimension_numbers<[1], [0], [0], [1], [0, 0, 1, 1], [], []>} : vector<104x8xbf16>, vector<8x8xbf16>, vector<104x8xf32> -> vector<104x8xf32>
    %63 = arith.addf %56, %62 : vector<104x8xf32>
    %c0_62 = arith.constant 0 : index
    %c1_63 = arith.constant 1 : index
    %c10_64 = arith.constant 10 : index
    %c0_65 = arith.constant 0 : index
    %64 = vector.load %arg1[%c0_62, %c1_63, %c10_64, %c0_65] : memref<1x4x120x8xf32, #tpu.memory_space<vmem>>, vector<1x1x104x8xf32>
    %65 = vector.shape_cast %64 : vector<1x1x104x8xf32> to vector<104x8xf32>
    %66 = arith.truncf %65 : vector<104x8xf32> to vector<104x8xbf16>
    %c9 = arith.constant 9 : index
    %c0_66 = arith.constant 0 : index
    %c0_67 = arith.constant 0 : index
    %67 = vector.load %arg2[%c9, %c0_66, %c0_67] : memref<16x8x8xbf16, #tpu.memory_space<vmem>>, vector<1x8x8xbf16>
    %68 = vector.shape_cast %67 : vector<1x8x8xbf16> to vector<8x8xbf16>
    %cst_68 = arith.constant dense<0.000000e+00> : vector<104x8xf32>
    %69 = tpu.matmul %66, %68, %cst_68 {dimension_numbers = #tpu.dot_dimension_numbers<[1], [0], [0], [1], [0, 0, 1, 1], [], []>} : vector<104x8xbf16>, vector<8x8xbf16>, vector<104x8xf32> -> vector<104x8xf32>
    %70 = arith.addf %63, %69 : vector<104x8xf32>
    %c0_69 = arith.constant 0 : index
    %c0_70 = arith.constant 0 : index
    %c11 = arith.constant 11 : index
    %c0_71 = arith.constant 0 : index
    %71 = vector.load %arg1[%c0_69, %c0_70, %c11, %c0_71] : memref<1x4x120x8xf32, #tpu.memory_space<vmem>>, vector<1x1x104x8xf32>
    %72 = vector.shape_cast %71 : vector<1x1x104x8xf32> to vector<104x8xf32>
    %73 = arith.truncf %72 : vector<104x8xf32> to vector<104x8xbf16>
    %c10_72 = arith.constant 10 : index
    %c0_73 = arith.constant 0 : index
    %c0_74 = arith.constant 0 : index
    %74 = vector.load %arg2[%c10_72, %c0_73, %c0_74] : memref<16x8x8xbf16, #tpu.memory_space<vmem>>, vector<1x8x8xbf16>
    %75 = vector.shape_cast %74 : vector<1x8x8xbf16> to vector<8x8xbf16>
    %cst_75 = arith.constant dense<0.000000e+00> : vector<104x8xf32>
    %76 = tpu.matmul %73, %75, %cst_75 {dimension_numbers = #tpu.dot_dimension_numbers<[1], [0], [0], [1], [0, 0, 1, 1], [], []>} : vector<104x8xbf16>, vector<8x8xbf16>, vector<104x8xf32> -> vector<104x8xf32>
    %77 = arith.addf %70, %76 : vector<104x8xf32>
    %c0_76 = arith.constant 0 : index
    %c1_77 = arith.constant 1 : index
    %c11_78 = arith.constant 11 : index
    %c0_79 = arith.constant 0 : index
    %78 = vector.load %arg1[%c0_76, %c1_77, %c11_78, %c0_79] : memref<1x4x120x8xf32, #tpu.memory_space<vmem>>, vector<1x1x104x8xf32>
    %79 = vector.shape_cast %78 : vector<1x1x104x8xf32> to vector<104x8xf32>
    %80 = arith.truncf %79 : vector<104x8xf32> to vector<104x8xbf16>
    %c11_80 = arith.constant 11 : index
    %c0_81 = arith.constant 0 : index
    %c0_82 = arith.constant 0 : index
    %81 = vector.load %arg2[%c11_80, %c0_81, %c0_82] : memref<16x8x8xbf16, #tpu.memory_space<vmem>>, vector<1x8x8xbf16>
    %82 = vector.shape_cast %81 : vector<1x8x8xbf16> to vector<8x8xbf16>
    %cst_83 = arith.constant dense<0.000000e+00> : vector<104x8xf32>
    %83 = tpu.matmul %80, %82, %cst_83 {dimension_numbers = #tpu.dot_dimension_numbers<[1], [0], [0], [1], [0, 0, 1, 1], [], []>} : vector<104x8xbf16>, vector<8x8xbf16>, vector<104x8xf32> -> vector<104x8xf32>
    %84 = arith.addf %77, %83 : vector<104x8xf32>
    %c0_84 = arith.constant 0 : index
    %c2_85 = arith.constant 2 : index
    %c10_86 = arith.constant 10 : index
    %c0_87 = arith.constant 0 : index
    %85 = vector.load %arg1[%c0_84, %c2_85, %c10_86, %c0_87] : memref<1x4x120x8xf32, #tpu.memory_space<vmem>>, vector<1x1x104x8xf32>
    %86 = vector.shape_cast %85 : vector<1x1x104x8xf32> to vector<104x8xf32>
    %87 = arith.truncf %86 : vector<104x8xf32> to vector<104x8xbf16>
    %c12 = arith.constant 12 : index
    %c0_88 = arith.constant 0 : index
    %c0_89 = arith.constant 0 : index
    %88 = vector.load %arg2[%c12, %c0_88, %c0_89] : memref<16x8x8xbf16, #tpu.memory_space<vmem>>, vector<1x8x8xbf16>
    %89 = vector.shape_cast %88 : vector<1x8x8xbf16> to vector<8x8xbf16>
    %cst_90 = arith.constant dense<0.000000e+00> : vector<104x8xf32>
    %90 = tpu.matmul %87, %89, %cst_90 {dimension_numbers = #tpu.dot_dimension_numbers<[1], [0], [0], [1], [0, 0, 1, 1], [], []>} : vector<104x8xbf16>, vector<8x8xbf16>, vector<104x8xf32> -> vector<104x8xf32>
    %91 = arith.addf %84, %90 : vector<104x8xf32>
    %c0_91 = arith.constant 0 : index
    %c3_92 = arith.constant 3 : index
    %c10_93 = arith.constant 10 : index
    %c0_94 = arith.constant 0 : index
    %92 = vector.load %arg1[%c0_91, %c3_92, %c10_93, %c0_94] : memref<1x4x120x8xf32, #tpu.memory_space<vmem>>, vector<1x1x104x8xf32>
    %93 = vector.shape_cast %92 : vector<1x1x104x8xf32> to vector<104x8xf32>
    %94 = arith.truncf %93 : vector<104x8xf32> to vector<104x8xbf16>
    %c13 = arith.constant 13 : index
    %c0_95 = arith.constant 0 : index
    %c0_96 = arith.constant 0 : index
    %95 = vector.load %arg2[%c13, %c0_95, %c0_96] : memref<16x8x8xbf16, #tpu.memory_space<vmem>>, vector<1x8x8xbf16>
    %96 = vector.shape_cast %95 : vector<1x8x8xbf16> to vector<8x8xbf16>
    %cst_97 = arith.constant dense<0.000000e+00> : vector<104x8xf32>
    %97 = tpu.matmul %94, %96, %cst_97 {dimension_numbers = #tpu.dot_dimension_numbers<[1], [0], [0], [1], [0, 0, 1, 1], [], []>} : vector<104x8xbf16>, vector<8x8xbf16>, vector<104x8xf32> -> vector<104x8xf32>
    %98 = arith.addf %91, %97 : vector<104x8xf32>
    %c0_98 = arith.constant 0 : index
    %c2_99 = arith.constant 2 : index
    %c11_100 = arith.constant 11 : index
    %c0_101 = arith.constant 0 : index
    %99 = vector.load %arg1[%c0_98, %c2_99, %c11_100, %c0_101] : memref<1x4x120x8xf32, #tpu.memory_space<vmem>>, vector<1x1x104x8xf32>
    %100 = vector.shape_cast %99 : vector<1x1x104x8xf32> to vector<104x8xf32>
    %101 = arith.truncf %100 : vector<104x8xf32> to vector<104x8xbf16>
    %c14 = arith.constant 14 : index
    %c0_102 = arith.constant 0 : index
    %c0_103 = arith.constant 0 : index
    %102 = vector.load %arg2[%c14, %c0_102, %c0_103] : memref<16x8x8xbf16, #tpu.memory_space<vmem>>, vector<1x8x8xbf16>
    %103 = vector.shape_cast %102 : vector<1x8x8xbf16> to vector<8x8xbf16>
    %cst_104 = arith.constant dense<0.000000e+00> : vector<104x8xf32>
    %104 = tpu.matmul %101, %103, %cst_104 {dimension_numbers = #tpu.dot_dimension_numbers<[1], [0], [0], [1], [0, 0, 1, 1], [], []>} : vector<104x8xbf16>, vector<8x8xbf16>, vector<104x8xf32> -> vector<104x8xf32>
    %105 = arith.addf %98, %104 : vector<104x8xf32>
    %c0_105 = arith.constant 0 : index
    %c3_106 = arith.constant 3 : index
    %c11_107 = arith.constant 11 : index
    %c0_108 = arith.constant 0 : index
    %106 = vector.load %arg1[%c0_105, %c3_106, %c11_107, %c0_108] : memref<1x4x120x8xf32, #tpu.memory_space<vmem>>, vector<1x1x104x8xf32>
    %107 = vector.shape_cast %106 : vector<1x1x104x8xf32> to vector<104x8xf32>
    %108 = arith.truncf %107 : vector<104x8xf32> to vector<104x8xbf16>
    %c15 = arith.constant 15 : index
    %c0_109 = arith.constant 0 : index
    %c0_110 = arith.constant 0 : index
    %109 = vector.load %arg2[%c15, %c0_109, %c0_110] : memref<16x8x8xbf16, #tpu.memory_space<vmem>>, vector<1x8x8xbf16>
    %110 = vector.shape_cast %109 : vector<1x8x8xbf16> to vector<8x8xbf16>
    %cst_111 = arith.constant dense<0.000000e+00> : vector<104x8xf32>
    %111 = tpu.matmul %108, %110, %cst_111 {dimension_numbers = #tpu.dot_dimension_numbers<[1], [0], [0], [1], [0, 0, 1, 1], [], []>} : vector<104x8xbf16>, vector<8x8xbf16>, vector<104x8xf32> -> vector<104x8xf32>
    %112 = arith.addf %105, %111 : vector<104x8xf32>
    %c0_112 = arith.constant 0 : index
    %c0_113 = arith.constant 0 : index
    %113 = vector.load %arg4[%c0_112, %c0_113] : memref<1x8xf32, #tpu.memory_space<vmem>>, vector<1x8xf32>
    %114 = vector.broadcast %113 : vector<1x8xf32> to vector<104x8xf32>
    %115 = arith.addf %112, %114 : vector<104x8xf32>
    %cst_114 = arith.constant 0.000000e+00 : f32
    %116 = vector.broadcast %cst_114 : f32 to vector<104x8xf32>
    %117 = arith.maximumf %115, %116 : vector<104x8xf32>
    %c0_115 = arith.constant 0 : index
    %c0_116 = arith.constant 0 : index
    %118 = vector.load %arg6[%c0_115, %c0_116] : memref<104x1xf32, #tpu.memory_space<vmem>>, vector<104x1xf32>
    %119 = vector.broadcast %118 : vector<104x1xf32> to vector<104x8xf32>
    %120 = arith.mulf %117, %119 : vector<104x8xf32>
    %c0_117 = arith.constant 0 : index
    %c0_118 = arith.constant 0 : index
    %121 = vector.load %arg8[%c0_117, %c0_118] : memref<104x8xf32, #tpu.memory_space<vmem>>, vector<104x8xf32>
    tpu.vector_store %arg8[%c0_117, %c0_118], %120 {strides = array<i32>} : memref<104x8xf32, #tpu.memory_space<vmem>>, vector<104x8xf32>,
    %cst_119 = arith.constant 0.000000e+00 : f32
    %122 = vector.broadcast %cst_119 : f32 to vector<80x8xf32>
    %c0_120 = arith.constant 0 : index
    %c0_121 = arith.constant 0 : index
    %123 = vector.load %arg8[%c0_120, %c0_121] : memref<104x8xf32, #tpu.memory_space<vmem>>, vector<80x8xf32>
    %124 = arith.truncf %123 : vector<80x8xf32> to vector<80x8xbf16>
    %c0_122 = arith.constant 0 : index
    %c0_123 = arith.constant 0 : index
    %c0_124 = arith.constant 0 : index
    %125 = vector.load %arg3[%c0_122, %c0_123, %c0_124] : memref<16x8x8xbf16, #tpu.memory_space<vmem>>, vector<1x8x8xbf16>
    %126 = vector.shape_cast %125 : vector<1x8x8xbf16> to vector<8x8xbf16>
    %cst_125 = arith.constant dense<0.000000e+00> : vector<80x8xf32>
    %127 = tpu.matmul %124, %126, %cst_125 {dimension_numbers = #tpu.dot_dimension_numbers<[1], [0], [0], [1], [0, 0, 1, 1], [], []>} : vector<80x8xbf16>, vector<8x8xbf16>, vector<80x8xf32> -> vector<80x8xf32>
    %128 = arith.addf %122, %127 : vector<80x8xf32>
    %c1_126 = arith.constant 1 : index
    %c0_127 = arith.constant 0 : index
    %129 = vector.load %arg8[%c1_126, %c0_127] : memref<104x8xf32, #tpu.memory_space<vmem>>, vector<80x8xf32>
    %130 = arith.truncf %129 : vector<80x8xf32> to vector<80x8xbf16>
    %c1_128 = arith.constant 1 : index
    %c0_129 = arith.constant 0 : index
    %c0_130 = arith.constant 0 : index
    %131 = vector.load %arg3[%c1_128, %c0_129, %c0_130] : memref<16x8x8xbf16, #tpu.memory_space<vmem>>, vector<1x8x8xbf16>
    %132 = vector.shape_cast %131 : vector<1x8x8xbf16> to vector<8x8xbf16>
    %cst_131 = arith.constant dense<0.000000e+00> : vector<80x8xf32>
    %133 = tpu.matmul %130, %132, %cst_131 {dimension_numbers = #tpu.dot_dimension_numbers<[1], [0], [0], [1], [0, 0, 1, 1], [], []>} : vector<80x8xbf16>, vector<8x8xbf16>, vector<80x8xf32> -> vector<80x8xf32>
    %134 = arith.addf %128, %133 : vector<80x8xf32>
    %c10_132 = arith.constant 10 : index
    %c0_133 = arith.constant 0 : index
    %135 = vector.load %arg8[%c10_132, %c0_133] : memref<104x8xf32, #tpu.memory_space<vmem>>, vector<80x8xf32>
    %136 = arith.truncf %135 : vector<80x8xf32> to vector<80x8xbf16>
    %c2_134 = arith.constant 2 : index
    %c0_135 = arith.constant 0 : index
    %c0_136 = arith.constant 0 : index
    %137 = vector.load %arg3[%c2_134, %c0_135, %c0_136] : memref<16x8x8xbf16, #tpu.memory_space<vmem>>, vector<1x8x8xbf16>
    %138 = vector.shape_cast %137 : vector<1x8x8xbf16> to vector<8x8xbf16>
    %cst_137 = arith.constant dense<0.000000e+00> : vector<80x8xf32>
    %139 = tpu.matmul %136, %138, %cst_137 {dimension_numbers = #tpu.dot_dimension_numbers<[1], [0], [0], [1], [0, 0, 1, 1], [], []>} : vector<80x8xbf16>, vector<8x8xbf16>, vector<80x8xf32> -> vector<80x8xf32>
    %140 = arith.addf %134, %139 : vector<80x8xf32>
    %c11_138 = arith.constant 11 : index
    %c0_139 = arith.constant 0 : index
    %141 = vector.load %arg8[%c11_138, %c0_139] : memref<104x8xf32, #tpu.memory_space<vmem>>, vector<80x8xf32>
    %142 = arith.truncf %141 : vector<80x8xf32> to vector<80x8xbf16>
    %c3_140 = arith.constant 3 : index
    %c0_141 = arith.constant 0 : index
    %c0_142 = arith.constant 0 : index
    %143 = vector.load %arg3[%c3_140, %c0_141, %c0_142] : memref<16x8x8xbf16, #tpu.memory_space<vmem>>, vector<1x8x8xbf16>
    %144 = vector.shape_cast %143 : vector<1x8x8xbf16> to vector<8x8xbf16>
    %cst_143 = arith.constant dense<0.000000e+00> : vector<80x8xf32>
    %145 = tpu.matmul %142, %144, %cst_143 {dimension_numbers = #tpu.dot_dimension_numbers<[1], [0], [0], [1], [0, 0, 1, 1], [], []>} : vector<80x8xbf16>, vector<8x8xbf16>, vector<80x8xf32> -> vector<80x8xf32>
    %146 = arith.addf %140, %145 : vector<80x8xf32>
    %c0_144 = arith.constant 0 : index
    %c0_145 = arith.constant 0 : index
    %147 = vector.load %arg5[%c0_144, %c0_145] : memref<1x8xf32, #tpu.memory_space<vmem>>, vector<1x8xf32>
    %148 = vector.broadcast %147 : vector<1x8xf32> to vector<80x8xf32>
    %149 = arith.addf %146, %148 : vector<80x8xf32>
    %c0_146 = arith.constant 0 : index
    %c0_147 = arith.constant 0 : index
    %c0_148 = arith.constant 0 : index
    %c0_149 = arith.constant 0 : index
    %150 = vector.load %arg7[%c0_146, %c0_147, %c0_148, %c0_149] : memref<1x4x80x8xf32, #tpu.memory_space<vmem>>, vector<1x1x80x8xf32>
    %151 = vector.shape_cast %150 : vector<1x1x80x8xf32> to vector<80x8xf32>
    %152 = vector.shape_cast %149 : vector<80x8xf32> to vector<1x1x80x8xf32>
    tpu.vector_store %arg7[%c0_146, %c0_147, %c0_148, %c0_149], %152 {strides = array<i32>} : memref<1x4x80x8xf32, #tpu.memory_space<vmem>>, vector<1x1x80x8xf32>,
    %cst_150 = arith.constant 0.000000e+00 : f32
    %153 = vector.broadcast %cst_150 : f32 to vector<80x8xf32>
    %c1_151 = arith.constant 1 : index
    %c0_152 = arith.constant 0 : index
    %154 = vector.load %arg8[%c1_151, %c0_152] : memref<104x8xf32, #tpu.memory_space<vmem>>, vector<80x8xf32>
    %155 = arith.truncf %154 : vector<80x8xf32> to vector<80x8xbf16>
    %c4_153 = arith.constant 4 : index
    %c0_154 = arith.constant 0 : index
    %c0_155 = arith.constant 0 : index
    %156 = vector.load %arg3[%c4_153, %c0_154, %c0_155] : memref<16x8x8xbf16, #tpu.memory_space<vmem>>, vector<1x8x8xbf16>
    %157 = vector.shape_cast %156 : vector<1x8x8xbf16> to vector<8x8xbf16>
    %cst_156 = arith.constant dense<0.000000e+00> : vector<80x8xf32>
    %158 = tpu.matmul %155, %157, %cst_156 {dimension_numbers = #tpu.dot_dimension_numbers<[1], [0], [0], [1], [0, 0, 1, 1], [], []>} : vector<80x8xbf16>, vector<8x8xbf16>, vector<80x8xf32> -> vector<80x8xf32>
    %159 = arith.addf %153, %158 : vector<80x8xf32>
    %c2_157 = arith.constant 2 : index
    %c0_158 = arith.constant 0 : index
    %160 = vector.load %arg8[%c2_157, %c0_158] : memref<104x8xf32, #tpu.memory_space<vmem>>, vector<80x8xf32>
    %161 = arith.truncf %160 : vector<80x8xf32> to vector<80x8xbf16>
    %c5_159 = arith.constant 5 : index
    %c0_160 = arith.constant 0 : index
    %c0_161 = arith.constant 0 : index
    %162 = vector.load %arg3[%c5_159, %c0_160, %c0_161] : memref<16x8x8xbf16, #tpu.memory_space<vmem>>, vector<1x8x8xbf16>
    %163 = vector.shape_cast %162 : vector<1x8x8xbf16> to vector<8x8xbf16>
    %cst_162 = arith.constant dense<0.000000e+00> : vector<80x8xf32>
    %164 = tpu.matmul %161, %163, %cst_162 {dimension_numbers = #tpu.dot_dimension_numbers<[1], [0], [0], [1], [0, 0, 1, 1], [], []>} : vector<80x8xbf16>, vector<8x8xbf16>, vector<80x8xf32> -> vector<80x8xf32>
    %165 = arith.addf %159, %164 : vector<80x8xf32>
    %c11_163 = arith.constant 11 : index
    %c0_164 = arith.constant 0 : index
    %166 = vector.load %arg8[%c11_163, %c0_164] : memref<104x8xf32, #tpu.memory_space<vmem>>, vector<80x8xf32>
    %167 = arith.truncf %166 : vector<80x8xf32> to vector<80x8xbf16>
    %c6_165 = arith.constant 6 : index
    %c0_166 = arith.constant 0 : index
    %c0_167 = arith.constant 0 : index
    %168 = vector.load %arg3[%c6_165, %c0_166, %c0_167] : memref<16x8x8xbf16, #tpu.memory_space<vmem>>, vector<1x8x8xbf16>
    %169 = vector.shape_cast %168 : vector<1x8x8xbf16> to vector<8x8xbf16>
    %cst_168 = arith.constant dense<0.000000e+00> : vector<80x8xf32>
    %170 = tpu.matmul %167, %169, %cst_168 {dimension_numbers = #tpu.dot_dimension_numbers<[1], [0], [0], [1], [0, 0, 1, 1], [], []>} : vector<80x8xbf16>, vector<8x8xbf16>, vector<80x8xf32> -> vector<80x8xf32>
    %171 = arith.addf %165, %170 : vector<80x8xf32>
    %c12_169 = arith.constant 12 : index
    %c0_170 = arith.constant 0 : index
    %172 = vector.load %arg8[%c12_169, %c0_170] : memref<104x8xf32, #tpu.memory_space<vmem>>, vector<80x8xf32>
    %173 = arith.truncf %172 : vector<80x8xf32> to vector<80x8xbf16>
    %c7_171 = arith.constant 7 : index
    %c0_172 = arith.constant 0 : index
    %c0_173 = arith.constant 0 : index
    %174 = vector.load %arg3[%c7_171, %c0_172, %c0_173] : memref<16x8x8xbf16, #tpu.memory_space<vmem>>, vector<1x8x8xbf16>
    %175 = vector.shape_cast %174 : vector<1x8x8xbf16> to vector<8x8xbf16>
    %cst_174 = arith.constant dense<0.000000e+00> : vector<80x8xf32>
    %176 = tpu.matmul %173, %175, %cst_174 {dimension_numbers = #tpu.dot_dimension_numbers<[1], [0], [0], [1], [0, 0, 1, 1], [], []>} : vector<80x8xbf16>, vector<8x8xbf16>, vector<80x8xf32> -> vector<80x8xf32>
    %177 = arith.addf %171, %176 : vector<80x8xf32>
    %c0_175 = arith.constant 0 : index
    %c0_176 = arith.constant 0 : index
    %178 = vector.load %arg5[%c0_175, %c0_176] : memref<1x8xf32, #tpu.memory_space<vmem>>, vector<1x8xf32>
    %179 = vector.broadcast %178 : vector<1x8xf32> to vector<80x8xf32>
    %180 = arith.addf %177, %179 : vector<80x8xf32>
    %c0_177 = arith.constant 0 : index
    %c1_178 = arith.constant 1 : index
    %c0_179 = arith.constant 0 : index
    %c0_180 = arith.constant 0 : index
    %181 = vector.load %arg7[%c0_177, %c1_178, %c0_179, %c0_180] : memref<1x4x80x8xf32, #tpu.memory_space<vmem>>, vector<1x1x80x8xf32>
    %182 = vector.shape_cast %181 : vector<1x1x80x8xf32> to vector<80x8xf32>
    %183 = vector.shape_cast %180 : vector<80x8xf32> to vector<1x1x80x8xf32>
    tpu.vector_store %arg7[%c0_177, %c1_178, %c0_179, %c0_180], %183 {strides = array<i32>} : memref<1x4x80x8xf32, #tpu.memory_space<vmem>>, vector<1x1x80x8xf32>,
    %cst_181 = arith.constant 0.000000e+00 : f32
    %184 = vector.broadcast %cst_181 : f32 to vector<80x8xf32>
    %c10_182 = arith.constant 10 : index
    %c0_183 = arith.constant 0 : index
    %185 = vector.load %arg8[%c10_182, %c0_183] : memref<104x8xf32, #tpu.memory_space<vmem>>, vector<80x8xf32>
    %186 = arith.truncf %185 : vector<80x8xf32> to vector<80x8xbf16>
    %c8_184 = arith.constant 8 : index
    %c0_185 = arith.constant 0 : index
    %c0_186 = arith.constant 0 : index
    %187 = vector.load %arg3[%c8_184, %c0_185, %c0_186] : memref<16x8x8xbf16, #tpu.memory_space<vmem>>, vector<1x8x8xbf16>
    %188 = vector.shape_cast %187 : vector<1x8x8xbf16> to vector<8x8xbf16>
    %cst_187 = arith.constant dense<0.000000e+00> : vector<80x8xf32>
    %189 = tpu.matmul %186, %188, %cst_187 {dimension_numbers = #tpu.dot_dimension_numbers<[1], [0], [0], [1], [0, 0, 1, 1], [], []>} : vector<80x8xbf16>, vector<8x8xbf16>, vector<80x8xf32> -> vector<80x8xf32>
    %190 = arith.addf %184, %189 : vector<80x8xf32>
    %c11_188 = arith.constant 11 : index
    %c0_189 = arith.constant 0 : index
    %191 = vector.load %arg8[%c11_188, %c0_189] : memref<104x8xf32, #tpu.memory_space<vmem>>, vector<80x8xf32>
    %192 = arith.truncf %191 : vector<80x8xf32> to vector<80x8xbf16>
    %c9_190 = arith.constant 9 : index
    %c0_191 = arith.constant 0 : index
    %c0_192 = arith.constant 0 : index
    %193 = vector.load %arg3[%c9_190, %c0_191, %c0_192] : memref<16x8x8xbf16, #tpu.memory_space<vmem>>, vector<1x8x8xbf16>
    %194 = vector.shape_cast %193 : vector<1x8x8xbf16> to vector<8x8xbf16>
    %cst_193 = arith.constant dense<0.000000e+00> : vector<80x8xf32>
    %195 = tpu.matmul %192, %194, %cst_193 {dimension_numbers = #tpu.dot_dimension_numbers<[1], [0], [0], [1], [0, 0, 1, 1], [], []>} : vector<80x8xbf16>, vector<8x8xbf16>, vector<80x8xf32> -> vector<80x8xf32>
    %196 = arith.addf %190, %195 : vector<80x8xf32>
    %c20 = arith.constant 20 : index
    %c0_194 = arith.constant 0 : index
    %197 = vector.load %arg8[%c20, %c0_194] : memref<104x8xf32, #tpu.memory_space<vmem>>, vector<80x8xf32>
    %198 = arith.truncf %197 : vector<80x8xf32> to vector<80x8xbf16>
    %c10_195 = arith.constant 10 : index
    %c0_196 = arith.constant 0 : index
    %c0_197 = arith.constant 0 : index
    %199 = vector.load %arg3[%c10_195, %c0_196, %c0_197] : memref<16x8x8xbf16, #tpu.memory_space<vmem>>, vector<1x8x8xbf16>
    %200 = vector.shape_cast %199 : vector<1x8x8xbf16> to vector<8x8xbf16>
    %cst_198 = arith.constant dense<0.000000e+00> : vector<80x8xf32>
    %201 = tpu.matmul %198, %200, %cst_198 {dimension_numbers = #tpu.dot_dimension_numbers<[1], [0], [0], [1], [0, 0, 1, 1], [], []>} : vector<80x8xbf16>, vector<8x8xbf16>, vector<80x8xf32> -> vector<80x8xf32>
    %202 = arith.addf %196, %201 : vector<80x8xf32>
    %c21 = arith.constant 21 : index
    %c0_199 = arith.constant 0 : index
    %203 = vector.load %arg8[%c21, %c0_199] : memref<104x8xf32, #tpu.memory_space<vmem>>, vector<80x8xf32>
    %204 = arith.truncf %203 : vector<80x8xf32> to vector<80x8xbf16>
    %c11_200 = arith.constant 11 : index
    %c0_201 = arith.constant 0 : index
    %c0_202 = arith.constant 0 : index
    %205 = vector.load %arg3[%c11_200, %c0_201, %c0_202] : memref<16x8x8xbf16, #tpu.memory_space<vmem>>, vector<1x8x8xbf16>
    %206 = vector.shape_cast %205 : vector<1x8x8xbf16> to vector<8x8xbf16>
    %cst_203 = arith.constant dense<0.000000e+00> : vector<80x8xf32>
    %207 = tpu.matmul %204, %206, %cst_203 {dimension_numbers = #tpu.dot_dimension_numbers<[1], [0], [0], [1], [0, 0, 1, 1], [], []>} : vector<80x8xbf16>, vector<8x8xbf16>, vector<80x8xf32> -> vector<80x8xf32>
    %208 = arith.addf %202, %207 : vector<80x8xf32>
    %c0_204 = arith.constant 0 : index
    %c0_205 = arith.constant 0 : index
    %209 = vector.load %arg5[%c0_204, %c0_205] : memref<1x8xf32, #tpu.memory_space<vmem>>, vector<1x8xf32>
    %210 = vector.broadcast %209 : vector<1x8xf32> to vector<80x8xf32>
    %211 = arith.addf %208, %210 : vector<80x8xf32>
    %c0_206 = arith.constant 0 : index
    %c2_207 = arith.constant 2 : index
    %c0_208 = arith.constant 0 : index
    %c0_209 = arith.constant 0 : index
    %212 = vector.load %arg7[%c0_206, %c2_207, %c0_208, %c0_209] : memref<1x4x80x8xf32, #tpu.memory_space<vmem>>, vector<1x1x80x8xf32>
    %213 = vector.shape_cast %212 : vector<1x1x80x8xf32> to vector<80x8xf32>
    %214 = vector.shape_cast %211 : vector<80x8xf32> to vector<1x1x80x8xf32>
    tpu.vector_store %arg7[%c0_206, %c2_207, %c0_208, %c0_209], %214 {strides = array<i32>} : memref<1x4x80x8xf32, #tpu.memory_space<vmem>>, vector<1x1x80x8xf32>,
    %cst_210 = arith.constant 0.000000e+00 : f32
    %215 = vector.broadcast %cst_210 : f32 to vector<80x8xf32>
    %c11_211 = arith.constant 11 : index
    %c0_212 = arith.constant 0 : index
    %216 = vector.load %arg8[%c11_211, %c0_212] : memref<104x8xf32, #tpu.memory_space<vmem>>, vector<80x8xf32>
    %217 = arith.truncf %216 : vector<80x8xf32> to vector<80x8xbf16>
    %c12_213 = arith.constant 12 : index
    %c0_214 = arith.constant 0 : index
    %c0_215 = arith.constant 0 : index
    %218 = vector.load %arg3[%c12_213, %c0_214, %c0_215] : memref<16x8x8xbf16, #tpu.memory_space<vmem>>, vector<1x8x8xbf16>
    %219 = vector.shape_cast %218 : vector<1x8x8xbf16> to vector<8x8xbf16>
    %cst_216 = arith.constant dense<0.000000e+00> : vector<80x8xf32>
    %220 = tpu.matmul %217, %219, %cst_216 {dimension_numbers = #tpu.dot_dimension_numbers<[1], [0], [0], [1], [0, 0, 1, 1], [], []>} : vector<80x8xbf16>, vector<8x8xbf16>, vector<80x8xf32> -> vector<80x8xf32>
    %221 = arith.addf %215, %220 : vector<80x8xf32>
    %c12_217 = arith.constant 12 : index
    %c0_218 = arith.constant 0 : index
    %222 = vector.load %arg8[%c12_217, %c0_218] : memref<104x8xf32, #tpu.memory_space<vmem>>, vector<80x8xf32>
    %223 = arith.truncf %222 : vector<80x8xf32> to vector<80x8xbf16>
    %c13_219 = arith.constant 13 : index
    %c0_220 = arith.constant 0 : index
    %c0_221 = arith.constant 0 : index
    %224 = vector.load %arg3[%c13_219, %c0_220, %c0_221] : memref<16x8x8xbf16, #tpu.memory_space<vmem>>, vector<1x8x8xbf16>
    %225 = vector.shape_cast %224 : vector<1x8x8xbf16> to vector<8x8xbf16>
    %cst_222 = arith.constant dense<0.000000e+00> : vector<80x8xf32>
    %226 = tpu.matmul %223, %225, %cst_222 {dimension_numbers = #tpu.dot_dimension_numbers<[1], [0], [0], [1], [0, 0, 1, 1], [], []>} : vector<80x8xbf16>, vector<8x8xbf16>, vector<80x8xf32> -> vector<80x8xf32>
    %227 = arith.addf %221, %226 : vector<80x8xf32>
    %c21_223 = arith.constant 21 : index
    %c0_224 = arith.constant 0 : index
    %228 = vector.load %arg8[%c21_223, %c0_224] : memref<104x8xf32, #tpu.memory_space<vmem>>, vector<80x8xf32>
    %229 = arith.truncf %228 : vector<80x8xf32> to vector<80x8xbf16>
    %c14_225 = arith.constant 14 : index
    %c0_226 = arith.constant 0 : index
    %c0_227 = arith.constant 0 : index
    %230 = vector.load %arg3[%c14_225, %c0_226, %c0_227] : memref<16x8x8xbf16, #tpu.memory_space<vmem>>, vector<1x8x8xbf16>
    %231 = vector.shape_cast %230 : vector<1x8x8xbf16> to vector<8x8xbf16>
    %cst_228 = arith.constant dense<0.000000e+00> : vector<80x8xf32>
    %232 = tpu.matmul %229, %231, %cst_228 {dimension_numbers = #tpu.dot_dimension_numbers<[1], [0], [0], [1], [0, 0, 1, 1], [], []>} : vector<80x8xbf16>, vector<8x8xbf16>, vector<80x8xf32> -> vector<80x8xf32>
    %233 = arith.addf %227, %232 : vector<80x8xf32>
    %c22 = arith.constant 22 : index
    %c0_229 = arith.constant 0 : index
    %234 = vector.load %arg8[%c22, %c0_229] : memref<104x8xf32, #tpu.memory_space<vmem>>, vector<80x8xf32>
    %235 = arith.truncf %234 : vector<80x8xf32> to vector<80x8xbf16>
    %c15_230 = arith.constant 15 : index
    %c0_231 = arith.constant 0 : index
    %c0_232 = arith.constant 0 : index
    %236 = vector.load %arg3[%c15_230, %c0_231, %c0_232] : memref<16x8x8xbf16, #tpu.memory_space<vmem>>, vector<1x8x8xbf16>
    %237 = vector.shape_cast %236 : vector<1x8x8xbf16> to vector<8x8xbf16>
    %cst_233 = arith.constant dense<0.000000e+00> : vector<80x8xf32>
    %238 = tpu.matmul %235, %237, %cst_233 {dimension_numbers = #tpu.dot_dimension_numbers<[1], [0], [0], [1], [0, 0, 1, 1], [], []>} : vector<80x8xbf16>, vector<8x8xbf16>, vector<80x8xf32> -> vector<80x8xf32>
    %239 = arith.addf %233, %238 : vector<80x8xf32>
    %c0_234 = arith.constant 0 : index
    %c0_235 = arith.constant 0 : index
    %240 = vector.load %arg5[%c0_234, %c0_235] : memref<1x8xf32, #tpu.memory_space<vmem>>, vector<1x8xf32>
    %241 = vector.broadcast %240 : vector<1x8xf32> to vector<80x8xf32>
    %242 = arith.addf %239, %241 : vector<80x8xf32>
    %c0_236 = arith.constant 0 : index
    %c3_237 = arith.constant 3 : index
    %c0_238 = arith.constant 0 : index
    %c0_239 = arith.constant 0 : index
    %243 = vector.load %arg7[%c0_236, %c3_237, %c0_238, %c0_239] : memref<1x4x80x8xf32, #tpu.memory_space<vmem>>, vector<1x1x80x8xf32>
    %244 = vector.shape_cast %243 : vector<1x1x80x8xf32> to vector<80x8xf32>
    %245 = vector.shape_cast %242 : vector<80x8xf32> to vector<1x1x80x8xf32>
    tpu.vector_store %arg7[%c0_236, %c3_237, %c0_238, %c0_239], %245 {strides = array<i32>} : memref<1x4x80x8xf32, #tpu.memory_space<vmem>>, vector<1x1x80x8xf32>,
    return
  }
  func.func @transform_0(%arg0: i32) -> (i32, i32, i32, i32) {
    %c0_i32 = arith.constant 0 : i32
    %c0_i32_0 = arith.constant 0 : i32
    %c0_i32_1 = arith.constant 0 : i32
    %c0_i32_2 = arith.constant 0 : i32
    return %arg0, %c0_i32, %c0_i32_0, %c0_i32_1 : i32, i32, i32, i32
  }
  func.func @transform_1(%arg0: i32) -> (i32, i32, i32) {
    %c0_i32 = arith.constant 0 : i32
    %c0_i32_0 = arith.constant 0 : i32
    %c0_i32_1 = arith.constant 0 : i32
    %c0_i32_2 = arith.constant 0 : i32
    return %c0_i32, %c0_i32_0, %c0_i32_1 : i32, i32, i32
  }
  func.func @transform_2(%arg0: i32) -> (i32, i32, i32) {
    %c0_i32 = arith.constant 0 : i32
    %c0_i32_0 = arith.constant 0 : i32
    %c0_i32_1 = arith.constant 0 : i32
    %c0_i32_2 = arith.constant 0 : i32
    return %c0_i32, %c0_i32_0, %c0_i32_1 : i32, i32, i32
  }
  func.func @transform_3(%arg0: i32) -> (i32, i32) {
    %c0_i32 = arith.constant 0 : i32
    %c0_i32_0 = arith.constant 0 : i32
    %c0_i32_1 = arith.constant 0 : i32
    return %c0_i32, %c0_i32_0 : i32, i32
  }
  func.func @transform_4(%arg0: i32) -> (i32, i32) {
    %c0_i32 = arith.constant 0 : i32
    %c0_i32_0 = arith.constant 0 : i32
    %c0_i32_1 = arith.constant 0 : i32
    return %c0_i32, %c0_i32_0 : i32, i32
  }
  func.func @transform_5(%arg0: i32) -> (i32, i32) {
    %c0_i32 = arith.constant 0 : i32
    %c0_i32_0 = arith.constant 0 : i32
    %c0_i32_1 = arith.constant 0 : i32
    return %c0_i32, %c0_i32_0 : i32, i32
  }
  func.func @transform_6(%arg0: i32) -> (i32, i32, i32, i32) {
    %c0_i32 = arith.constant 0 : i32
    %c0_i32_0 = arith.constant 0 : i32
    %c0_i32_1 = arith.constant 0 : i32
    %c0_i32_2 = arith.constant 0 : i32
    return %arg0, %c0_i32, %c0_i32_0, %c0_i32_1 : i32, i32, i32, i32
  }
}

</mosaic_0001>

<bundles_post_ra>
// kernel: unet_innermost_forward.1
= control target key start
LH: loop header
LB: loop body
LE: loop exit
PB: predicated region body
PF: predicated region fallthrough
CT: control target
= control target key end

     0   :  { %s3814_s21 = smov 0   ;;  %s4923_s0 = inlined_call_operand.vmem [shape: f32[2,4,120,8], index: 0, kind: input, shape index: {}]   ;;  %s4924_s1 = inlined_call_operand.vmem [shape: bf16[16,8,8], index: 1, kind: input, shape index: {}]   ;;  %s4925_s2 = inlined_call_operand.vmem [shape: bf16[16,8,8], index: 2, kind: input, shape index: {}]   ;;  %s4926_s3 = inlined_call_operand.vmem [shape: f32[1,8], index: 3, kind: input, shape index: {}]   ;;  %s4927_s4 = inlined_call_operand.vmem [shape: f32[1,8], index: 4, kind: input, shape index: {}]   ;;  %s4928_s5 = inlined_call_operand.vmem [shape: f32[104,1], index: 5, kind: input, shape index: {}]   ;;  %s4929_s6 = inlined_call_operand.vmem [shape: f32[2,4,80,8], index: 6, kind: output, shape index: {}]  }
   0x1 LB: > { %s3334_s22 = sadd.s32 4294967295, %s3776_s21   ;;  %p3338_p0 = scmp.ge.s32.totalorder %s3776_s21, 1  ;;  %s3776_s21 = sphi %s3814_s21, %s16_s21  }
   0x2   : > { %p212_p1 = scmp.lt.s32.totalorder %s3776_s21, 3 }
   0x4   : > { %p213_p2 = pnand %p3338_p0, %p212_p1 }
   0x5   : > { %p242_p3 = scmp.lt.s32.totalorder (!%p213_p2), %s3334_s22, 1 }
   0x6   : > { %216 = sbr.rel (%p213_p2) target bundleno = 986 (0x3da), region = 44 }
   0xb   : > { %v3354_v0 = vld [vmem:[%s4924_s1 + $0x4] sm:$0xf]  ;;  %vm319_vm0 = vcmask 1043456   ;;  %v273_v1 = vld [vmem:[%s4924_s1] sm:$0xf]  ;;  %s4931_s22 = smov (!%p242_p3, %s3334_s22), 1 }
   0xc   : > { %v321_v2 = vsel %vm319_vm0, %v3354_v0, 0  ;;  %v388_v3 = vsel %vm319_vm0, %v273_v1, 0  ;;  %v3369_v4 = vld [vmem:[%s4924_s1 + $0x8] sm:$0xf]  ;;  %v3390_v5 = vld [vmem:[%s4924_s1 + $0xc] sm:$0xf] }
   0xd   : > { %330 = vmatpush.bf16.msra.mxu0 %v321_v2  ;;  %397 = vmatpush.bf16.msra.mxu1 %v388_v3  ;;  %v477_v6 = vsel %vm319_vm0, %v3369_v4, 0  ;;  %v579_v7 = vsel %vm319_vm0, %v3390_v5, 0  ;;  %v3453_v8 = vld [vmem:[%s4924_s1 + $0x18] sm:$0xf]  ;;  %v3411_v10 = vld [vmem:[%s4924_s1 + $0x10] sm:$0xf] }
   0xe   : > { %486 = vmatpush.bf16.msra.mxu2 %v477_v6  ;;  %588 = vmatpush.bf16.msra.mxu3 %v579_v7  ;;  %v887_v9 = vsel %vm319_vm0, %v3453_v8, 0  ;;  %v3474_v11 = vld [vmem:[%s4924_s1 + $0x1c] sm:$0xf]  ;;  %s3751_s13 = smul.u32 480, %s4931_s22  ;;  %v682_v12 = vsel %vm319_vm0, %v3411_v10, 0  ;;  %vm297_vm1 = vcmask 64512  }
   0xf   : > { %v989_v13 = vsel %vm319_vm0, %v3474_v11, 0  ;;  %v3432_v14 = vld [vmem:[%s4924_s1 + $0x14] sm:$0xf] }
  0x10   : > { %v785_v15 = vsel %vm319_vm0, %v3432_v14, 0  ;;  %s3860_s18 = scalar_lea.vmem %s4923_s0, %s3751_s13 }
  0x11   : > { %691 = vmatpush.bf16.msrb.mxu0 %v682_v12  ;;  %794 = vmatpush.bf16.msrb.mxu1 %v785_v15  ;;  %v3341_v16 = vld [vmem:[%s3860_s18 + $0x78] sm:$0xff]  ;;  %v3342_v17 = vld [vmem:[%s3860_s18 + $0x80] sm:$0xff]  ;;  %v254_v20 = vld [vmem:[%s3860_s18 + $0x8] sm:$0xff] }
  0x12   : > { %896 = vmatpush.bf16.msrb.mxu2 %v887_v9  ;;  %998 = vmatpush.bf16.msrb.mxu3 %v989_v13  ;;  %v253_v18 = vld [vmem:[%s3860_s18] sm:$0xff]  ;;  %v288_v19 = vpack.c.bf16 %v3342_v17, %v3341_v16  ;;  %v434_v22 = vld [vmem:[%s3860_s18 + $0x9] sm:$0xff]  ;;  %v256_v31 = vld [vmem:[%s3860_s18 + $0x18] sm:$0xff] }
  0x13   : > { %v433_v21 = vld [vmem:[%s3860_s18 + $0x1] sm:$0xff]  ;;  %v266_v23 = vpack.c.bf16 %v254_v20, %v253_v18  ;;  %v3377_v25 = vld [vmem:[%s3860_s18 + $0x79] sm:$0xff]  ;;  %v3344_v29 = vld [vmem:[%s3860_s18 + $0x90] sm:$0xff] }
  0x14   : > { %v446_v24 = vpack.c.bf16 %v434_v22, %v433_v21  ;;  %v3378_v26 = vld [vmem:[%s3860_s18 + $0x81] sm:$0xff]  ;;  %3355 = vmatmul.msk.bf16.vlgmr.msra.gmra.mxu0 %vm297_vm1, %v288_v19  ;;  %v255_v30 = vld [vmem:[%s3860_s18 + $0x10] sm:$0xff]  ;;  %v436_v33 = vld [vmem:[%s3860_s18 + $0x19] sm:$0xff] }
  0x15   : > { %v548_v27 = vpack.c.bf16 %v3378_v26, %v3377_v25  ;;  %3362 = vmatmul.msk.bf16.vlgmr.msra.gmra.mxu1 %vm297_vm1, %v266_v23  ;;  %v3343_v28 = vld [vmem:[%s3860_s18 + $0x88] sm:$0xff]  ;;  %v435_v32 = vld [vmem:[%s3860_s18 + $0x11] sm:$0xff]  ;;  %v267_v37 = vpack.c.bf16 %v256_v31, %v255_v30  ;;  %v3346_v41 = vld [vmem:[%s3860_s18 + $0xa0] sm:$0xff] }
  0x16   : > { %3370 = vmatmul.msk.bf16.vlgmr.msra.gmra.mxu2 %vm297_vm1, %v446_v24  ;;  %v3379_v34 = vld [vmem:[%s3860_s18 + $0x89] sm:$0xff]  ;;  %v3380_v35 = vld [vmem:[%s3860_s18 + $0x91] sm:$0xff]  ;;  %v289_v36 = vpack.c.bf16 %v3344_v29, %v3343_v28  ;;  %v447_v38 = vpack.c.bf16 %v436_v33, %v435_v32  ;;  %v257_v42 = vld [vmem:[%s3860_s18 + $0x20] sm:$0xff] }
  0x17   : > { %3391 = vmatmul.msk.bf16.vlgmr.msra.gmra.mxu3 %vm297_vm1, %v548_v27  ;;  %v549_v39 = vpack.c.bf16 %v3380_v35, %v3379_v34  ;;  %v3345_v40 = vld [vmem:[%s3860_s18 + $0x98] sm:$0xff]  ;;  %v258_v43 = vld [vmem:[%s3860_s18 + $0x28] sm:$0xff]  ;;  %v3348_v53 = vld [vmem:[%s3860_s18 + $0xb0] sm:$0xff] }
  0x18   : > { %v437_v44 = vld [vmem:[%s3860_s18 + $0x21] sm:$0xff]  ;;  %v438_v45 = vld [vmem:[%s3860_s18 + $0x29] sm:$0xff]  ;;  %v3381_v46 = vld [vmem:[%s3860_s18 + $0x99] sm:$0xff]  ;;  %v290_v48 = vpack.c.bf16 %v3346_v41, %v3345_v40  ;;  %v268_v49 = vpack.c.bf16 %v258_v43, %v257_v42 }
  0x19   : > { %v3382_v47 = vld [vmem:[%s3860_s18 + $0xa1] sm:$0xff]  ;;  %v448_v50 = vpack.c.bf16 %v438_v45, %v437_v44  ;;  %v259_v54 = vld [vmem:[%s3860_s18 + $0x30] sm:$0xff]  ;;  %v260_v55 = vld [vmem:[%s3860_s18 + $0x38] sm:$0xff] }
  0x1a   : > { %v550_v51 = vpack.c.bf16 %v3382_v47, %v3381_v46  ;;  %v3347_v52 = vld [vmem:[%s3860_s18 + $0xa8] sm:$0xff]  ;;  %v439_v56 = vld [vmem:[%s3860_s18 + $0x31] sm:$0xff]  ;;  %v440_v57 = vld [vmem:[%s3860_s18 + $0x39] sm:$0xff]  ;;  %v269_v61 = vpack.c.bf16 %v260_v55, %v259_v54 }
  0x1b   : > { %v3383_v58 = vld [vmem:[%s3860_s18 + $0xa9] sm:$0xff]  ;;  %v3384_v59 = vld [vmem:[%s3860_s18 + $0xb1] sm:$0xff]  ;;  %v291_v60 = vpack.c.bf16 %v3348_v53, %v3347_v52  ;;  %v449_v62 = vpack.c.bf16 %v440_v57, %v439_v56  ;;  %v3350_v1 = vld [vmem:[%s3860_s18 + $0xc0] sm:$0xff] }
  0x1c   : > { %v551_v63 = vpack.c.bf16 %v3384_v59, %v3383_v58  ;;  %v3349_v0 = vld [vmem:[%s3860_s18 + $0xb8] sm:$0xff]  ;;  %v261_v2 = vld [vmem:[%s3860_s18 + $0x40] sm:$0xff]  ;;  %v262_v3 = vld [vmem:[%s3860_s18 + $0x48] sm:$0xff] }
  0x1d   : > { %v441_v4 = vld [vmem:[%s3860_s18 + $0x41] sm:$0xff]  ;;  %v442_v5 = vld [vmem:[%s3860_s18 + $0x49] sm:$0xff]  ;;  %v3385_v6 = vld [vmem:[%s3860_s18 + $0xb9] sm:$0xff]  ;;  %v292_v8 = vpack.c.bf16 %v3350_v1, %v3349_v0  ;;  %v270_v9 = vpack.c.bf16 %v262_v3, %v261_v2 }
  0x1e   : > { %v3386_v7 = vld [vmem:[%s3860_s18 + $0xc1] sm:$0xff]  ;;  %v450_v10 = vpack.c.bf16 %v442_v5, %v441_v4  ;;  %v3352_v13 = vld [vmem:[%s3860_s18 + $0xd0] sm:$0xff]  ;;  %v264_v15 = vld [vmem:[%s3860_s18 + $0x58] sm:$0xff] }
  0x1f   : > { %v552_v11 = vpack.c.bf16 %v3386_v7, %v3385_v6  ;;  %v3351_v12 = vld [vmem:[%s3860_s18 + $0xc8] sm:$0xff]  ;;  %v263_v14 = vld [vmem:[%s3860_s18 + $0x50] sm:$0xff]  ;;  %v444_v17 = vld [vmem:[%s3860_s18 + $0x59] sm:$0xff] }
  0x20   : > { %v443_v16 = vld [vmem:[%s3860_s18 + $0x51] sm:$0xff]  ;;  %v3387_v18 = vld [vmem:[%s3860_s18 + $0xc9] sm:$0xff]  ;;  %v293_v20 = vpack.c.bf16 %v3352_v13, %v3351_v12  ;;  %v271_v21 = vpack.c.bf16 %v264_v15, %v263_v14  ;;  %v3482_v25 = vld [vmem:[%s4924_s1 + $0x20] sm:$0xf] }
  0x21   : > { %v3388_v19 = vld [vmem:[%s3860_s18 + $0xd1] sm:$0xff]  ;;  %v451_v22 = vpack.c.bf16 %v444_v17, %v443_v16  ;;  %v3511_v24 = vld [vmem:[%s4924_s1 + $0x28] sm:$0xf]  ;;  %v3532_v26 = vld [vmem:[%s4924_s1 + $0x2c] sm:$0xf]  ;;  %v1091_v28 = vsel %vm319_vm0, %v3482_v25, 0 }
  0x22   : > { %v553_v23 = vpack.c.bf16 %v3388_v19, %v3387_v18  ;;  %v1295_v27 = vsel %vm319_vm0, %v3511_v24, 0  ;;  %v1397_v29 = vsel %vm319_vm0, %v3532_v26, 0  ;;  %v3503_v30 = vld [vmem:[%s4924_s1 + $0x24] sm:$0xf]  ;;  %1100 = vmatpush.bf16.msra.mxu0 %v1091_v28  ;;  %v3353_v32 = vld [vmem:[%s3860_s18 + $0xd8] sm:$0xff]  ;;  %v3398_v40 = vld [vmem:[%s3860_s18 + $0xf0] sm:$0xff] }
  0x23   : > { %1304 = vmatpush.bf16.msra.mxu2 %v1295_v27  ;;  %v1193_v31 = vsel %vm319_vm0, %v3503_v30, 0  ;;  %1406 = vmatpush.bf16.msra.mxu3 %v1397_v29  ;;  %v265_v33 = vld [vmem:[%s3860_s18 + $0x60] sm:$0xff]  ;;  %v3399_v41 = vld [vmem:[%s3860_s18 + $0xf8] sm:$0xff]  ;;  %v3419_v42 = vld [vmem:[%s3860_s18 + $0x168] sm:$0xff] }
  0x24   : > { %3356 = vmatmul.msk.bf16.gmra.mxu0 %vm297_vm1, %v289_v36  ;;  %1202 = vmatpush.bf16.msra.mxu1 %v1193_v31  ;;  %v445_v34 = vld [vmem:[%s3860_s18 + $0x61] sm:$0xff]  ;;  %v3389_v35 = vld [vmem:[%s3860_s18 + $0xd9] sm:$0xff]  ;;  %v294_v36 = vpack.c.bf16 %v3353_v32, %v3353_v32  ;;  %v3420_v43 = vld [vmem:[%s3860_s18 + $0x170] sm:$0xff] }
  0x25   : > { %3363 = vmatmul.msk.bf16.gmra.mxu1 %vm297_vm1, %v267_v37  ;;  %v272_v37 = vpack.c.bf16 %v265_v33, %v265_v33  ;;  %v3440_v44 = vld [vmem:[%s3860_s18 + $0xf1] sm:$0xff]  ;;  %v3441_v45 = vld [vmem:[%s3860_s18 + $0xf9] sm:$0xff]  ;;  %v3461_v46 = vld [vmem:[%s3860_s18 + $0x169] sm:$0xff] }
  0x26   : > { %3371 = vmatmul.msk.bf16.gmra.mxu2 %vm297_vm1, %v447_v38  ;;  %v452_v38 = vpack.c.bf16 %v445_v34, %v445_v34  ;;  %v3462_v47 = vld [vmem:[%s3860_s18 + $0x171] sm:$0xff]  ;;  %v3400_v52 = vld [vmem:[%s3860_s18 + $0x100] sm:$0xff]  ;;  %v3401_v53 = vld [vmem:[%s3860_s18 + $0x108] sm:$0xff] }
  0x27   : > { %3392 = vmatmul.msk.bf16.gmra.mxu3 %vm297_vm1, %v549_v39  ;;  %v554_v39 = vpack.c.bf16 %v3389_v35, %v3389_v35  ;;  %v3421_v54 = vld [vmem:[%s3860_s18 + $0x178] sm:$0xff]  ;;  %v3422_v55 = vld [vmem:[%s3860_s18 + $0x180] sm:$0xff]  ;;  %v3443_v57 = vld [vmem:[%s3860_s18 + $0x109] sm:$0xff] }
  0x28   : > { %v3442_v56 = vld [vmem:[%s3860_s18 + $0x101] sm:$0xff]  ;;  %v3463_v58 = vld [vmem:[%s3860_s18 + $0x179] sm:$0xff]  ;;  %v3424_v13 = vld [vmem:[%s3860_s18 + $0x190] sm:$0xff] }
  0x29   : > { %v3464_v59 = vld [vmem:[%s3860_s18 + $0x181] sm:$0xff]  ;;  %v3444_v14 = vld [vmem:[%s3860_s18 + $0x111] sm:$0xff]  ;;  %v3445_v15 = vld [vmem:[%s3860_s18 + $0x119] sm:$0xff] }
  0x2a   : > { %v959_v1 = vpack.c.bf16 %v3464_v59, %v3463_v58  ;;  %v3423_v12 = vld [vmem:[%s3860_s18 + $0x188] sm:$0xff]  ;;  %v3466_v17 = vld [vmem:[%s3860_s18 + $0x191] sm:$0xff]  ;;  %v858_v24 = vpack.c.bf16 %v3445_v15, %v3444_v14 }
  0x2b   : > { %v3465_v16 = vld [vmem:[%s3860_s18 + $0x189] sm:$0xff] }
  0x2c   : > { %v960_v26 = vpack.c.bf16 %v3466_v17, %v3465_v16 }
  0x34   : > { %3357 = vmatmul.msk.bf16.gmra.mxu0 %vm297_vm1, %v290_v48  ;;  %v651_v48 = vpack.c.bf16 %v3399_v41, %v3398_v40  ;;  %v3446_v40 = vld [vmem:[%s3860_s18 + $0x121] sm:$0xff]  ;;  %v3447_v41 = vld [vmem:[%s3860_s18 + $0x129] sm:$0xff] }
  0x35   : > { %3364 = vmatmul.msk.bf16.gmra.mxu1 %vm297_vm1, %v268_v49  ;;  %v754_v49 = vpack.c.bf16 %v3420_v43, %v3419_v42  ;;  %v3467_v42 = vld [vmem:[%s3860_s18 + $0x199] sm:$0xff]  ;;  %v3468_v43 = vld [vmem:[%s3860_s18 + $0x1a1] sm:$0xff] }
  0x36   : > { %3372 = vmatmul.msk.bf16.gmra.mxu2 %vm297_vm1, %v448_v50  ;;  %v856_v50 = vpack.c.bf16 %v3441_v45, %v3440_v44 }
  0x37   : > { %3393 = vmatmul.msk.bf16.gmra.mxu3 %vm297_vm1, %v550_v51  ;;  %v958_v51 = vpack.c.bf16 %v3462_v47, %v3461_v46 }
  0x44   : > { %3358 = vmatmul.msk.bf16.gmra.mxu0 %vm297_vm1, %v291_v60  ;;  %v652_v60 = vpack.c.bf16 %v3401_v53, %v3400_v52  ;;  %v961_v52 = vpack.c.bf16 %v3468_v43, %v3467_v42 }
  0x45   : > { %3365 = vmatmul.msk.bf16.gmra.mxu1 %vm297_vm1, %v269_v61 }
  0x46   : > { %3373 = vmatmul.msk.bf16.gmra.mxu2 %vm297_vm1, %v449_v62  ;;  %v755_v62 = vpack.c.bf16 %v3422_v55, %v3421_v54 }
  0x47   : > { %3394 = vmatmul.msk.bf16.gmra.mxu3 %vm297_vm1, %v551_v63  ;;  %v857_v63 = vpack.c.bf16 %v3443_v57, %v3442_v56 }
  0x54   : > { %3359 = vmatmul.msk.bf16.gmra.mxu0 %vm297_vm1, %v292_v8 }
  0x55   : > { %3366 = vmatmul.msk.bf16.gmra.mxu1 %vm297_vm1, %v270_v9 }
  0x56   : > { %3374 = vmatmul.msk.bf16.gmra.mxu2 %vm297_vm1, %v450_v10  ;;  %v3402_v10 = vld [vmem:[%s3860_s18 + $0x110] sm:$0xff] }
  0x57   : > { %3395 = vmatmul.msk.bf16.gmra.mxu3 %vm297_vm1, %v552_v11  ;;  %v3403_v11 = vld [vmem:[%s3860_s18 + $0x118] sm:$0xff] }
  0x58   : > { %v653_v19 = vpack.c.bf16 %v3403_v11, %v3402_v10 }
  0x64   : > { %3360 = vmatmul.msk.bf16.gmra.mxu0 %vm297_vm1, %v293_v20 }
  0x65   : > { %3367 = vmatmul.msk.bf16.gmra.mxu1 %vm297_vm1, %v271_v21 }
  0x66   : > { %3375 = vmatmul.msk.bf16.gmra.mxu2 %vm297_vm1, %v451_v22 }
  0x67   : > { %3396 = vmatmul.msk.bf16.gmra.mxu3 %vm297_vm1, %v553_v23  ;;  %v756_v23 = vpack.c.bf16 %v3424_v13, %v3423_v12 }
  0x74   : > { %3361 = vmatmul.msk.bf16.gmra.mxu0 %vm297_vm1, %v294_v36  ;;  %v3404_v36 = vld [vmem:[%s3860_s18 + $0x120] sm:$0xff] }
  0x75   : > { %3368 = vmatmul.msk.bf16.gmra.mxu1 %vm297_vm1, %v272_v37  ;;  %v3405_v37 = vld [vmem:[%s3860_s18 + $0x128] sm:$0xff] }
  0x76   : > { %3376 = vmatmul.msk.bf16.gmra.mxu2 %vm297_vm1, %v452_v38  ;;  %v3425_v38 = vld [vmem:[%s3860_s18 + $0x198] sm:$0xff]  ;;  %v654_v45 = vpack.c.bf16 %v3405_v37, %v3404_v36 }
  0x77   : > { %3397 = vmatmul.msk.bf16.gmra.mxu3 %vm297_vm1, %v554_v39  ;;  %v3426_v39 = vld [vmem:[%s3860_s18 + $0x1a0] sm:$0xff] }
  0x84   : > { %3412 = vmatmul.msk.bf16.vlgmr.msrb.gmra.mxu0 %vm297_vm1, %v651_v48 }
  0x85   : > { %3433 = vmatmul.msk.bf16.vlgmr.msrb.gmra.mxu1 %vm297_vm1, %v754_v49  ;;  %v757_v49 = vpack.c.bf16 %v3426_v39, %v3425_v38 }
  0x86   : > { %3454 = vmatmul.msk.bf16.vlgmr.msrb.gmra.mxu2 %vm297_vm1, %v856_v50  ;;  %v859_v50 = vpack.c.bf16 %v3447_v41, %v3446_v40 }
  0x87   : > { %3475 = vmatmul.msk.bf16.vlgmr.msrb.gmra.mxu3 %vm297_vm1, %v958_v51 }
  0x91   : > { %v332_v61 = vpop.f32.mrf.mxu0 }
  0x92   : > { %v399_v0 = vpop.f32.mrf.mxu1 }
  0x93   : > { %v400_v2 = vadd.f32 %v399_v0, %v332_v61  ;;  %v3427_v0 = vld [vmem:[%s3860_s18 + $0x1a8] sm:$0xff] }
  0x94   : > { %3413 = vmatmul.msk.bf16.gmra.mxu0 %vm297_vm1, %v652_v60 }
  0x95   : > { %3434 = vmatmul.msk.bf16.gmra.mxu1 %vm297_vm1, %v755_v62  ;;  %v3406_v62 = vld [vmem:[%s3860_s18 + $0x130] sm:$0xff] }
  0x96   : > { %3455 = vmatmul.msk.bf16.gmra.mxu2 %vm297_vm1, %v857_v63  ;;  %v3407_v63 = vld [vmem:[%s3860_s18 + $0x138] sm:$0xff] }
  0x97   : > { %3476 = vmatmul.msk.bf16.gmra.mxu3 %vm297_vm1, %v959_v1  ;;  %v3428_v1 = vld [vmem:[%s3860_s18 + $0x1b0] sm:$0xff] }
  0x98   : > { %v758_v12 = vpack.c.bf16 %v3428_v1, %v3427_v0  ;;  %v3431_v0 = vld [vmem:[%s3860_s18 + $0x1c8] sm:$0xff]  ;;  %v3452_v1 = vld [vmem:[%s3860_s18 + $0x151] sm:$0xff] }
  0x99   : > { %v488_v3 = vpop.f32.mrf.mxu2  ;;  %v334_v6 = vpop.f32.mrf.mxu0 }
  0x9a   : > { %v522_v4 = vadd.f32 %v488_v3, %v400_v2  ;;  %v590_v5 = vpop.f32.mrf.mxu3  ;;  %v401_v7 = vpop.f32.mrf.mxu1  ;;  %v3448_v2 = vld [vmem:[%s3860_s18 + $0x131] sm:$0xff]  ;;  %v3449_v3 = vld [vmem:[%s3860_s18 + $0x139] sm:$0xff] }
  0x9b   : > { %v402_v9 = vadd.f32 %v401_v7, %v334_v6  ;;  %v655_v7 = vpack.c.bf16 %v3407_v63, %v3406_v62  ;;  %v860_v13 = vpack.c.bf16 %v3449_v3, %v3448_v2  ;;  %v3410_v63 = vld [vmem:[%s3860_s18 + $0x150] sm:$0xff] }
  0x9c   : > { %v3982_v8 = vadd.f32 %v590_v5, %v522_v4  ;;  %v3469_v4 = vld [vmem:[%s3860_s18 + $0x1a9] sm:$0xff]  ;;  %v3470_v5 = vld [vmem:[%s3860_s18 + $0x1b1] sm:$0xff] }
  0x9d   : > { %v962_v15 = vpack.c.bf16 %v3470_v5, %v3469_v4  ;;  %v3473_v2 = vld [vmem:[%s3860_s18 + $0x1c9] sm:$0xff]  ;;  %v657_v4 = vpack.c.bf16 %v3410_v63, %v3410_v63 }
  0xa1   : > { %v490_v18 = vpop.f32.mrf.mxu2  ;;  %v337_v22 = vpop.f32.mrf.mxu0 }
  0xa2   : > { %v523_v20 = vadd.f32 %v490_v18, %v402_v9  ;;  %v592_v21 = vpop.f32.mrf.mxu3  ;;  %v404_v25 = vpop.f32.mrf.mxu1 }
  0xa3   : > { %v405_v28 = vadd.f32 %v404_v25, %v337_v22  ;;  %v3408_v25 = vld [vmem:[%s3860_s18 + $0x140] sm:$0xff] }
  0xa4   : > { %v3992_v27 = vadd.f32 %v592_v21, %v523_v20  ;;  %3414 = vmatmul.msk.bf16.gmra.mxu0 %vm297_vm1, %v653_v19 }
  0xa5   : > { %3435 = vmatmul.msk.bf16.gmra.mxu1 %vm297_vm1, %v756_v23 }
  0xa6   : > { %3456 = vmatmul.msk.bf16.gmra.mxu2 %vm297_vm1, %v858_v24 }
  0xa7   : > { %3477 = vmatmul.msk.bf16.gmra.mxu3 %vm297_vm1, %v960_v26  ;;  %v3409_v26 = vld [vmem:[%s3860_s18 + $0x148] sm:$0xff] }
  0xa8   : > { %v656_v36 = vpack.c.bf16 %v3409_v26, %v3408_v25  ;;  %v1048_v25 = vld [vmem:[%s3860_s18 + $0x12] sm:$0xff]  ;;  %v3490_v26 = vld [vmem:[%s3860_s18 + $0x82] sm:$0xff] }
  0xa9   : > { %v493_v29 = vpop.f32.mrf.mxu2  ;;  %v339_v32 = vpop.f32.mrf.mxu0 }
  0xaa   : > { %v524_v30 = vadd.f32 %v493_v29, %v405_v28  ;;  %v595_v31 = vpop.f32.mrf.mxu3  ;;  %v406_v33 = vpop.f32.mrf.mxu1  ;;  %v3429_v28 = vld [vmem:[%s3860_s18 + $0x1b8] sm:$0xff]  ;;  %v3430_v29 = vld [vmem:[%s3860_s18 + $0x1c0] sm:$0xff] }
  0xab   : > { %v407_v35 = vadd.f32 %v406_v33, %v339_v32  ;;  %v3471_v32 = vld [vmem:[%s3860_s18 + $0x1b9] sm:$0xff]  ;;  %v3472_v33 = vld [vmem:[%s3860_s18 + $0x1c1] sm:$0xff]  ;;  %v759_v40 = vpack.c.bf16 %v3430_v29, %v3429_v28  ;;  %v3491_v28 = vld [vmem:[%s3860_s18 + $0x8a] sm:$0xff] }
  0xac   : > { %v3998_v34 = vadd.f32 %v595_v31, %v524_v30  ;;  %v3450_v30 = vld [vmem:[%s3860_s18 + $0x141] sm:$0xff]  ;;  %v3451_v31 = vld [vmem:[%s3860_s18 + $0x149] sm:$0xff]  ;;  %v963_v43 = vpack.c.bf16 %v3472_v33, %v3471_v32 }
  0xad   : > { %v861_v41 = vpack.c.bf16 %v3451_v31, %v3450_v30  ;;  %v1251_v29 = vld [vmem:[%s3860_s18 + $0xb] sm:$0xff]  ;;  %v1252_v30 = vld [vmem:[%s3860_s18 + $0x13] sm:$0xff]  ;;  %v3519_v31 = vld [vmem:[%s3860_s18 + $0x83] sm:$0xff] }
  0xae   : > { %v3520_v32 = vld [vmem:[%s3860_s18 + $0x8b] sm:$0xff] }
  0xb1   : > { %v495_v44 = vpop.f32.mrf.mxu2  ;;  %v342_v48 = vpop.f32.mrf.mxu0 }
  0xb2   : > { %v525_v46 = vadd.f32 %v495_v44, %v407_v35  ;;  %v597_v47 = vpop.f32.mrf.mxu3  ;;  %v409_v51 = vpop.f32.mrf.mxu1 }
  0xb3   : > { %v410_v54 = vadd.f32 %v409_v51, %v342_v48  ;;  %v3616_v48 = vld [vmem:[%s4924_s1 + $0x3c] sm:$0xf] }
  0xb4   : > { %v4008_v53 = vadd.f32 %v597_v47, %v525_v46  ;;  %3415 = vmatmul.msk.bf16.gmra.mxu0 %vm297_vm1, %v654_v45  ;;  %v3595_v46 = vld [vmem:[%s4924_s1 + $0x38] sm:$0xf]  ;;  %v3553_v47 = vld [vmem:[%s4924_s1 + $0x30] sm:$0xf]  ;;  %v1805_v51 = vsel %vm319_vm0, %v3616_v48, 0 }
  0xb5   : > { %3436 = vmatmul.msk.bf16.gmra.mxu1 %vm297_vm1, %v757_v49  ;;  %v1703_v49 = vsel %vm319_vm0, %v3595_v46, 0  ;;  %1814 = vmatpush.bf16.msrb.mxu3 %v1805_v51 }
  0xb6   : > { %3457 = vmatmul.msk.bf16.gmra.mxu2 %vm297_vm1, %v859_v50  ;;  %v1499_v50 = vsel %vm319_vm0, %v3553_v47, 0 }
  0xb7   : > { %3478 = vmatmul.msk.bf16.gmra.mxu3 %vm297_vm1, %v961_v52  ;;  %1712 = vmatpush.bf16.msrb.mxu2 %v1703_v49 }
  0xb8   : > { %1508 = vmatpush.bf16.msrb.mxu0 %v1499_v50 }
  0xb9   : > { %v498_v55 = vpop.f32.mrf.mxu2  ;;  %v344_v58 = vpop.f32.mrf.mxu0 }
  0xba   : > { %v526_v56 = vadd.f32 %v498_v55, %v410_v54  ;;  %v600_v57 = vpop.f32.mrf.mxu3  ;;  %v411_v59 = vpop.f32.mrf.mxu1 }
  0xbb   : > { %v412_v61 = vadd.f32 %v411_v59, %v344_v58 }
  0xbc   : > { %v4014_v60 = vadd.f32 %v600_v57, %v526_v56 }
  0xc1   : > { %v500_v6 = vpop.f32.mrf.mxu2  ;;  %v347_v11 = vpop.f32.mrf.mxu0 }
  0xc2   : > { %v527_v9 = vadd.f32 %v500_v6, %v412_v61  ;;  %v602_v10 = vpop.f32.mrf.mxu3  ;;  %v414_v14 = vpop.f32.mrf.mxu1  ;;  %v3574_v61 = vld [vmem:[%s4924_s1 + $0x34] sm:$0xf] }
  0xc3   : > { %v415_v17 = vadd.f32 %v414_v14, %v347_v11  ;;  %v1601_v62 = vsel %vm319_vm0, %v3574_v61, 0  ;;  %v3521_v61 = vld [vmem:[%s3860_s18 + $0x93] sm:$0xff] }
  0xc4   : > { %v4024_v16 = vadd.f32 %v602_v10, %v527_v9  ;;  %3416 = vmatmul.msk.bf16.gmra.mxu0 %vm297_vm1, %v655_v7  ;;  %1610 = vmatpush.bf16.msrb.mxu1 %v1601_v62  ;;  %v760_v9 = vpack.c.bf16 %v3431_v0, %v3431_v0  ;;  %v862_v10 = vpack.c.bf16 %v3452_v1, %v3452_v1  ;;  %v3522_v62 = vld [vmem:[%s3860_s18 + $0x9b] sm:$0xff] }
  0xc5   : > { %3437 = vmatmul.msk.bf16.gmra.mxu1 %vm297_vm1, %v758_v12  ;;  %v964_v12 = vpack.c.bf16 %v3473_v2, %v3473_v2 }
  0xc6   : > { %3458 = vmatmul.msk.bf16.gmra.mxu2 %vm297_vm1, %v860_v13 }
  0xc7   : > { %3479 = vmatmul.msk.bf16.gmra.mxu3 %vm297_vm1, %v962_v15 }
  0xc9   : > { %v503_v18 = vpop.f32.mrf.mxu2  ;;  %v349_v21 = vpop.f32.mrf.mxu0 }
  0xca   : > { %v528_v19 = vadd.f32 %v503_v18, %v415_v17  ;;  %v605_v20 = vpop.f32.mrf.mxu3  ;;  %v416_v22 = vpop.f32.mrf.mxu1 }
  0xcb   : > { %v417_v24 = vadd.f32 %v416_v22, %v349_v21 }
  0xcc   : > { %v4030_v23 = vadd.f32 %v605_v20, %v528_v19 }
  0xd1   : > { %v505_v35 = vpop.f32.mrf.mxu2  ;;  %v352_v39 = vpop.f32.mrf.mxu0 }
  0xd2   : > { %v529_v37 = vadd.f32 %v505_v35, %v417_v24  ;;  %v607_v38 = vpop.f32.mrf.mxu3  ;;  %v419_v42 = vpop.f32.mrf.mxu1  ;;  %v1047_v24 = vld [vmem:[%s3860_s18 + $0xa] sm:$0xff] }
  0xd3   : > { %v420_v45 = vadd.f32 %v419_v42, %v352_v39  ;;  %v1060_v35 = vpack.c.bf16 %v1048_v25, %v1047_v24  ;;  %v1162_v39 = vpack.c.bf16 %v3491_v28, %v3490_v26  ;;  %v1366_v42 = vpack.c.bf16 %v3520_v32, %v3519_v31  ;;  %v3495_v24 = vld [vmem:[%s3860_s18 + $0xaa] sm:$0xff]  ;;  %v1256_v26 = vld [vmem:[%s3860_s18 + $0x33] sm:$0xff] }
  0xd4   : > { %v4040_v44 = vadd.f32 %v607_v38, %v529_v37  ;;  %3417 = vmatmul.msk.bf16.gmra.mxu0 %vm297_vm1, %v656_v36  ;;  %v1255_v25 = vld [vmem:[%s3860_s18 + $0x2b] sm:$0xff]  ;;  %v3523_v28 = vld [vmem:[%s3860_s18 + $0xa3] sm:$0xff] }
  0xd5   : > { %3438 = vmatmul.msk.bf16.gmra.mxu1 %vm297_vm1, %v759_v40  ;;  %v1264_v40 = vpack.c.bf16 %v1252_v30, %v1251_v29  ;;  %v3524_v29 = vld [vmem:[%s3860_s18 + $0xab] sm:$0xff] }
  0xd6   : > { %3459 = vmatmul.msk.bf16.gmra.mxu2 %vm297_vm1, %v861_v41 }
  0xd7   : > { %3480 = vmatmul.msk.bf16.gmra.mxu3 %vm297_vm1, %v963_v43 }
  0xd9   : > { %v508_v52 = vpop.f32.mrf.mxu2  ;;  %v354_v56 = vpop.f32.mrf.mxu0 }
  0xda   : > { %v530_v54 = vadd.f32 %v508_v52, %v420_v45  ;;  %v610_v55 = vpop.f32.mrf.mxu3  ;;  %v421_v57 = vpop.f32.mrf.mxu1  ;;  %v1049_v52 = vld [vmem:[%s3860_s18 + $0x1a] sm:$0xff] }
  0xdb   : > { %v422_v59 = vadd.f32 %v421_v57, %v354_v56  ;;  %v3493_v56 = vld [vmem:[%s3860_s18 + $0x9a] sm:$0xff] }
  0xdc   : > { %v4058_v58 = vadd.f32 %v610_v55, %v530_v54  ;;  %v1050_v54 = vld [vmem:[%s3860_s18 + $0x22] sm:$0xff]  ;;  %v3492_v55 = vld [vmem:[%s3860_s18 + $0x92] sm:$0xff] }
  0xdd   : > { %v1253_v57 = vld [vmem:[%s3860_s18 + $0x1b] sm:$0xff]  ;;  %v1061_v0 = vpack.c.bf16 %v1050_v54, %v1049_v52 }
  0xde   : > { %v1053_v52 = vld [vmem:[%s3860_s18 + $0x3a] sm:$0xff]  ;;  %v1054_v54 = vld [vmem:[%s3860_s18 + $0x42] sm:$0xff] }
  0xe1   : > { %v510_v3 = vpop.f32.mrf.mxu2  ;;  %v357_v7 = vpop.f32.mrf.mxu0 }
  0xe2   : > { %v531_v5 = vadd.f32 %v510_v3, %v422_v59  ;;  %v612_v6 = vpop.f32.mrf.mxu3  ;;  %v424_v11 = vpop.f32.mrf.mxu1  ;;  %v1254_v59 = vld [vmem:[%s3860_s18 + $0x23] sm:$0xff]  ;;  %v1163_v3 = vpack.c.bf16 %v3493_v56, %v3492_v55  ;;  %v3496_v55 = vld [vmem:[%s3860_s18 + $0xb2] sm:$0xff]  ;;  %v3497_v56 = vld [vmem:[%s3860_s18 + $0xba] sm:$0xff] }
  0xe3   : > { %v425_v14 = vadd.f32 %v424_v11, %v357_v7  ;;  %v1367_v7 = vpack.c.bf16 %v3522_v62, %v3521_v61  ;;  %v3525_v61 = vld [vmem:[%s3860_s18 + $0xb3] sm:$0xff]  ;;  %v3526_v62 = vld [vmem:[%s3860_s18 + $0xbb] sm:$0xff] }
  0xe4   : > { %v4068_v13 = vadd.f32 %v612_v6, %v531_v5  ;;  %3418 = vmatmul.msk.bf16.gmra.mxu0 %vm297_vm1, %v657_v4  ;;  %v1265_v4 = vpack.c.bf16 %v1254_v59, %v1253_v57  ;;  %v1257_v57 = vld [vmem:[%s3860_s18 + $0x3b] sm:$0xff]  ;;  %v1258_v59 = vld [vmem:[%s3860_s18 + $0x43] sm:$0xff] }
  0xe5   : > { %3439 = vmatmul.msk.bf16.gmra.mxu1 %vm297_vm1, %v760_v9 }
  0xe6   : > { %3460 = vmatmul.msk.bf16.gmra.mxu2 %vm297_vm1, %v862_v10 }
  0xe7   : > { %3481 = vmatmul.msk.bf16.gmra.mxu3 %vm297_vm1, %v964_v12 }
  0xe9   : > { %v513_v15 = vpop.f32.mrf.mxu2  ;;  %v359_v19 = vpop.f32.mrf.mxu0 }
  0xea   : > { %v532_v17 = vadd.f32 %v513_v15, %v425_v14  ;;  %v615_v18 = vpop.f32.mrf.mxu3  ;;  %v426_v20 = vpop.f32.mrf.mxu1 }
  0xeb   : > { %v427_v22 = vadd.f32 %v426_v20, %v359_v19  ;;  %v1051_v19 = vld [vmem:[%s3860_s18 + $0x2a] sm:$0xff]  ;;  %v1052_v20 = vld [vmem:[%s3860_s18 + $0x32] sm:$0xff] }
  0xec   : > { %v4074_v21 = vadd.f32 %v615_v18, %v532_v17  ;;  %v1062_v31 = vpack.c.bf16 %v1052_v20, %v1051_v19  ;;  %v1055_v20 = vld [vmem:[%s3860_s18 + $0x4a] sm:$0xff] }
  0xf1   : > { %v515_v33 = vpop.f32.mrf.mxu2  ;;  %v362_v38 = vpop.f32.mrf.mxu0 }
  0xf2   : > { %v533_v36 = vadd.f32 %v515_v33, %v427_v22  ;;  %v617_v37 = vpop.f32.mrf.mxu3  ;;  %v429_v41 = vpop.f32.mrf.mxu1  ;;  %v3494_v22 = vld [vmem:[%s3860_s18 + $0xa2] sm:$0xff] }
  0xf3   : > { %v430_v45 = vadd.f32 %v429_v41, %v362_v38 }
  0xf4   : > { %v4084_v43 = vadd.f32 %v617_v37, %v533_v36  ;;  %3483 = vmatmul.msk.bf16.vlgmr.msra.gmra.mxu0 %vm297_vm1, %v1060_v35  ;;  %v1164_v36 = vpack.c.bf16 %v3495_v24, %v3494_v22  ;;  %v1266_v37 = vpack.c.bf16 %v1256_v26, %v1255_v25  ;;  %v1056_v22 = vld [vmem:[%s3860_s18 + $0x52] sm:$0xff]  ;;  %v3498_v24 = vld [vmem:[%s3860_s18 + $0xc2] sm:$0xff]  ;;  %v3499_v25 = vld [vmem:[%s3860_s18 + $0xca] sm:$0xff] }
  0xf5   : > { %3504 = vmatmul.msk.bf16.vlgmr.msra.gmra.mxu1 %vm297_vm1, %v1162_v39  ;;  %v1368_v39 = vpack.c.bf16 %v3524_v29, %v3523_v28  ;;  %v1259_v26 = vld [vmem:[%s3860_s18 + $0x4b] sm:$0xff]  ;;  %v1260_v28 = vld [vmem:[%s3860_s18 + $0x53] sm:$0xff]  ;;  %v3527_v29 = vld [vmem:[%s3860_s18 + $0xc3] sm:$0xff] }
  0xf6   : > { %3512 = vmatmul.msk.bf16.vlgmr.msra.gmra.mxu2 %vm297_vm1, %v1264_v40 }
  0xf7   : > { %3533 = vmatmul.msk.bf16.vlgmr.msra.gmra.mxu3 %vm297_vm1, %v1366_v42 }
  0xf9   : > { %v518_v46 = vpop.f32.mrf.mxu2  ;;  %v364_v49 = vpop.f32.mrf.mxu0 }
  0xfa   : > { %v534_v47 = vadd.f32 %v518_v46, %v430_v45  ;;  %v620_v48 = vpop.f32.mrf.mxu3  ;;  %v431_v50 = vpop.f32.mrf.mxu1 }
  0xfc   : > { %v4090_v51 = vadd.f32 %v620_v48, %v534_v47 }
 0x101   : > { %v520_v63 = vpop.f32.mrf.mxu2  ;;  %v693_v2 = vpop.f32.mrf.mxu0 }
 0x102   : > { %v622_v1 = vpop.f32.mrf.mxu3  ;;  %v727_v5 = vadd.f32 %v693_v2, %v3982_v8  ;;  %v796_v6 = vpop.f32.mrf.mxu1 }
 0x104   : > { %v830_v9 = vadd.f32 %v796_v6, %v727_v5  ;;  %3484 = vmatmul.msk.bf16.gmra.mxu0 %vm297_vm1, %v1061_v0  ;;  %v1063_v0 = vpack.c.bf16 %v1054_v54, %v1053_v52  ;;  %v1267_v5 = vpack.c.bf16 %v1258_v59, %v1257_v57  ;;  %v1057_v54 = vld [vmem:[%s3860_s18 + $0x5a] sm:$0xff] }
 0x105   : > { %3505 = vmatmul.msk.bf16.gmra.mxu1 %vm297_vm1, %v1163_v3  ;;  %v3501_v57 = vld [vmem:[%s3860_s18 + $0xda] sm:$0xff] }
 0x106   : > { %3513 = vmatmul.msk.bf16.gmra.mxu2 %vm297_vm1, %v1265_v4  ;;  %v1165_v4 = vpack.c.bf16 %v3497_v56, %v3496_v55  ;;  %v1058_v55 = vld [vmem:[%s3860_s18 + $0x62] sm:$0xff]  ;;  %v3500_v56 = vld [vmem:[%s3860_s18 + $0xd2] sm:$0xff] }
 0x107   : > { %3534 = vmatmul.msk.bf16.gmra.mxu3 %vm297_vm1, %v1367_v7  ;;  %v1369_v7 = vpack.c.bf16 %v3526_v62, %v3525_v61  ;;  %v1261_v59 = vld [vmem:[%s3860_s18 + $0x5b] sm:$0xff]  ;;  %v1262_v61 = vld [vmem:[%s3860_s18 + $0x63] sm:$0xff]  ;;  %v3529_v62 = vld [vmem:[%s3860_s18 + $0xd3] sm:$0xff] }
 0x109   : > { %v898_v8 = vpop.f32.mrf.mxu2  ;;  %v695_v12 = vpop.f32.mrf.mxu0 }
 0x10a   : > { %v932_v10 = vadd.f32 %v898_v8, %v830_v9  ;;  %v1000_v11 = vpop.f32.mrf.mxu3  ;;  %v728_v14 = vadd.f32 %v695_v12, %v3992_v27  ;;  %v798_v15 = vpop.f32.mrf.mxu1 }
 0x10c   : > { %v4106_v17 = vadd.f32 %v1000_v11, %v932_v10  ;;  %v831_v18 = vadd.f32 %v798_v15, %v728_v14 }
 0x111   : > { %v900_v30 = vpop.f32.mrf.mxu2  ;;  %v698_v35 = vpop.f32.mrf.mxu0 }
 0x112   : > { %v933_v32 = vadd.f32 %v900_v30, %v831_v18  ;;  %v1002_v33 = vpop.f32.mrf.mxu3  ;;  %v729_v27 = vadd.f32 %v698_v35, %v3998_v34  ;;  %v801_v38 = vpop.f32.mrf.mxu1  ;;  %v3528_v30 = vld [vmem:[%s3860_s18 + $0xcb] sm:$0xff] }
 0x114   : > { %v4117_v40 = vadd.f32 %v1002_v33, %v933_v32  ;;  %v832_v41 = vadd.f32 %v801_v38, %v729_v27  ;;  %3485 = vmatmul.msk.bf16.gmra.mxu0 %vm297_vm1, %v1062_v31  ;;  %v1064_v32 = vpack.c.bf16 %v1056_v22, %v1055_v20  ;;  %v1268_v27 = vpack.c.bf16 %v1260_v28, %v1259_v26  ;;  %v1894_v20 = vld [vmem:[%s4928_s5 + $0x8] sm:$0xff] }
 0x115   : > { %3506 = vmatmul.msk.bf16.gmra.mxu1 %vm297_vm1, %v1164_v36  ;;  %v3502_v26 = vld [vmem:[%s3860_s18 + $0xe2] sm:$0xff]  ;;  %v1263_v28 = vld [vmem:[%s3860_s18 + $0x6b] sm:$0xff] }
 0x116   : > { %3514 = vmatmul.msk.bf16.gmra.mxu2 %vm297_vm1, %v1266_v37  ;;  %v1166_v37 = vpack.c.bf16 %v3499_v25, %v3498_v24  ;;  %v3778_v24 = vmov 0   ;;  %v1059_v25 = vld [vmem:[%s3860_s18 + $0x6a] sm:$0xff] }
 0x117   : > { %3535 = vmatmul.msk.bf16.gmra.mxu3 %vm297_vm1, %v1368_v39  ;;  %v1370_v39 = vpack.c.bf16 %v3528_v30, %v3527_v29  ;;  %3762 = vset.pattern.permute.xlu0 %v3778_v24  ;;  %v3531_v29 = vld [vmem:[%s3860_s18 + $0xe3] sm:$0xff] }
 0x118   : > { %3763 = vset.pattern.permute.xlu1 %v3778_v24  ;;  %1913 = vperm.xlu0 %3762, %v1894_v20  }
 0x119   : > { %v903_v34 = vpop.f32.mrf.mxu2  ;;  %v700_v46 = vpop.f32.mrf.mxu0  ;;  %3764 = vset.pattern.permute.xlu2 %v3778_v24  ;;  %v1900_v24 = vld [vmem:[%s4928_s5 + $0x38] sm:$0xff] }
 0x11a   : > { %v934_v42 = vadd.f32 %v903_v34, %v832_v41  ;;  %v1005_v45 = vpop.f32.mrf.mxu3  ;;  %v730_v47 = vadd.f32 %v700_v46, %v4008_v53  ;;  %v803_v48 = vpop.f32.mrf.mxu1 }
 0x11c   : > { %v4124_v49 = vadd.f32 %v1005_v45, %v934_v42  ;;  %v833_v50 = vadd.f32 %v803_v48, %v730_v47 }
 0x121   : > { %v905_v63 = vpop.f32.mrf.mxu2  ;;  %v703_v3 = vpop.f32.mrf.mxu0 }
 0x122   : > { %v935_v1 = vadd.f32 %v905_v63, %v833_v50  ;;  %v1007_v2 = vpop.f32.mrf.mxu3  ;;  %v731_v53 = vadd.f32 %v703_v3, %v4014_v60  ;;  %v806_v6 = vpop.f32.mrf.mxu1  ;;  %v3530_v63 = vld [vmem:[%s3860_s18 + $0xdb] sm:$0xff] }
 0x124   : > { %v4135_v9 = vadd.f32 %v1007_v2, %v935_v1  ;;  %v834_v8 = vadd.f32 %v806_v6, %v731_v53  ;;  %3486 = vmatmul.msk.bf16.gmra.mxu0 %vm297_vm1, %v1063_v0  ;;  %v1065_v1 = vpack.c.bf16 %v1058_v55, %v1057_v54  ;;  %v1269_v53 = vpack.c.bf16 %v1262_v61, %v1261_v59  ;;  %v1899_v55 = vld [vmem:[%s4928_s5 + $0x30] sm:$0xff]  ;;  %v3541_v59 = vld [vmem:[%s3860_s18 + $0x102] sm:$0xff] }
 0x125   : > { %3507 = vmatmul.msk.bf16.gmra.mxu1 %vm297_vm1, %v1165_v4  ;;  %v3561_v61 = vld [vmem:[%s3860_s18 + $0x172] sm:$0xff] }
 0x126   : > { %3515 = vmatmul.msk.bf16.gmra.mxu2 %vm297_vm1, %v1267_v5  ;;  %v1167_v5 = vpack.c.bf16 %v3501_v57, %v3500_v56  ;;  %v1893_v56 = vld [vmem:[%s4928_s5] sm:$0xff] }
 0x127   : > { %3536 = vmatmul.msk.bf16.gmra.mxu3 %vm297_vm1, %v1369_v7  ;;  %v1371_v7 = vpack.c.bf16 %v3530_v63, %v3529_v62  ;;  %v3540_v57 = vld [vmem:[%s3860_s18 + $0xfa] sm:$0xff] }
 0x128   : > { %v3562_v62 = vld [vmem:[%s3860_s18 + $0x17a] sm:$0xff] }
 0x129   : > { %v908_v60 = vpop.f32.mrf.mxu2  ;;  %v705_v12 = vpop.f32.mrf.mxu0  ;;  %v3582_v63 = vld [vmem:[%s3860_s18 + $0xfb] sm:$0xff] }
 0x12a   : > { %v936_v10 = vadd.f32 %v908_v60, %v834_v8  ;;  %v1010_v11 = vpop.f32.mrf.mxu3  ;;  %v732_v14 = vadd.f32 %v705_v12, %v4024_v16  ;;  %v808_v15 = vpop.f32.mrf.mxu1 }
 0x12c   : > { %v4142_v18 = vadd.f32 %v1010_v11, %v936_v10  ;;  %v835_v19 = vadd.f32 %v808_v15, %v732_v14 }
 0x131   : > { %v910_v31 = vpop.f32.mrf.mxu2  ;;  %v708_v36 = vpop.f32.mrf.mxu0 }
 0x132   : > { %v937_v33 = vadd.f32 %v910_v31, %v835_v19  ;;  %v1012_v35 = vpop.f32.mrf.mxu3  ;;  %v733_v16 = vadd.f32 %v708_v36, %v4030_v23  ;;  %v811_v38 = vpop.f32.mrf.mxu1  ;;  %v1066_v31 = vpack.c.bf16 %v1059_v25, %v1059_v25  ;;  %v1270_v36 = vpack.c.bf16 %v1263_v28, %v1263_v28  ;;  %v3542_v28 = vld [vmem:[%s3860_s18 + $0x10a] sm:$0xff] }
 0x134   : > { %v4153_v41 = vadd.f32 %v1012_v35, %v937_v33  ;;  %v836_v34 = vadd.f32 %v811_v38, %v733_v16  ;;  %3487 = vmatmul.msk.bf16.gmra.mxu0 %vm297_vm1, %v1064_v32  ;;  %v1168_v35 = vpack.c.bf16 %v3502_v26, %v3502_v26  ;;  %v1372_v16 = vpack.c.bf16 %v3531_v29, %v3531_v29  ;;  %v1905_v26 = vld [vmem:[%s4928_s5 + $0x60] sm:$0xff]  ;;  %v3543_v29 = vld [vmem:[%s3860_s18 + $0x112] sm:$0xff] }
 0x135   : > { %3508 = vmatmul.msk.bf16.gmra.mxu1 %vm297_vm1, %v1166_v37 }
 0x136   : > { %3516 = vmatmul.msk.bf16.gmra.mxu2 %vm297_vm1, %v1268_v27 }
 0x137   : > { %3537 = vmatmul.msk.bf16.gmra.mxu3 %vm297_vm1, %v1370_v39 }
 0x139   : > { %v913_v23 = vpop.f32.mrf.mxu2  ;;  %v710_v46 = vpop.f32.mrf.mxu0 }
 0x13a   : > { %v938_v42 = vadd.f32 %v913_v23, %v836_v34  ;;  %v1015_v45 = vpop.f32.mrf.mxu3  ;;  %v734_v47 = vadd.f32 %v710_v46, %v4040_v44  ;;  %v813_v48 = vpop.f32.mrf.mxu1  ;;  %v1896_v34 = vld [vmem:[%s4928_s5 + $0x18] sm:$0xff] }
 0x13b   : > { %1923 = vperm.xlu1 %3763, %v1896_v34  }
 0x13c   : > { %v4160_v50 = vadd.f32 %v1015_v45, %v938_v42  ;;  %v837_v52 = vadd.f32 %v813_v48, %v734_v47 }
 0x141   : > { %v915_v0 = vpop.f32.mrf.mxu2  ;;  %v713_v4 = vpop.f32.mrf.mxu0 }
 0x142   : > { %v939_v2 = vadd.f32 %v915_v0, %v837_v52  ;;  %v1017_v3 = vpop.f32.mrf.mxu3  ;;  %v735_v44 = vadd.f32 %v713_v4, %v4058_v58  ;;  %v816_v6 = vpop.f32.mrf.mxu1  ;;  %v3583_v0 = vld [vmem:[%s3860_s18 + $0x103] sm:$0xff] }
 0x143   : > { %1908 = vperm.xlu1 %3763, %v1893_v56  }
 0x144   : > { %v4171_v8 = vadd.f32 %v1017_v3, %v939_v2  ;;  %v838_v60 = vadd.f32 %v816_v6, %v735_v44  ;;  %3488 = vmatmul.msk.bf16.gmra.mxu0 %vm297_vm1, %v1065_v1  ;;  %v3603_v1 = vld [vmem:[%s3860_s18 + $0x173] sm:$0xff]  ;;  %v1468_v3 = vpack.c.bf16 %v3541_v59, %v3540_v57  ;;  %v1570_v44 = vpack.c.bf16 %v3562_v62, %v3561_v61  ;;  %v1897_v61 = vld [vmem:[%s4928_s5 + $0x20] sm:$0xff] }
 0x145   : > { %3509 = vmatmul.msk.bf16.gmra.mxu1 %vm297_vm1, %v1167_v5  ;;  %v1672_v6 = vpack.c.bf16 %v3583_v0, %v3582_v63  ;;  %v3544_v62 = vld [vmem:[%s3860_s18 + $0x11a] sm:$0xff]  ;;  %v3545_v63 = vld [vmem:[%s3860_s18 + $0x122] sm:$0xff]  ;;  %v3565_v0 = vld [vmem:[%s3860_s18 + $0x192] sm:$0xff]  ;;  %1928 = vperm.xlu2 %3764, %v1897_v61  }
 0x146   : > { %3517 = vmatmul.msk.bf16.gmra.mxu2 %vm297_vm1, %v1269_v53 }
 0x147   : > { %3538 = vmatmul.msk.bf16.gmra.mxu3 %vm297_vm1, %v1371_v7 }
 0x149   : > { %v918_v10 = vpop.f32.mrf.mxu2  ;;  %v715_v12 = vpop.f32.mrf.mxu0 }
 0x14a   : > { %v940_v11 = vadd.f32 %v918_v10, %v838_v60  ;;  %v1020_v58 = vpop.f32.mrf.mxu3  ;;  %v736_v14 = vadd.f32 %v715_v12, %v4068_v13  ;;  %v818_v15 = vpop.f32.mrf.mxu1 }
 0x14b   : > { %1943 = vperm.xlu1 %3763, %v1900_v24  }
 0x14c   : > { %v4178_v19 = vadd.f32 %v1020_v58, %v940_v11  ;;  %v839_v22 = vadd.f32 %v818_v15, %v736_v14 }
 0x151   : > { %v920_v30 = vpop.f32.mrf.mxu2  ;;  %v718_v33 = vpop.f32.mrf.mxu0 }
 0x152   : > { %v941_v13 = vadd.f32 %v920_v30, %v839_v22  ;;  %v1022_v32 = vpop.f32.mrf.mxu3  ;;  %v737_v37 = vadd.f32 %v718_v33, %v4074_v21  ;;  %v821_v27 = vpop.f32.mrf.mxu1  ;;  %v1895_v21 = vld [vmem:[%s4928_s5 + $0x10] sm:$0xff]  ;;  %v3563_v30 = vld [vmem:[%s3860_s18 + $0x182] sm:$0xff] }
 0x153   : > { %1918 = vperm.xlu0 %3762, %v1895_v21   ;;  %v3605_v33 = vld [vmem:[%s3860_s18 + $0x183] sm:$0xff] }
 0x154   : > { %v4188_v38 = vadd.f32 %v1022_v32, %v941_v13  ;;  %v840_v39 = vadd.f32 %v821_v27, %v737_v37  ;;  %3489 = vmatmul.msk.bf16.gmra.mxu0 %vm297_vm1, %v1066_v31  ;;  %v3564_v31 = vld [vmem:[%s3860_s18 + $0x18a] sm:$0xff]  ;;  %v3585_v32 = vld [vmem:[%s3860_s18 + $0x113] sm:$0xff]  ;;  %v1469_v37 = vpack.c.bf16 %v3543_v29, %v3542_v28 }
 0x155   : > { %3510 = vmatmul.msk.bf16.gmra.mxu1 %vm297_vm1, %v1168_v35  ;;  %v3584_v13 = vld [vmem:[%s3860_s18 + $0x10b] sm:$0xff] }
 0x156   : > { %3518 = vmatmul.msk.bf16.gmra.mxu2 %vm297_vm1, %v1270_v36  ;;  %v3606_v35 = vld [vmem:[%s3860_s18 + $0x18b] sm:$0xff]  ;;  %v1673_v34 = vpack.c.bf16 %v3585_v32, %v3584_v13 }
 0x157   : > { %3539 = vmatmul.msk.bf16.gmra.mxu3 %vm297_vm1, %v1372_v16 }
 0x159   : > { %v923_v23 = vpop.f32.mrf.mxu2  ;;  %v720_v46 = vpop.f32.mrf.mxu0 }
 0x15a   : > { %v942_v42 = vadd.f32 %v923_v23, %v840_v39  ;;  %v1025_v45 = vpop.f32.mrf.mxu3  ;;  %v738_v47 = vadd.f32 %v720_v46, %v4084_v43  ;;  %v823_v48 = vpop.f32.mrf.mxu1  ;;  %v3604_v43 = vld [vmem:[%s3860_s18 + $0x17b] sm:$0xff]  ;;  %v1571_v39 = vpack.c.bf16 %v3564_v31, %v3563_v30 }
 0x15b   : > { %1938 = vperm.xlu0 %3762, %v1899_v55   ;;  %v1774_v10 = vpack.c.bf16 %v3604_v43, %v3603_v1  ;;  %v3566_v1 = vld [vmem:[%s3860_s18 + $0x19a] sm:$0xff] }
 0x15c   : > { %v4201_v52 = vadd.f32 %v1025_v45, %v942_v42  ;;  %v841_v54 = vadd.f32 %v823_v48, %v738_v47  ;;  %v1775_v42 = vpack.c.bf16 %v3606_v35, %v3605_v33  ;;  %v1903_v45 = vld [vmem:[%s4928_s5 + $0x50] sm:$0xff]  ;;  %v3586_v43 = vld [vmem:[%s3860_s18 + $0x11b] sm:$0xff]  ;;  %v3624_v33 = vld [vmem:[%s4925_s2 + $0x4] sm:$0xf] }
 0x15d   : > { %1958 = vperm.xlu1 %3763, %v1903_v45   ;;  %v2012_v35 = vld [vmem:[%s4925_s2] sm:$0xf] }
 0x15e   : > { %v3609_v45 = vld [vmem:[%s3860_s18 + $0x1a3] sm:$0xff] }
 0x161   : > { %v925_v2 = vpop.f32.mrf.mxu2  ;;  %v723_v53 = vpop.f32.mrf.mxu0 }
 0x162   : > { %v943_v4 = vadd.f32 %v925_v2, %v841_v54  ;;  %v1027_v5 = vpop.f32.mrf.mxu3  ;;  %v739_v7 = vadd.f32 %v723_v53, %v4090_v51  ;;  %v826_v60 = vpop.f32.mrf.mxu1  ;;  %v1902_v51 = vld [vmem:[%s4928_s5 + $0x48] sm:$0xff]  ;;  %v1470_v53 = vpack.c.bf16 %v3545_v63, %v3544_v62 }
 0x163   : > { %1953 = vperm.xlu0 %3762, %v1902_v51   ;;  %v3587_v2 = vld [vmem:[%s3860_s18 + $0x123] sm:$0xff] }
 0x164   : > { %v4218_v11 = vadd.f32 %v1027_v5, %v943_v4  ;;  %v842_v58 = vadd.f32 %v826_v60, %v739_v7  ;;  %3554 = vmatmul.msk.bf16.vlgmr.msrb.gmra.mxu0 %vm297_vm1, %v1468_v3  ;;  %v3607_v3 = vld [vmem:[%s3860_s18 + $0x193] sm:$0xff]  ;;  %v3608_v4 = vld [vmem:[%s3860_s18 + $0x19b] sm:$0xff]  ;;  %v1572_v7 = vpack.c.bf16 %v3566_v1, %v3565_v0  ;;  %v1674_v60 = vpack.c.bf16 %v3587_v2, %v3586_v43 }
 0x165   : > { %3575 = vmatmul.msk.bf16.vlgmr.msrb.gmra.mxu1 %vm297_vm1, %v1570_v44  ;;  %v1776_v51 = vpack.c.bf16 %v3608_v4, %v3607_v3 }
 0x166   : > { %3596 = vmatmul.msk.bf16.vlgmr.msrb.gmra.mxu2 %vm297_vm1, %v1672_v6 }
 0x167   : > { %3617 = vmatmul.msk.bf16.vlgmr.msrb.gmra.mxu3 %vm297_vm1, %v1774_v10 }
 0x169   : > { %v928_v12 = vpop.f32.mrf.mxu2  ;;  %v725_v20 = vpop.f32.mrf.mxu0 }
 0x16a   : > { %v944_v14 = vadd.f32 %v928_v12, %v842_v58  ;;  %v1030_v15 = vpop.f32.mrf.mxu3  ;;  %v828_v22 = vpop.f32.mrf.mxu1  ;;  %v3641_v20 = vld [vmem:[%s4925_s2 + $0xc] sm:$0xf] }
 0x16b   : > { %1968 = vperm.xlu0 %3762, %v1905_v26   ;;  %v2246_v24 = vsel %vm319_vm0, %v3641_v20, 0 }
 0x16c   : > { %v4230_v25 = vadd.f32 %v1030_v15, %v944_v14  ;;  %v3635_v15 = vld [vmem:[%s4925_s2 + $0x8] sm:$0xf]  ;;  %2255 = vmatpush.bf16.msra.mxu3 %v2246_v24 }
 0x16d   : > { %v2167_v22 = vsel %vm319_vm0, %v3635_v15, 0 }
 0x16e   : > { %2176 = vmatpush.bf16.msra.mxu2 %v2167_v22 }
 0x171   : > { %v930_v36 = vpop.f32.mrf.mxu2  ;;  %v1102_v16 = vpop.f32.mrf.mxu0 }
 0x172   : > { %v1032_v27 = vpop.f32.mrf.mxu3  ;;  %v1136_v21 = vadd.f32 %v1102_v16, %v4106_v17  ;;  %v1204_v23 = vpop.f32.mrf.mxu1  ;;  %v3546_v16 = vld [vmem:[%s3860_s18 + $0x12a] sm:$0xff] }
 0x173   : > { %v2098_v27 = vsel %vm319_vm0, %v2012_v35, 0 }
 0x174   : > { %v1238_v46 = vadd.f32 %v1204_v23, %v1136_v21  ;;  %3555 = vmatmul.msk.bf16.gmra.mxu0 %vm297_vm1, %v1469_v37  ;;  %v2046_v37 = vsel %vm319_vm0, %v3624_v33, 0  ;;  %2107 = vmatpush.bf16.msra.mxu1 %v2098_v27  ;;  %v3568_v21 = vld [vmem:[%s3860_s18 + $0x1aa] sm:$0xff]  ;;  %v3551_v27 = vld [vmem:[%s3860_s18 + $0x152] sm:$0xff] }
 0x175   : > { %3576 = vmatmul.msk.bf16.gmra.mxu1 %vm297_vm1, %v1571_v39  ;;  %v3547_v39 = vld [vmem:[%s3860_s18 + $0x132] sm:$0xff]  ;;  %2055 = vmatpush.bf16.msra.mxu0 %v2046_v37  ;;  %v3550_v37 = vld [vmem:[%s3860_s18 + $0x14a] sm:$0xff] }
 0x176   : > { %3597 = vmatmul.msk.bf16.gmra.mxu2 %vm297_vm1, %v1673_v34  ;;  %v3567_v34 = vld [vmem:[%s3860_s18 + $0x1a2] sm:$0xff]  ;;  %v3588_v23 = vld [vmem:[%s3860_s18 + $0x12b] sm:$0xff] }
 0x177   : > { %3618 = vmatmul.msk.bf16.gmra.mxu3 %vm297_vm1, %v1775_v42  ;;  %v3589_v42 = vld [vmem:[%s3860_s18 + $0x133] sm:$0xff] }
 0x179   : > { %v1306_v17 = vpop.f32.mrf.mxu2  ;;  %v1104_v54 = vpop.f32.mrf.mxu0 }
 0x17a   : > { %v1340_v47 = vadd.f32 %v1306_v17, %v1238_v46  ;;  %v1408_v48 = vpop.f32.mrf.mxu3  ;;  %v1137_v55 = vadd.f32 %v1104_v54, %v4117_v40  ;;  %v1206_v56 = vpop.f32.mrf.mxu1  ;;  %v3610_v46 = vld [vmem:[%s3860_s18 + $0x1ab] sm:$0xff] }
 0x17b   : > { %v1777_v63 = vpack.c.bf16 %v3610_v46, %v3609_v45  ;;  %v1473_v45 = vpack.c.bf16 %v3551_v27, %v3550_v37 }
 0x17c   : > { %v4252_v57 = vadd.f32 %v1408_v48, %v1340_v47  ;;  %v1239_v59 = vadd.f32 %v1206_v56, %v1137_v55  ;;  %v1471_v47 = vpack.c.bf16 %v3547_v39, %v3546_v16  ;;  %v1573_v56 = vpack.c.bf16 %v3568_v21, %v3567_v34  ;;  %v3572_v16 = vld [vmem:[%s3860_s18 + $0x1ca] sm:$0xff]  ;;  %v3593_v34 = vld [vmem:[%s3860_s18 + $0x153] sm:$0xff] }
 0x17d   : > { %v3592_v39 = vld [vmem:[%s3860_s18 + $0x14b] sm:$0xff]  ;;  %v3613_v21 = vld [vmem:[%s3860_s18 + $0x1c3] sm:$0xff] }
 0x181   : > { %v1308_v5 = vpop.f32.mrf.mxu2  ;;  %v1107_v6 = vpop.f32.mrf.mxu0 }
 0x182   : > { %v1341_v40 = vadd.f32 %v1308_v5, %v1239_v59  ;;  %v1410_v44 = vpop.f32.mrf.mxu3  ;;  %v1138_v10 = vadd.f32 %v1107_v6, %v4124_v49  ;;  %v1209_v58 = vpop.f32.mrf.mxu1  ;;  %v1898_v49 = vld [vmem:[%s4928_s5 + $0x28] sm:$0xff]  ;;  %v1675_v59 = vpack.c.bf16 %v3589_v42, %v3588_v23  ;;  %v3569_v6 = vld [vmem:[%s3860_s18 + $0x1b2] sm:$0xff] }
 0x183   : > { %1933 = vperm.xlu2 %3764, %v1898_v49   ;;  %v3614_v23 = vld [vmem:[%s3860_s18 + $0x1cb] sm:$0xff] }
 0x184   : > { %v4266_v12 = vadd.f32 %v1410_v44, %v1341_v40  ;;  %v1240_v14 = vadd.f32 %v1209_v58, %v1138_v10  ;;  %3556 = vmatmul.msk.bf16.gmra.mxu0 %vm297_vm1, %v1470_v53  ;;  %v3548_v40 = vld [vmem:[%s3860_s18 + $0x13a] sm:$0xff]  ;;  %v3549_v44 = vld [vmem:[%s3860_s18 + $0x142] sm:$0xff] }
 0x185   : > { %3577 = vmatmul.msk.bf16.gmra.mxu1 %vm297_vm1, %v1572_v7  ;;  %v3570_v7 = vld [vmem:[%s3860_s18 + $0x1ba] sm:$0xff]  ;;  %v3591_v10 = vld [vmem:[%s3860_s18 + $0x143] sm:$0xff]  ;;  %v1472_v15 = vpack.c.bf16 %v3549_v44, %v3548_v40 }
 0x186   : > { %3598 = vmatmul.msk.bf16.gmra.mxu2 %vm297_vm1, %v1674_v60  ;;  %v3590_v60 = vld [vmem:[%s3860_s18 + $0x13b] sm:$0xff]  ;;  %v3611_v58 = vld [vmem:[%s3860_s18 + $0x1b3] sm:$0xff]  ;;  %v1574_v22 = vpack.c.bf16 %v3570_v7, %v3569_v6 }
 0x187   : > { %3619 = vmatmul.msk.bf16.gmra.mxu3 %vm297_vm1, %v1776_v51  ;;  %v3612_v51 = vld [vmem:[%s3860_s18 + $0x1bb] sm:$0xff]  ;;  %v1676_v24 = vpack.c.bf16 %v3591_v10, %v3590_v60  ;;  %v3615_v40 = vld [vmem:[%s3860_s18 + $0x1d3] sm:$0xff] }
 0x189   : > { %v1311_v26 = vpop.f32.mrf.mxu2  ;;  %v1109_v30 = vpop.f32.mrf.mxu0 }
 0x18a   : > { %v1342_v28 = vadd.f32 %v1311_v26, %v1240_v14  ;;  %v1413_v29 = vpop.f32.mrf.mxu3  ;;  %v1139_v31 = vadd.f32 %v1109_v30, %v4135_v9  ;;  %v1211_v13 = vpop.f32.mrf.mxu1  ;;  %v1901_v9 = vld [vmem:[%s4928_s5 + $0x40] sm:$0xff] }
 0x18b   : > { %1948 = vperm.xlu2 %3764, %v1901_v9   ;;  %v3571_v9 = vld [vmem:[%s3860_s18 + $0x1c2] sm:$0xff] }
 0x18c   : > { %v4284_v32 = vadd.f32 %v1413_v29, %v1342_v28  ;;  %v1241_v36 = vadd.f32 %v1211_v13, %v1139_v31  ;;  %v1778_v29 = vpack.c.bf16 %v3612_v51, %v3611_v58 }
 0x191   : > { %v1313_v17 = vpop.f32.mrf.mxu2  ;;  %v1112_v55 = vpop.f32.mrf.mxu0 }
 0x192   : > { %v1343_v48 = vadd.f32 %v1313_v17, %v1241_v36  ;;  %v1415_v54 = vpop.f32.mrf.mxu3  ;;  %v1140_v61 = vadd.f32 %v1112_v55, %v4142_v18  ;;  %v1214_v62 = vpop.f32.mrf.mxu1  ;;  %v1904_v18 = vld [vmem:[%s4928_s5 + $0x58] sm:$0xff] }
 0x193   : > { %1963 = vperm.xlu2 %3764, %v1904_v18  }
 0x194   : > { %v4306_v0 = vadd.f32 %v1415_v54, %v1343_v48  ;;  %v1242_v1 = vadd.f32 %v1214_v62, %v1140_v61  ;;  %3557 = vmatmul.msk.bf16.gmra.mxu0 %vm297_vm1, %v1471_v47  ;;  %v1575_v47 = vpack.c.bf16 %v3572_v16, %v3571_v9  ;;  %v1677_v48 = vpack.c.bf16 %v3593_v34, %v3592_v39 }
 0x195   : > { %3578 = vmatmul.msk.bf16.gmra.mxu1 %vm297_vm1, %v1573_v56  ;;  %v1779_v56 = vpack.c.bf16 %v3614_v23, %v3613_v21 }
 0x196   : > { %3599 = vmatmul.msk.bf16.gmra.mxu2 %vm297_vm1, %v1675_v59 }
 0x197   : > { %3620 = vmatmul.msk.bf16.gmra.mxu3 %vm297_vm1, %v1777_v63 }
 0x199   : > { %v1316_v43 = vpop.f32.mrf.mxu2  ;;  %v4315_v4 = vpop.f32.mrf.mxu0 }
 0x19a   : > { %v1344_v2 = vadd.f32 %v1316_v43, %v1242_v1  ;;  %v1418_v3 = vpop.f32.mrf.mxu3  ;;  %v4317_v5 = vpop.f32.mrf.mxu1  ;;  %v3552_v43 = vld [vmem:[%s3860_s18 + $0x15a] sm:$0xff] }
 0x19b   : > { %v1474_v6 = vpack.c.bf16 %v3552_v43, %v3552_v43 }
 0x19c   : > { %v4319_v53 = vadd.f32 %v1418_v3, %v1344_v2  ;;  %v3594_v2 = vld [vmem:[%s3860_s18 + $0x15b] sm:$0xff]  ;;  %v3573_v3 = vld [vmem:[%s3860_s18 + $0x1d2] sm:$0xff]  ;;  %s3752_s18 = smul.u32 320, %s4931_s22 }
 0x19d   : > { %v1678_v10 = vpack.c.bf16 %v3594_v2, %v3594_v2  ;;  %v1576_v58 = vpack.c.bf16 %v3573_v3, %v3573_v3 }
 0x19e   : > { %s4670_s22 = scalar_lea.vmem %s4929_s6, %s3752_s18 }
 0x1a1   : > { %v4329_v14 = vpop.f32.mrf.mxu2  ;;  %v1117_v20 = vpop.f32.mrf.mxu0 }
 0x1a2   : > { %v4331_v49 = vpop.f32.mrf.mxu3  ;;  %v1142_v26 = vadd.f32 %v1117_v20, %v4160_v50  ;;  %v1219_v28 = vpop.f32.mrf.mxu1  ;;  %v1780_v20 = vpack.c.bf16 %v3615_v40, %v3615_v40 }
 0x1a4   : > { %v1244_v30 = vadd.f32 %v1219_v28, %v1142_v26  ;;  %3558 = vmatmul.msk.bf16.gmra.mxu0 %vm297_vm1, %v1472_v15 }
 0x1a5   : > { %3579 = vmatmul.msk.bf16.gmra.mxu1 %vm297_vm1, %v1574_v22 }
 0x1a6   : > { %3600 = vmatmul.msk.bf16.gmra.mxu2 %vm297_vm1, %v1676_v24 }
 0x1a7   : > { %3621 = vmatmul.msk.bf16.gmra.mxu3 %vm297_vm1, %v1778_v29 }
 0x1a9   : > { %v1321_v31 = vpop.f32.mrf.mxu2  ;;  %v4338_v33 = vpop.f32.mrf.mxu0 }
 0x1aa   : > { %v1346_v13 = vadd.f32 %v1321_v31, %v1244_v30  ;;  %v1423_v50 = vpop.f32.mrf.mxu3  ;;  %v4340_v35 = vpop.f32.mrf.mxu1 }
 0x1ac   : > { %v4342_v36 = vadd.f32 %v1423_v50, %v1346_v13 }
 0x1b1   : > { %v4352_v42 = vpop.f32.mrf.mxu2  ;;  %v1122_v17 = vpop.f32.mrf.mxu0 }
 0x1b2   : > { %v4354_v46 = vpop.f32.mrf.mxu3  ;;  %v1144_v54 = vadd.f32 %v1122_v17, %v4178_v19  ;;  %v1224_v55 = vpop.f32.mrf.mxu1 }
 0x1b4   : > { %v1246_v59 = vadd.f32 %v1224_v55, %v1144_v54  ;;  %3559 = vmatmul.msk.bf16.gmra.mxu0 %vm297_vm1, %v1473_v45 }
 0x1b5   : > { %3580 = vmatmul.msk.bf16.gmra.mxu1 %vm297_vm1, %v1575_v47 }
 0x1b6   : > { %3601 = vmatmul.msk.bf16.gmra.mxu2 %vm297_vm1, %v1677_v48 }
 0x1b7   : > { %3622 = vmatmul.msk.bf16.gmra.mxu3 %vm297_vm1, %v1779_v56  ;;  %v4394_v56 = vpop.permute.xlu1 %1923 }
 0x1b9   : > { %v1326_v61 = vpop.f32.mrf.mxu2  ;;  %v4361_v1 = vpop.f32.mrf.mxu0 }
 0x1ba   : > { %v1348_v62 = vadd.f32 %v1326_v61, %v1246_v59  ;;  %v1428_v63 = vpop.f32.mrf.mxu3  ;;  %v4363_v18 = vpop.f32.mrf.mxu1 }
 0x1bc   : > { %v4365_v19 = vadd.f32 %v1428_v63, %v1348_v62  ;;  %v4399_v63 = vld [vmem:[%s4926_s3] ss:$0 sm:$0xff] }
 0x1c1   : > { %v4371_v44 = vpop.f32.mrf.mxu2  ;;  %v1127_v60 = vpop.f32.mrf.mxu0 }
 0x1c2   : > { %v4373_v7 = vpop.f32.mrf.mxu3  ;;  %v1146_v51 = vadd.f32 %v1127_v60, %v4201_v52  ;;  %v1229_v15 = vpop.f32.mrf.mxu1 }
 0x1c3   : > { %v1909_v60 = vpop.permute.xlu1 %1908 }
 0x1c4   : > { %v1248_v22 = vadd.f32 %v1229_v15, %v1146_v51  ;;  %3560 = vmatmul.msk.bf16.gmra.mxu0 %vm297_vm1, %v1474_v6 }
 0x1c5   : > { %3581 = vmatmul.msk.bf16.gmra.mxu1 %vm297_vm1, %v1576_v58 }
 0x1c6   : > { %3602 = vmatmul.msk.bf16.gmra.mxu2 %vm297_vm1, %v1678_v10 }
 0x1c7   : > { %3623 = vmatmul.msk.bf16.gmra.mxu3 %vm297_vm1, %v1780_v20 }
 0x1c9   : > { %v1331_v24 = vpop.f32.mrf.mxu2  ;;  %v4380_v29 = vpop.f32.mrf.mxu0 }
 0x1ca   : > { %v1350_v26 = vadd.f32 %v1331_v24, %v1248_v22  ;;  %v1433_v28 = vpop.f32.mrf.mxu3  ;;  %v4382_v30 = vpop.f32.mrf.mxu1 }
 0x1cc   : > { %v4384_v31 = vadd.f32 %v1433_v28, %v1350_v26 }
 0x1d1   : > { %v4386_v52 = vpop.f32.mrf.mxu2  ;;  %v1132_v50 = vpop.f32.mrf.mxu0 }
 0x1d2   : > { %v4388_v13 = vpop.f32.mrf.mxu3  ;;  %v1148_v37 = vadd.f32 %v1132_v50, %v4230_v25  ;;  %v1234_v27 = vpop.f32.mrf.mxu1 }
 0x1d4   : > { %v1250_v9 = vadd.f32 %v1234_v27, %v1148_v37  ;;  %v1914_v37 = vpop.permute.xlu0 %1913 }
 0x1d9   : > { %v1336_v16 = vpop.f32.mrf.mxu2  ;;  %v1134_v21 = vpop.f32.mrf.mxu0 }
 0x1da   : > { %v1352_v39 = vadd.f32 %v1336_v16, %v1250_v9  ;;  %v1438_v34 = vpop.f32.mrf.mxu3  ;;  %v1236_v23 = vpop.f32.mrf.mxu1 }
 0x1dc   : > { %v4391_v45 = vadd.f32 %v1438_v34, %v1352_v39 }
 0x1e1   : > { %v1338_v17 = vpop.f32.mrf.mxu2  ;;  %v1510_v48 = vpop.f32.mrf.mxu0 }
 0x1e2   : > { %v1440_v47 = vpop.f32.mrf.mxu3  ;;  %v1612_v54 = vpop.f32.mrf.mxu1  ;;  %v1544_v55 = vadd.f32 %v1510_v48, %v4252_v57  ;;  %v3665_v48 = vld [vmem:[%s4925_s2 + $0x1c] sm:$0xf] }
 0x1e4   : > { %v1646_v59 = vadd.f32 %v1612_v54, %v1544_v55  ;;  %v2566_v55 = vsel %vm319_vm0, %v3665_v48, 0 }
 0x1e5   : > { %2575 = vmatpush.bf16.msrb.mxu3 %v2566_v55 }
 0x1e9   : > { %v1714_v61 = vpop.f32.mrf.mxu2  ;;  %v1512_v43 = vpop.f32.mrf.mxu0 }
 0x1ea   : > { %v1748_v25 = vadd.f32 %v1714_v61, %v1646_v59  ;;  %v1816_v62 = vpop.f32.mrf.mxu3  ;;  %v1614_v2 = vpop.f32.mrf.mxu1  ;;  %v1545_v40 = vadd.f32 %v1512_v43, %v4266_v12  ;;  %v1141_v61 = vadd.f32 %v4315_v4, %v4153_v41  ;;  %v3648_v41 = vld [vmem:[%s4925_s2 + $0x14] sm:$0xf]  ;;  %v3647_v4 = vld [vmem:[%s4925_s2 + $0x10] sm:$0xf] }
 0x1ec   : > { %v1850_v3 = vadd.f32 %v1816_v62, %v1748_v25  ;;  %v1647_v57 = vadd.f32 %v1614_v2, %v1545_v40  ;;  %v1919_v62 = vpop.permute.xlu0 %1918 }
 0x1ee   : > { %v1867_v6 = vadd.f32 %v4399_v63, %v1850_v3 }
 0x1f0   : > { %v1880_v10 = vmax.f32 %v1867_v6, 0.0 }
 0x1f1   : > { %v1716_v58 = vpop.f32.mrf.mxu2  ;;  %v1515_v22 = vpop.f32.mrf.mxu0 }
 0x1f2   : > { %v1971_v51 = vmul.f32 %v1909_v60, %v1880_v10  ;;  %v1749_v15 = vadd.f32 %v1716_v58, %v1647_v57  ;;  %v1818_v20 = vpop.f32.mrf.mxu3  ;;  %v1617_v24 = vpop.f32.mrf.mxu1  ;;  %v1546_v28 = vadd.f32 %v1515_v22, %v4284_v32  ;;  %v3659_v32 = vld [vmem:[%s4925_s2 + $0x18] sm:$0xf]  ;;  %v1243_v58 = vadd.f32 %v4317_v5, %v1141_v61 }
 0x1f3   : > { %v2487_v54 = vsel %vm319_vm0, %v3659_v32, 0  ;;  %v2366_v22 = vsel %vm319_vm0, %v3648_v41, 0 }
 0x1f4   : > { %1984 = vst.msk [vmem:[#allocation2] sm:$0xff] %vm297_vm1, %v1971_v51  ;;  %v1851_v26 = vadd.f32 %v1818_v20, %v1749_v15  ;;  %v1648_v27 = vadd.f32 %v1617_v24, %v1546_v28  ;;  %2496 = vmatpush.bf16.msrb.mxu2 %v2487_v54  ;;  %v2418_v24 = vsel %vm319_vm0, %v3647_v4, 0  ;;  %v1345_v5 = vadd.f32 %v4329_v14, %v1243_v58 }
 0x1f5   : > { %2375 = vmatpush.bf16.msrb.mxu0 %v2366_v22  ;;  %2427 = vmatpush.bf16.msrb.mxu1 %v2418_v24 }
 0x1f6   : > { %v1868_v50 = vadd.f32 %v4399_v63, %v1851_v26 }
 0x1f8   : > { %v1881_v12 = vmax.f32 %v1868_v50, 0.0 }
 0x1f9   : > { %v1719_v9 = vpop.f32.mrf.mxu2  ;;  %v1517_v21 = vpop.f32.mrf.mxu0 }
 0x1fa   : > { %v1972_v16 = vmul.f32 %v1914_v37, %v1881_v12  ;;  %v1750_v39 = vadd.f32 %v1719_v9, %v1648_v27  ;;  %v1821_v34 = vpop.f32.mrf.mxu3  ;;  %v1619_v23 = vpop.f32.mrf.mxu1  ;;  %v1547_v47 = vadd.f32 %v1517_v21, %v4306_v0  ;;  %v1447_v37 = vadd.f32 %v4331_v49, %v1345_v5 }
 0x1fb   : > { %v1997_v57 = vld [vmem:[#allocation2] sm:$0xff]  ;;  %v1143_v49 = vadd.f32 %v4338_v33, %v4171_v8 }
 0x1fc   : > { %1985 = vst.msk [vmem:[#allocation2 + $0x8] sm:$0xff] %vm297_vm1, %v1972_v16  ;;  %v1852_v17 = vadd.f32 %v1821_v34, %v1750_v39  ;;  %v1649_v25 = vadd.f32 %v1619_v23, %v1547_v47 }
 0x1fe   : > { %v1869_v59 = vadd.f32 %v4399_v63, %v1852_v17 }
 0x200   : > { %v1882_v0 = vmax.f32 %v1869_v59, 0.0 }
 0x201   : > { %v1721_v43 = vpop.f32.mrf.mxu2  ;;  %v1520_v6 = vpop.f32.mrf.mxu0 }
 0x202   : > { %v1973_v2 = vmul.f32 %v1919_v62, %v1882_v0  ;;  %v1751_v3 = vadd.f32 %v1721_v43, %v1649_v25  ;;  %v1823_v40 = vpop.f32.mrf.mxu3  ;;  %v1622_v60 = vpop.f32.mrf.mxu1  ;;  %v1548_v15 = vadd.f32 %v1520_v6, %v4319_v53 }
 0x203   : > { %v1998_v10 = vld [vmem:[#allocation2 + $0x8] sm:$0xff] }
 0x204   : > { %1986 = vst.msk [vmem:[#allocation2 + $0x10] sm:$0xff] %vm297_vm1, %v1973_v2  ;;  %v1853_v51 = vadd.f32 %v1823_v40, %v1751_v3  ;;  %v2007_v20 = vpack.c.bf16 %v1998_v10, %v1997_v57  ;;  %v1650_v28 = vadd.f32 %v1622_v60, %v1548_v15  ;;  %v2013_v34 = vld [vmem:[#allocation2 + $0x1] sm:$0xff]  ;;  %v1245_v2 = vadd.f32 %v4340_v35, %v1143_v49 }
 0x206   : > { %v1870_v26 = vadd.f32 %v4399_v63, %v1853_v51  ;;  %3630 = vmatmul.msk.bf16.vlgmr.msra.gmra.mxu1 %vm297_vm1, %v2007_v20  ;;  %v1347_v51 = vadd.f32 %v4352_v42, %v1245_v2 }
 0x208   : > { %v1883_v53 = vmax.f32 %v1870_v26, 0.0  ;;  %v1449_v4 = vadd.f32 %v4354_v46, %v1347_v51 }
 0x209   : > { %v1724_v50 = vpop.f32.mrf.mxu2  ;;  %v1522_v16 = vpop.f32.mrf.mxu0 }
 0x20a   : > { %v1974_v12 = vmul.f32 %v4394_v56, %v1883_v53  ;;  %v1752_v27 = vadd.f32 %v1724_v50, %v1650_v28  ;;  %v1826_v9 = vpop.f32.mrf.mxu3  ;;  %v1624_v39 = vpop.f32.mrf.mxu1  ;;  %v1549_v23 = vadd.f32 %v1522_v16, %v1447_v37  ;;  %v1145_v16 = vadd.f32 %v4361_v1, %v4188_v38 }
 0x20b   : > { %v2014_v21 = vld [vmem:[#allocation2 + $0x9] sm:$0xff]  ;;  %v1929_v56 = vpop.permute.xlu2 %1928 }
 0x20c   : > { %1987 = vst.msk [vmem:[#allocation2 + $0x18] sm:$0xff] %vm297_vm1, %v1974_v12  ;;  %v1854_v14 = vadd.f32 %v1826_v9, %v1752_v27  ;;  %v4436_v17 = vpack.c.bf16 %v2014_v21, %v2013_v34  ;;  %v1651_v48 = vadd.f32 %v1624_v39, %v1549_v23  ;;  %v1999_v25 = vld [vmem:[#allocation2 + $0x10] sm:$0xff]  ;;  %v1939_v21 = vpop.permute.xlu0 %1938 }
 0x20d   : > { %v4443_v62 = vld [vmem:[#allocation2 + $0xa] sm:$0xff] }
 0x20e   : > { %v1871_v47 = vadd.f32 %v4399_v63, %v1854_v14  ;;  %3625 = vmatmul.msk.bf16.vlgmr.msra.gmra.mxu0 %vm297_vm1, %v4436_v17  ;;  %v2213_v43 = vld [vmem:[#allocation2 + $0xb] sm:$0xff] }
 0x210   : > { %v1884_v32 = vmax.f32 %v1871_v47, 0.0 }
 0x211   : > { %v1726_v54 = vpop.f32.mrf.mxu2  ;;  %v1525_v0 = vpop.f32.mrf.mxu0 }
 0x212   : > { %v1975_v55 = vmul.f32 %v1929_v56, %v1884_v32  ;;  %v1753_v59 = vadd.f32 %v1726_v54, %v1651_v48  ;;  %v1828_v61 = vpop.f32.mrf.mxu3  ;;  %v1550_v3 = vadd.f32 %v1525_v0, %v4342_v36  ;;  %v1627_v40 = vpop.f32.mrf.mxu1  ;;  %v1247_v54 = vadd.f32 %v4363_v18, %v1145_v16 }
 0x213   : > { %v2000_v6 = vld [vmem:[#allocation2 + $0x18] sm:$0xff]  ;;  %v1934_v20 = vpop.permute.xlu2 %1933 }
 0x214   : > { %v4447_v60 = vld [vmem:[#allocation2 + $0x12] sm:$0xff]  ;;  %1988 = vst.msk [vmem:[#allocation2 + $0x20] sm:$0xff] %vm297_vm1, %v1975_v55  ;;  %v1855_v33 = vadd.f32 %v1828_v61, %v1753_v59  ;;  %v2008_v57 = vpack.c.bf16 %v2000_v6, %v1999_v25  ;;  %v1652_v15 = vadd.f32 %v1627_v40, %v1550_v3  ;;  %v1349_v3 = vadd.f32 %v4371_v44, %v1247_v54  ;;  %v1944_v6 = vpop.permute.xlu1 %1943 }
 0x215   : > { %v2214_v8 = vld [vmem:[#allocation2 + $0x13] sm:$0xff]  ;;  %v4452_v10 = vpack.c.bf16 %v4447_v60, %v4443_v62 }
 0x216   : > { %v4454_v58 = vpack.c.bf16 %v2214_v8, %v2213_v43  ;;  %v1872_v35 = vadd.f32 %v4399_v63, %v1855_v33  ;;  %3631 = vmatmul.msk.bf16.gmra.mxu1 %vm297_vm1, %v2008_v57  ;;  %v2015_v53 = vld [vmem:[#allocation2 + $0x11] sm:$0xff]  ;;  %v1451_v33 = vadd.f32 %v4373_v7, %v1349_v3 }
 0x217   : > { %3636 = vmatmul.msk.bf16.vlgmr.msra.gmra.mxu2 %vm297_vm1, %v4452_v10 }
 0x218   : > { %3642 = vmatmul.msk.bf16.vlgmr.msra.gmra.mxu3 %vm297_vm1, %v4454_v58  ;;  %v1885_v36 = vmax.f32 %v1872_v35, 0.0 }
 0x219   : > { %v1729_v41 = vpop.f32.mrf.mxu2  ;;  %v1527_v42 = vpop.f32.mrf.mxu0 }
 0x21a   : > { %v1976_v22 = vmul.f32 %v1934_v20, %v1885_v36  ;;  %v1754_v24 = vadd.f32 %v1729_v41, %v1652_v15  ;;  %v1831_v5 = vpop.f32.mrf.mxu3  ;;  %v1629_v26 = vpop.f32.mrf.mxu1  ;;  %v1551_v12 = vadd.f32 %v1527_v42, %v1449_v4  ;;  %v1147_v42 = vadd.f32 %v4380_v29, %v4218_v11 }
 0x21b   : > { %v2016_v28 = vld [vmem:[#allocation2 + $0x19] sm:$0xff] }
 0x21c   : > { %v4464_v50 = vld [vmem:[#allocation2 + $0x1a] sm:$0xff]  ;;  %1989 = vst.msk [vmem:[#allocation2 + $0x28] sm:$0xff] %vm297_vm1, %v1976_v22  ;;  %v1856_v37 = vadd.f32 %v1831_v5, %v1754_v24  ;;  %v4467_v27 = vpack.c.bf16 %v2016_v28, %v2015_v53  ;;  %v1653_v34 = vadd.f32 %v1629_v26, %v1551_v12  ;;  %v1949_v28 = vpop.permute.xlu2 %1948 }
 0x21d   : > { %v2344_v9 = vpack.c.bf16 %v4464_v50, %v4447_v60  ;;  %v2001_v32 = vld [vmem:[#allocation2 + $0x20] sm:$0xff] }
 0x21e   : > { %v1873_v46 = vadd.f32 %v4399_v63, %v1856_v37  ;;  %3626 = vmatmul.msk.bf16.gmra.mxu0 %vm297_vm1, %v4467_v27  ;;  %v2215_v48 = vld [vmem:[#allocation2 + $0x1b] sm:$0xff] }
 0x220   : > { %v1886_v39 = vmax.f32 %v1873_v46, 0.0 }
 0x221   : > { %v1731_v14 = vpop.f32.mrf.mxu2  ;;  %v1530_v56 = vpop.f32.mrf.mxu0 }
 0x222   : > { %v1977_v23 = vmul.f32 %v1939_v21, %v1886_v39  ;;  %v1755_v47 = vadd.f32 %v1731_v14, %v1653_v34  ;;  %v1833_v49 = vpop.f32.mrf.mxu3  ;;  %v1552_v55 = vadd.f32 %v1530_v56, %v4365_v19  ;;  %v1632_v59 = vpop.f32.mrf.mxu1  ;;  %v1249_v14 = vadd.f32 %v4382_v30, %v1147_v42 }
 0x223   : > { %v2002_v61 = vld [vmem:[#allocation2 + $0x28] sm:$0xff] }
 0x224   : > { %v4478_v0 = vld [vmem:[#allocation2 + $0x22] sm:$0xff]  ;;  %1990 = vst.msk [vmem:[#allocation2 + $0x30] sm:$0xff] %vm297_vm1, %v1977_v23  ;;  %v1857_v38 = vadd.f32 %v1833_v49, %v1755_v47  ;;  %v2009_v1 = vpack.c.bf16 %v2002_v61, %v2001_v32  ;;  %v1654_v40 = vadd.f32 %v1632_v59, %v1552_v55  ;;  %v1351_v55 = vadd.f32 %v4386_v52, %v1249_v14  ;;  %v1954_v61 = vpop.permute.xlu0 %1953 }
 0x225   : > { %v2216_v25 = vld [vmem:[#allocation2 + $0x23] sm:$0xff]  ;;  %v4483_v43 = vpack.c.bf16 %v4478_v0, %v4464_v50 }
 0x226   : > { %v4485_v2 = vpack.c.bf16 %v2216_v25, %v2215_v48  ;;  %v1874_v18 = vadd.f32 %v4399_v63, %v1857_v38  ;;  %3632 = vmatmul.msk.bf16.gmra.mxu1 %vm297_vm1, %v2009_v1  ;;  %v2017_v15 = vld [vmem:[#allocation2 + $0x21] sm:$0xff]  ;;  %v1453_v38 = vadd.f32 %v4388_v13, %v1351_v55 }
 0x227   : > { %3637 = vmatmul.msk.bf16.gmra.mxu2 %vm297_vm1, %v4483_v43 }
 0x228   : > { %3643 = vmatmul.msk.bf16.gmra.mxu3 %vm297_vm1, %v4485_v2  ;;  %v1887_v19 = vmax.f32 %v1874_v18, 0.0 }
 0x229   : > { %v1734_v8 = vpop.f32.mrf.mxu2  ;;  %v1532_v44 = vpop.f32.mrf.mxu0 }
 0x22a   : > { %v1978_v57 = vmul.f32 %v1944_v6, %v1887_v19  ;;  %v1756_v51 = vadd.f32 %v1734_v8, %v1654_v40  ;;  %v1836_v35 = vpop.f32.mrf.mxu3  ;;  %v1634_v36 = vpop.f32.mrf.mxu1  ;;  %v1553_v22 = vadd.f32 %v1532_v44, %v1451_v33 }
 0x22b   : > { %v2018_v20 = vld [vmem:[#allocation2 + $0x29] sm:$0xff] }
 0x22c   : > { %v4495_v41 = vld [vmem:[#allocation2 + $0x2a] sm:$0xff]  ;;  %1991 = vst.msk [vmem:[#allocation2 + $0x38] sm:$0xff] %vm297_vm1, %v1978_v57  ;;  %v1858_v4 = vadd.f32 %v1836_v35, %v1756_v51  ;;  %v4498_v24 = vpack.c.bf16 %v2018_v20, %v2017_v15  ;;  %v1655_v53 = vadd.f32 %v1634_v36, %v1553_v22  ;;  %v1959_v15 = vpop.permute.xlu1 %1958 }
 0x22d   : > { %v2345_v5 = vpack.c.bf16 %v4495_v41, %v4478_v0  ;;  %v2003_v34 = vld [vmem:[#allocation2 + $0x30] sm:$0xff] }
 0x22e   : > { %v1875_v7 = vadd.f32 %v4399_v63, %v1858_v4  ;;  %3627 = vmatmul.msk.bf16.gmra.mxu0 %vm297_vm1, %v4498_v24  ;;  %v2217_v21 = vld [vmem:[#allocation2 + $0x2b] sm:$0xff] }
 0x230   : > { %v1888_v26 = vmax.f32 %v1875_v7, 0.0 }
 0x231   : > { %v1736_v37 = vpop.f32.mrf.mxu2  ;;  %v1535_v39 = vpop.f32.mrf.mxu0 }
 0x232   : > { %v1979_v12 = vmul.f32 %v1949_v28, %v1888_v26  ;;  %v1757_v46 = vadd.f32 %v1736_v37, %v1655_v53  ;;  %v1838_v16 = vpop.f32.mrf.mxu3  ;;  %v1554_v23 = vadd.f32 %v1535_v39, %v4384_v31  ;;  %v1637_v47 = vpop.f32.mrf.mxu1 }
 0x233   : > { %v2004_v49 = vld [vmem:[#allocation2 + $0x38] sm:$0xff] }
 0x234   : > { %v4509_v56 = vld [vmem:[#allocation2 + $0x32] sm:$0xff]  ;;  %1992 = vst.msk [vmem:[#allocation2 + $0x40] sm:$0xff] %vm297_vm1, %v1979_v12  ;;  %v1859_v11 = vadd.f32 %v1838_v16, %v1757_v46  ;;  %v2010_v29 = vpack.c.bf16 %v2004_v49, %v2003_v34  ;;  %v1656_v59 = vadd.f32 %v1637_v47, %v1554_v23  ;;  %v3693_v47 = vld [vmem:[%s4925_s2 + $0x28] sm:$0xf]  ;;  %v3699_v49 = vld [vmem:[%s4925_s2 + $0x2c] sm:$0xf] }
 0x235   : > { %v2218_v32 = vld [vmem:[#allocation2 + $0x33] sm:$0xff]  ;;  %v4514_v48 = vpack.c.bf16 %v4509_v56, %v4495_v41  ;;  %v2887_v55 = vsel %vm319_vm0, %v3699_v49, 0 }
 0x236   : > { %v4516_v54 = vpack.c.bf16 %v2218_v32, %v2217_v21  ;;  %v1876_v30 = vadd.f32 %v4399_v63, %v1859_v11  ;;  %3633 = vmatmul.msk.bf16.gmra.mxu1 %vm297_vm1, %v2010_v29  ;;  %v2019_v40 = vld [vmem:[#allocation2 + $0x31] sm:$0xff]  ;;  %v3682_v32 = vld [vmem:[%s4925_s2 + $0x24] sm:$0xf]  ;;  %v2808_v29 = vsel %vm319_vm0, %v3693_v47, 0  ;;  %2896 = vmatpush.bf16.msra.mxu3 %v2887_v55  ;;  %v4665_v55 = vld [vmem:[%s4927_s4] ss:$0 sm:$0xff] }
 0x237   : > { %3638 = vmatmul.msk.bf16.gmra.mxu2 %vm297_vm1, %v4514_v48  ;;  %v4622_v60 = vld [vmem:[#allocation2 + $0x34] sm:$0xff] }
 0x238   : > { %3644 = vmatmul.msk.bf16.gmra.mxu3 %vm297_vm1, %v4516_v54  ;;  %v1889_v31 = vmax.f32 %v1876_v30, 0.0  ;;  %v2687_v30 = vsel %vm319_vm0, %v3682_v32, 0  ;;  %2817 = vmatpush.bf16.msra.mxu2 %v2808_v29 }
 0x239   : > { %v1739_v25 = vpop.f32.mrf.mxu2  ;;  %v1537_v52 = vpop.f32.mrf.mxu0  ;;  %2696 = vmatpush.bf16.msra.mxu0 %v2687_v30 }
 0x23a   : > { %v1980_v1 = vmul.f32 %v1954_v61, %v1889_v31  ;;  %v1758_v3 = vadd.f32 %v1739_v25, %v1656_v59  ;;  %v1841_v18 = vpop.f32.mrf.mxu3  ;;  %v1639_v19 = vpop.f32.mrf.mxu1  ;;  %v1555_v57 = vadd.f32 %v1537_v52, %v1453_v38  ;;  %v3681_v31 = vld [vmem:[%s4925_s2 + $0x20] sm:$0xf] }
 0x23b   : > { %v2020_v6 = vld [vmem:[#allocation2 + $0x39] sm:$0xff]  ;;  %v1964_v59 = vpop.permute.xlu2 %1963  ;;  %v2739_v25 = vsel %vm319_vm0, %v3681_v31, 0 }
 0x23c   : > { %v4526_v8 = vld [vmem:[#allocation2 + $0x3a] sm:$0xff]  ;;  %1993 = vst.msk [vmem:[#allocation2 + $0x48] sm:$0xff] %vm297_vm1, %v1980_v1  ;;  %v1860_v33 = vadd.f32 %v1841_v18, %v1758_v3  ;;  %v4529_v51 = vpack.c.bf16 %v2020_v6, %v2019_v40  ;;  %v1657_v36 = vadd.f32 %v1639_v19, %v1555_v57  ;;  %2748 = vmatpush.bf16.msra.mxu1 %v2739_v25 }
 0x23d   : > { %v2346_v35 = vpack.c.bf16 %v4526_v8, %v4509_v56  ;;  %v2005_v26 = vld [vmem:[#allocation2 + $0x40] sm:$0xff] }
 0x23e   : > { %v1877_v13 = vadd.f32 %v4399_v63, %v1860_v33  ;;  %3628 = vmatmul.msk.bf16.gmra.mxu0 %vm297_vm1, %v4529_v51  ;;  %v2219_v53 = vld [vmem:[#allocation2 + $0x3b] sm:$0xff] }
 0x240   : > { %v1890_v44 = vmax.f32 %v1877_v13, 0.0 }
 0x241   : > { %v1741_v20 = vpop.f32.mrf.mxu2  ;;  %v1540_v42 = vpop.f32.mrf.mxu0 }
 0x242   : > { %v1981_v4 = vmul.f32 %v1959_v15, %v1890_v44  ;;  %v1759_v22 = vadd.f32 %v1741_v20, %v1657_v36  ;;  %v1843_v7 = vpop.f32.mrf.mxu3  ;;  %v1556_v28 = vadd.f32 %v1540_v42, %v4391_v45  ;;  %v1642_v37 = vpop.f32.mrf.mxu1 }
 0x243   : > { %v2006_v12 = vld [vmem:[#allocation2 + $0x48] sm:$0xff]  ;;  %v1969_v15 = vpop.permute.xlu0 %1968 }
 0x244   : > { %v4537_v46 = vld [vmem:[#allocation2 + $0x42] sm:$0xff]  ;;  %1994 = vst.msk [vmem:[#allocation2 + $0x50] sm:$0xff] %vm297_vm1, %v1981_v4  ;;  %v1861_v39 = vadd.f32 %v1843_v7, %v1759_v22  ;;  %v2011_v34 = vpack.c.bf16 %v2006_v12, %v2005_v26  ;;  %v1658_v45 = vadd.f32 %v1642_v37, %v1556_v28  ;;  %v4589_v12 = vld [vmem:[#allocation2 + $0x14] sm:$0xff] }
 0x245   : > { %v2220_v16 = vld [vmem:[#allocation2 + $0x43] sm:$0xff]  ;;  %v4542_v21 = vpack.c.bf16 %v4537_v46, %v4526_v8  ;;  %v3727_v8 = vld [vmem:[%s4925_s2 + $0x38] sm:$0xf] }
 0x246   : > { %v4544_v14 = vpack.c.bf16 %v2220_v16, %v2219_v53  ;;  %v1878_v23 = vadd.f32 %v4399_v63, %v1861_v39  ;;  %3634 = vmatmul.msk.bf16.gmra.mxu1 %vm297_vm1, %v2011_v34  ;;  %v2021_v52 = vld [vmem:[#allocation2 + $0x41] sm:$0xff]  ;;  %v2533_v16 = vld [vmem:[#allocation2 + $0xc] sm:$0xff]  ;;  %v3129_v49 = vsel %vm319_vm0, %v3727_v8, 0  ;;  %v2854_v8 = vld [vmem:[#allocation2 + $0x15] sm:$0xff] }
 0x247   : > { %3639 = vmatmul.msk.bf16.gmra.mxu2 %vm297_vm1, %v4542_v21  ;;  %v4592_v39 = vpack.c.bf16 %v4589_v12, %v2533_v16 }
 0x248   : > { %3645 = vmatmul.msk.bf16.gmra.mxu3 %vm297_vm1, %v4544_v14  ;;  %v1891_v11 = vmax.f32 %v1878_v23, 0.0 }
 0x249   : > { %v1744_v61 = vpop.f32.mrf.mxu2  ;;  %v1542_v18 = vpop.f32.mrf.mxu0 }
 0x24a   : > { %v1982_v38 = vmul.f32 %v1964_v59, %v1891_v11  ;;  %v1760_v1 = vadd.f32 %v1744_v61, %v1658_v45  ;;  %v1846_v3 = vpop.f32.mrf.mxu3  ;;  %v1644_v6 = vpop.f32.mrf.mxu1  ;;  %v4642_v45 = vld [vmem:[#allocation2 + $0x3c] sm:$0xff] }
 0x24b   : > { %v2022_v19 = vld [vmem:[#allocation2 + $0x49] sm:$0xff] }
 0x24c   : > { %v4568_v40 = vld [vmem:[#allocation2 + $0x4a] sm:$0xff]  ;;  %1995 = vst.msk [vmem:[#allocation2 + $0x58] sm:$0xff] %vm297_vm1, %v1982_v38  ;;  %v1862_v33 = vadd.f32 %v1846_v3, %v1760_v1  ;;  %v2027_v57 = vpack.c.bf16 %v2022_v19, %v2021_v52  ;;  %v3716_v38 = vld [vmem:[%s4925_s2 + $0x34] sm:$0xf] }
 0x24d   : > { %v2347_v13 = vpack.c.bf16 %v4568_v40, %v4537_v46  ;;  %v2221_v42 = vld [vmem:[#allocation2 + $0x4b] sm:$0xff]  ;;  %v3008_v18 = vsel %vm319_vm0, %v3716_v38, 0 }
 0x24e   : > { %v1879_v44 = vadd.f32 %v4399_v63, %v1862_v33  ;;  %3629 = vmatmul.msk.bf16.gmra.mxu0 %vm297_vm1, %v2027_v57  ;;  %v2333_v63 = vld [vmem:[#allocation2 + $0x2] sm:$0xff]  ;;  %v3715_v1 = vld [vmem:[%s4925_s2 + $0x30] sm:$0xf] }
 0x24f   : > { %v2343_v37 = vpack.c.bf16 %v4443_v62, %v2333_v63  ;;  %v4606_v62 = vld [vmem:[#allocation2 + $0x1c] sm:$0xff]  ;;  %v3060_v52 = vsel %vm319_vm0, %v3715_v1, 0  ;;  %v2857_v38 = vld [vmem:[#allocation2 + $0x2d] sm:$0xff] }
 0x250   : > { %v1892_v36 = vmax.f32 %v1879_v44, 0.0 }
 0x251   : > { %v1746_v20 = vpop.f32.mrf.mxu2 }
 0x252   : > { %v1983_v4 = vmul.f32 %v1969_v15, %v1892_v36  ;;  %v1848_v22 = vpop.f32.mrf.mxu3 }
 0x253   : > { %v2143_v7 = vld [vmem:[#allocation2 + $0x52] sm:$0xff] }
 0x254   : > { %v2222_v26 = vld [vmem:[#allocation2 + $0x53] sm:$0xff]  ;;  %1996 = vst.msk [vmem:[#allocation2 + $0x60] sm:$0xff] %vm297_vm1, %v1983_v4  ;;  %v4577_v53 = vpack.c.bf16 %v2143_v7, %v4568_v40 }
 0x255   : > { %v4579_v28 = vpack.c.bf16 %v2222_v26, %v2221_v42  ;;  %v4687_v40 = vld [vmem:[#allocation2 + $0x54] sm:$0xff] }
 0x256   : > { %3654 = vmatmul.msk.bf16.vlgmr.msrb.gmra.mxu1 %vm297_vm1, %v4436_v17  ;;  %v4604_v17 = vld [vmem:[#allocation2 + $0x24] sm:$0xff] }
 0x257   : > { %3640 = vmatmul.msk.bf16.gmra.mxu2 %vm297_vm1, %v4577_v53  ;;  %v4610_v34 = vpack.c.bf16 %v4604_v17, %v4606_v62  ;;  %3069 = vmatpush.bf16.msrb.mxu1 %v3060_v52 }
 0x258   : > { %3646 = vmatmul.msk.bf16.gmra.mxu3 %vm297_vm1, %v4579_v28 }
 0x25e   : > { %3649 = vmatmul.msk.bf16.vlgmr.msrb.gmra.mxu0 %vm297_vm1, %v2343_v37 }
 0x25f   : > { %3017 = vmatpush.bf16.msrb.mxu0 %v3008_v18 }
 0x266   : > { %3655 = vmatmul.msk.bf16.gmra.mxu1 %vm297_vm1, %v4467_v27  ;;  %v4624_v27 = vld [vmem:[#allocation2 + $0x2c] sm:$0xff] }
 0x267   : > { %3660 = vmatmul.msk.bf16.vlgmr.msrb.gmra.mxu2 %vm297_vm1, %v4454_v58  ;;  %v2786_v52 = vpack.c.bf16 %v4624_v27, %v4604_v17 }
 0x268   : > { %3666 = vmatmul.msk.bf16.vlgmr.msrb.gmra.mxu3 %vm297_vm1, %v4592_v39  ;;  %3138 = vmatpush.bf16.msrb.mxu2 %v3129_v49 }
 0x26e   : > { %3650 = vmatmul.msk.bf16.gmra.mxu0 %vm297_vm1, %v2344_v9  ;;  %v4628_v9 = vpack.c.bf16 %v4622_v60, %v4624_v27 }
 0x276   : > { %3656 = vmatmul.msk.bf16.gmra.mxu1 %vm297_vm1, %v4498_v24  ;;  %v4640_v24 = vld [vmem:[#allocation2 + $0x44] sm:$0xff] }
 0x277   : > { %3661 = vmatmul.msk.bf16.gmra.mxu2 %vm297_vm1, %v4485_v2 }
 0x278   : > { %3667 = vmatmul.msk.bf16.gmra.mxu3 %vm297_vm1, %v4610_v34 }
 0x27e   : > { %3651 = vmatmul.msk.bf16.gmra.mxu0 %vm297_vm1, %v2345_v5 }
 0x283   : > { %v2109_v50 = vpop.f32.mrf.mxu1 }
 0x286   : > { %3657 = vmatmul.msk.bf16.gmra.mxu1 %vm297_vm1, %v4529_v51  ;;  %v4646_v51 = vpack.c.bf16 %v4640_v24, %v4642_v45 }
 0x287   : > { %3662 = vmatmul.msk.bf16.gmra.mxu2 %vm297_vm1, %v4516_v54 }
 0x288   : > { %3668 = vmatmul.msk.bf16.gmra.mxu3 %vm297_vm1, %v4628_v9 }
 0x28b   : > { %v2057_v0 = vpop.f32.mrf.mxu0  ;;  %v2111_v41 = vpop.f32.mrf.mxu1 }
 0x28c   : > { %v2110_v56 = vadd.f32 %v2109_v50, %v2057_v0  ;;  %v2855_v0 = vld [vmem:[#allocation2 + $0x1d] sm:$0xff] }
 0x28e   : > { %3652 = vmatmul.msk.bf16.gmra.mxu0 %vm297_vm1, %v2346_v35  ;;  %v3733_v35 = vld [vmem:[%s4925_s2 + $0x3c] sm:$0xf] }
 0x28f   : > { %v3208_v32 = vsel %vm319_vm0, %v3733_v35, 0  ;;  %v4711_v35 = vpack.c.bf16 %v2855_v0, %v2854_v8 }
 0x290   : > { %3217 = vmatpush.bf16.msrb.mxu3 %v3208_v32 }
 0x293   : > { %v2059_v5 = vpop.f32.mrf.mxu0  ;;  %v2114_v23 = vpop.f32.mrf.mxu1 }
 0x294   : > { %v2112_v25 = vadd.f32 %v2111_v41, %v2059_v5 }
 0x296   : > { %3658 = vmatmul.msk.bf16.gmra.mxu1 %vm297_vm1, %v2027_v57 }
 0x297   : > { %3663 = vmatmul.msk.bf16.gmra.mxu2 %vm297_vm1, %v4544_v14 }
 0x298   : > { %3669 = vmatmul.msk.bf16.gmra.mxu3 %vm297_vm1, %v4646_v51 }
 0x29a   : > { %v2178_v47 = vpop.f32.mrf.mxu2 }
 0x29b   : > { %v2203_v11 = vadd.f32 %v2178_v47, %v2110_v56  ;;  %v2257_v29 = vpop.f32.mrf.mxu3  ;;  %v2062_v30 = vpop.f32.mrf.mxu0  ;;  %v2785_v56 = vpack.c.bf16 %v4606_v62, %v4589_v12 }
 0x29c   : > { %v2116_v31 = vpop.f32.mrf.mxu1  ;;  %v2115_v15 = vadd.f32 %v2114_v23, %v2062_v30 }
 0x29d   : > { %v2282_v59 = vadd.f32 %v2257_v29, %v2203_v11 }
 0x29e   : > { %3653 = vmatmul.msk.bf16.gmra.mxu0 %vm297_vm1, %v2347_v13  ;;  %v4689_v13 = vld [vmem:[#allocation2 + $0x4c] sm:$0xff] }
 0x29f   : > { %v2296_v61 = vadd.f32 %v4665_v55, %v2282_v59  ;;  %v4693_v44 = vpack.c.bf16 %v4687_v40, %v4689_v13 }
 0x2a1   : > { %2306 = vst.msk [vmem:[%s4670_s22] sm:$0xff] %vm297_vm1, %v2296_v61 }
 0x2a2   : > { %v2180_v3 = vpop.f32.mrf.mxu2 }
 0x2a3   : > { %v2204_v46 = vadd.f32 %v2180_v3, %v2112_v25  ;;  %v2259_v19 = vpop.f32.mrf.mxu3  ;;  %v2064_v6 = vpop.f32.mrf.mxu0 }
 0x2a4   : > { %v2119_v33 = vpop.f32.mrf.mxu1  ;;  %v2117_v37 = vadd.f32 %v2116_v31, %v2064_v6 }
 0x2a5   : > { %v2283_v57 = vadd.f32 %v2259_v19, %v2204_v46  ;;  %v2856_v46 = vld [vmem:[#allocation2 + $0x25] sm:$0xff] }
 0x2a6   : > { %3688 = vmatmul.msk.bf16.vlgmr.msra.gmra.mxu1 %vm297_vm1, %v4452_v10  ;;  %v4728_v19 = vpack.c.bf16 %v2857_v38, %v2856_v46 }
 0x2a7   : > { %v2297_v36 = vadd.f32 %v4665_v55, %v2283_v57  ;;  %3664 = vmatmul.msk.bf16.gmra.mxu2 %vm297_vm1, %v4579_v28 }
 0x2a8   : > { %3670 = vmatmul.msk.bf16.gmra.mxu3 %vm297_vm1, %v4693_v44 }
 0x2a9   : > { %2307 = vst.msk [vmem:[%s4670_s22 + $0x8] sm:$0xff] %vm297_vm1, %v2297_v36 }
 0x2aa   : > { %v2183_v20 = vpop.f32.mrf.mxu2 }
 0x2ab   : > { %v2205_v4 = vadd.f32 %v2183_v20, %v2115_v15  ;;  %v2262_v22 = vpop.f32.mrf.mxu3  ;;  %v2067_v7 = vpop.f32.mrf.mxu0 }
 0x2ac   : > { %v2121_v42 = vpop.f32.mrf.mxu1  ;;  %v2120_v49 = vadd.f32 %v2119_v33, %v2067_v7 }
 0x2ad   : > { %v2284_v26 = vadd.f32 %v2262_v22, %v2205_v4 }
 0x2ae   : > { %3683 = vmatmul.msk.bf16.vlgmr.msra.gmra.mxu0 %vm297_vm1, %v4454_v58 }
 0x2af   : > { %v2298_v63 = vadd.f32 %v4665_v55, %v2284_v26  ;;  %v2859_v26 = vld [vmem:[#allocation2 + $0x3d] sm:$0xff] }
 0x2b1   : > { %2308 = vst.msk [vmem:[%s4670_s22 + $0x10] sm:$0xff] %vm297_vm1, %v2298_v63 }
 0x2b2   : > { %v2185_v10 = vpop.f32.mrf.mxu2 }
 0x2b3   : > { %v2206_v16 = vadd.f32 %v2185_v10, %v2117_v37  ;;  %v2264_v50 = vpop.f32.mrf.mxu3  ;;  %v2069_v41 = vpop.f32.mrf.mxu0 }
 0x2b4   : > { %v2124_v5 = vpop.f32.mrf.mxu1 }
 0x2b5   : > { %v2285_v23 = vadd.f32 %v2264_v50, %v2206_v16  ;;  %v2787_v16 = vpack.c.bf16 %v4642_v45, %v4622_v60  ;;  %v2858_v50 = vld [vmem:[#allocation2 + $0x35] sm:$0xff] }
 0x2b6   : > { %3689 = vmatmul.msk.bf16.gmra.mxu1 %vm297_vm1, %v4483_v43  ;;  %v2122_v43 = vadd.f32 %v2121_v42, %v2069_v41  ;;  %v4745_v0 = vpack.c.bf16 %v2859_v26, %v2858_v50 }
 0x2b7   : > { %v2299_v47 = vadd.f32 %v4665_v55, %v2285_v23  ;;  %3694 = vmatmul.msk.bf16.vlgmr.msra.gmra.mxu2 %vm297_vm1, %v2785_v56 }
 0x2b8   : > { %3700 = vmatmul.msk.bf16.vlgmr.msra.gmra.mxu3 %vm297_vm1, %v4711_v35 }
 0x2b9   : > { %2309 = vst.msk [vmem:[%s4670_s22 + $0x18] sm:$0xff] %vm297_vm1, %v2299_v47 }
 0x2ba   : > { %v2188_v32 = vpop.f32.mrf.mxu2 }
 0x2bb   : > { %v2207_v11 = vadd.f32 %v2188_v32, %v2120_v49  ;;  %v2267_v12 = vpop.f32.mrf.mxu3  ;;  %v2072_v62 = vpop.f32.mrf.mxu0 }
 0x2bc   : > { %v2126_v29 = vpop.f32.mrf.mxu1  ;;  %v2125_v33 = vadd.f32 %v2124_v5, %v2072_v62  ;;  %v2861_v62 = vld [vmem:[#allocation2 + $0x4d] sm:$0xff] }
 0x2bd   : > { %v2286_v30 = vadd.f32 %v2267_v12, %v2207_v11 }
 0x2be   : > { %3684 = vmatmul.msk.bf16.gmra.mxu0 %vm297_vm1, %v4485_v2 }
 0x2bf   : > { %v2300_v31 = vadd.f32 %v4665_v55, %v2286_v30 }
 0x2c1   : > { %2310 = vst.msk [vmem:[%s4670_s22 + $0x20] sm:$0xff] %vm297_vm1, %v2300_v31 }
 0x2c2   : > { %v2190_v59 = vpop.f32.mrf.mxu2 }
 0x2c3   : > { %v2208_v61 = vadd.f32 %v2190_v59, %v2122_v43  ;;  %v2269_v25 = vpop.f32.mrf.mxu3  ;;  %v2074_v1 = vpop.f32.mrf.mxu0  ;;  %v2788_v43 = vpack.c.bf16 %v4689_v13, %v4640_v24  ;;  %v2860_v59 = vld [vmem:[#allocation2 + $0x45] sm:$0xff]  ;;  %v4775_v13 = vld [vmem:[%s4927_s4] ss:$0 sm:$0xff] }
 0x2c4   : > { %v2129_v3 = vpop.f32.mrf.mxu1 }
 0x2c5   : > { %v2287_v18 = vadd.f32 %v2269_v25, %v2208_v61  ;;  %v4762_v61 = vpack.c.bf16 %v2861_v62, %v2860_v59 }
 0x2c6   : > { %3690 = vmatmul.msk.bf16.gmra.mxu1 %vm297_vm1, %v4514_v48  ;;  %v2127_v48 = vadd.f32 %v2126_v29, %v2074_v1 }
 0x2c7   : > { %v2301_v6 = vadd.f32 %v4665_v55, %v2287_v18  ;;  %3695 = vmatmul.msk.bf16.gmra.mxu2 %vm297_vm1, %v2786_v52 }
 0x2c8   : > { %3701 = vmatmul.msk.bf16.gmra.mxu3 %vm297_vm1, %v4728_v19 }
 0x2c9   : > { %2311 = vst.msk [vmem:[%s4670_s22 + $0x28] sm:$0xff] %vm297_vm1, %v2301_v6 }
 0x2ca   : > { %v2193_v57 = vpop.f32.mrf.mxu2 }
 0x2cb   : > { %v2209_v36 = vadd.f32 %v2193_v57, %v2125_v33  ;;  %v2272_v17 = vpop.f32.mrf.mxu3  ;;  %v2077_v27 = vpop.f32.mrf.mxu0  ;;  %v2784_v33 = vld [vmem:[#allocation2 + $0x5c] sm:$0xff] }
 0x2cc   : > { %v2131_v15 = vpop.f32.mrf.mxu1  ;;  %v2130_v5 = vadd.f32 %v2129_v3, %v2077_v27 }
 0x2cd   : > { %v2288_v20 = vadd.f32 %v2272_v17, %v2209_v36  ;;  %v2863_v17 = vld [vmem:[#allocation2 + $0x5d] sm:$0xff] }
 0x2ce   : > { %3685 = vmatmul.msk.bf16.gmra.mxu0 %vm297_vm1, %v4516_v54 }
 0x2cf   : > { %v2302_v4 = vadd.f32 %v4665_v55, %v2288_v20 }
 0x2d1   : > { %2312 = vst.msk [vmem:[%s4670_s22 + $0x30] sm:$0xff] %vm297_vm1, %v2302_v4  ;;  %v2789_v4 = vpack.c.bf16 %v2784_v33, %v4687_v40 }
 0x2d2   : > { %v2195_v22 = vpop.f32.mrf.mxu2 }
 0x2d3   : > { %v2210_v7 = vadd.f32 %v2195_v22, %v2127_v48  ;;  %v2274_v42 = vpop.f32.mrf.mxu3  ;;  %v2079_v63 = vpop.f32.mrf.mxu0  ;;  %v2862_v48 = vld [vmem:[#allocation2 + $0x55] sm:$0xff] }
 0x2d4   : > { %v2429_v37 = vpop.f32.mrf.mxu1  ;;  %v4783_v22 = vpack.c.bf16 %v2863_v17, %v2862_v48 }
 0x2d5   : > { %v2289_v10 = vadd.f32 %v2274_v42, %v2210_v7 }
 0x2d6   : > { %3691 = vmatmul.msk.bf16.gmra.mxu1 %vm297_vm1, %v4542_v21  ;;  %v2132_v21 = vadd.f32 %v2131_v15, %v2079_v63 }
 0x2d7   : > { %v2303_v41 = vadd.f32 %v4665_v55, %v2289_v10  ;;  %3696 = vmatmul.msk.bf16.gmra.mxu2 %vm297_vm1, %v2787_v16 }
 0x2d8   : > { %3702 = vmatmul.msk.bf16.gmra.mxu3 %vm297_vm1, %v4745_v0 }
 0x2d9   : > { %2313 = vst.msk [vmem:[%s4670_s22 + $0x38] sm:$0xff] %vm297_vm1, %v2303_v41 }
 0x2da   : > { %v2198_v23 = vpop.f32.mrf.mxu2 }
 0x2db   : > { %v2211_v56 = vadd.f32 %v2198_v23, %v2130_v5  ;;  %v2277_v60 = vpop.f32.mrf.mxu3  ;;  %v2377_v45 = vpop.f32.mrf.mxu0 }
 0x2dc   : > { %v2431_v8 = vpop.f32.mrf.mxu1  ;;  %v2430_v38 = vadd.f32 %v2429_v37, %v2377_v45 }
 0x2dd   : > { %v2290_v47 = vadd.f32 %v2277_v60, %v2211_v56  ;;  %v3176_v56 = vld [vmem:[#allocation2 + $0x1e] sm:$0xff] }
 0x2de   : > { %3686 = vmatmul.msk.bf16.gmra.mxu0 %vm297_vm1, %v4544_v14 }
 0x2df   : > { %v2304_v49 = vadd.f32 %v4665_v55, %v2290_v47  ;;  %v3175_v47 = vld [vmem:[#allocation2 + $0x16] sm:$0xff] }
 0x2e1   : > { %2314 = vst.msk [vmem:[%s4670_s22 + $0x40] sm:$0xff] %vm297_vm1, %v2304_v49  ;;  %v3185_v49 = vpack.c.bf16 %v3176_v56, %v3175_v47 }
 0x2e2   : > { %v2200_v32 = vpop.f32.mrf.mxu2 }
 0x2e3   : > { %v2212_v11 = vadd.f32 %v2200_v32, %v2132_v21  ;;  %v2279_v12 = vpop.f32.mrf.mxu3  ;;  %v2379_v29 = vpop.f32.mrf.mxu0 }
 0x2e4   : > { %v2434_v30 = vpop.f32.mrf.mxu1  ;;  %v2432_v46 = vadd.f32 %v2431_v8, %v2379_v29 }
 0x2e5   : > { %v2291_v31 = vadd.f32 %v2279_v12, %v2212_v11 }
 0x2e6   : > { %3692 = vmatmul.msk.bf16.gmra.mxu1 %vm297_vm1, %v4577_v53 }
 0x2e7   : > { %v2305_v25 = vadd.f32 %v4665_v55, %v2291_v31  ;;  %3697 = vmatmul.msk.bf16.gmra.mxu2 %vm297_vm1, %v2788_v43 }
 0x2e8   : > { %3703 = vmatmul.msk.bf16.gmra.mxu3 %vm297_vm1, %v4762_v61 }
 0x2e9   : > { %2315 = vst.msk [vmem:[%s4670_s22 + $0x48] sm:$0xff] %vm297_vm1, %v2305_v25  ;;  %v3178_v25 = vld [vmem:[#allocation2 + $0x2e] sm:$0xff] }
 0x2ea   : > { %v2498_v1 = vpop.f32.mrf.mxu2 }
 0x2eb   : > { %v2523_v3 = vadd.f32 %v2498_v1, %v2430_v38  ;;  %v2577_v24 = vpop.f32.mrf.mxu3  ;;  %v2382_v55 = vpop.f32.mrf.mxu0 }
 0x2ec   : > { %v2436_v18 = vpop.f32.mrf.mxu1  ;;  %v2435_v42 = vadd.f32 %v2434_v30, %v2382_v55 }
 0x2ed   : > { %v2602_v52 = vadd.f32 %v2577_v24, %v2523_v3  ;;  %v3177_v24 = vld [vmem:[#allocation2 + $0x26] sm:$0xff] }
 0x2ee   : > { %3687 = vmatmul.msk.bf16.gmra.mxu0 %vm297_vm1, %v4579_v28  ;;  %v3186_v55 = vpack.c.bf16 %v3178_v25, %v3177_v24  ;;  %v3183_v25 = vld [vmem:[#allocation2 + $0x56] sm:$0xff] }
 0x2ef   : > { %v2616_v53 = vadd.f32 %v4775_v13, %v2602_v52 }
 0x2f1   : > { %3671 = vst.msk [vmem:[%s4670_s22 + $0x50] sm:$0xff] %vm297_vm1, %v2616_v53 }
 0x2f2   : > { %v2500_v6 = vpop.f32.mrf.mxu2 }
 0x2f3   : > { %v2524_v57 = vadd.f32 %v2500_v6, %v2432_v46  ;;  %v2579_v36 = vpop.f32.mrf.mxu3  ;;  %v2384_v27 = vpop.f32.mrf.mxu0 }
 0x2f4   : > { %v2439_v15 = vpop.f32.mrf.mxu1  ;;  %v2437_v41 = vadd.f32 %v2436_v18, %v2384_v27 }
 0x2f5   : > { %v2603_v20 = vadd.f32 %v2579_v36, %v2524_v57 }
 0x2f6   : > { %3722 = vmatmul.msk.bf16.vlgmr.msrb.gmra.mxu1 %vm297_vm1, %v4454_v58 }
 0x2f7   : > { %v2617_v7 = vadd.f32 %v4775_v13, %v2603_v20  ;;  %3698 = vmatmul.msk.bf16.gmra.mxu2 %vm297_vm1, %v2789_v4 }
 0x2f8   : > { %3704 = vmatmul.msk.bf16.gmra.mxu3 %vm297_vm1, %v4783_v22 }
 0x2f9   : > { %3672 = vst.msk [vmem:[%s4670_s22 + $0x58] sm:$0xff] %vm297_vm1, %v2617_v7  ;;  %v3179_v7 = vld [vmem:[#allocation2 + $0x36] sm:$0xff] }
 0x2fa   : > { %v2503_v26 = vpop.f32.mrf.mxu2 }
 0x2fb   : > { %v2525_v63 = vadd.f32 %v2503_v26, %v2435_v42  ;;  %v2582_v40 = vpop.f32.mrf.mxu3  ;;  %v2387_v37 = vpop.f32.mrf.mxu0 }
 0x2fc   : > { %v2441_v10 = vpop.f32.mrf.mxu1 }
 0x2fd   : > { %v2604_v16 = vadd.f32 %v2582_v40, %v2525_v63 }
 0x2fe   : > { %3717 = vmatmul.msk.bf16.vlgmr.msrb.gmra.mxu0 %vm297_vm1, %v4592_v39  ;;  %v2440_v39 = vadd.f32 %v2439_v15, %v2387_v37  ;;  %v3180_v15 = vld [vmem:[#allocation2 + $0x3e] sm:$0xff] }
 0x2ff   : > { %v2618_v50 = vadd.f32 %v4775_v13, %v2604_v16  ;;  %v3187_v42 = vpack.c.bf16 %v3180_v15, %v3179_v7 }
 0x301   : > { %3673 = vst.msk [vmem:[%s4670_s22 + $0x60] sm:$0xff] %vm297_vm1, %v2618_v50 }
 0x302   : > { %v2505_v58 = vpop.f32.mrf.mxu2 }
 0x303   : > { %v2526_v5 = vadd.f32 %v2505_v58, %v2437_v41  ;;  %v2584_v23 = vpop.f32.mrf.mxu3  ;;  %v2389_v60 = vpop.f32.mrf.mxu0 }
 0x304   : > { %v2444_v45 = vpop.f32.mrf.mxu1 }
 0x305   : > { %v2605_v8 = vadd.f32 %v2584_v23, %v2526_v5  ;;  %v3182_v23 = vld [vmem:[#allocation2 + $0x4e] sm:$0xff] }
 0x306   : > { %3723 = vmatmul.msk.bf16.gmra.mxu1 %vm297_vm1, %v4485_v2  ;;  %v2442_v2 = vadd.f32 %v2441_v10, %v2389_v60 }
 0x307   : > { %v2619_v21 = vadd.f32 %v4775_v13, %v2605_v8  ;;  %3728 = vmatmul.msk.bf16.vlgmr.msrb.gmra.mxu2 %vm297_vm1, %v4711_v35  ;;  %v3181_v8 = vld [vmem:[#allocation2 + $0x46] sm:$0xff] }
 0x308   : > { %3734 = vmatmul.msk.bf16.vlgmr.msrb.gmra.mxu3 %vm297_vm1, %v3185_v49  ;;  %v3188_v47 = vpack.c.bf16 %v3182_v23, %v3181_v8 }
 0x309   : > { %3674 = vst.msk [vmem:[%s4670_s22 + $0x68] sm:$0xff] %vm297_vm1, %v2619_v21 }
 0x30a   : > { %v2508_v32 = vpop.f32.mrf.mxu2 }
 0x30b   : > { %v2527_v11 = vadd.f32 %v2508_v32, %v2440_v39  ;;  %v2587_v12 = vpop.f32.mrf.mxu3  ;;  %v2392_v62 = vpop.f32.mrf.mxu0 }
 0x30c   : > { %v2446_v29 = vpop.f32.mrf.mxu1 }
 0x30d   : > { %v2606_v30 = vadd.f32 %v2587_v12, %v2527_v11  ;;  %v4848_v11 = vld [vmem:[%s4927_s4] ss:$0 sm:$0xff] }
 0x30e   : > { %3718 = vmatmul.msk.bf16.gmra.mxu0 %vm297_vm1, %v4610_v34  ;;  %v2445_v34 = vadd.f32 %v2444_v45, %v2392_v62 }
 0x30f   : > { %v2620_v31 = vadd.f32 %v4775_v13, %v2606_v30 }
 0x311   : > { %3675 = vst.msk [vmem:[%s4670_s22 + $0x70] sm:$0xff] %vm297_vm1, %v2620_v31 }
 0x312   : > { %v2510_v35 = vpop.f32.mrf.mxu2 }
 0x313   : > { %v2528_v43 = vadd.f32 %v2510_v35, %v2442_v2  ;;  %v2589_v59 = vpop.f32.mrf.mxu3  ;;  %v2394_v38 = vpop.f32.mrf.mxu0  ;;  %v3184_v2 = vld [vmem:[#allocation2 + $0x5e] sm:$0xff] }
 0x314   : > { %v2449_v1 = vpop.f32.mrf.mxu1 }
 0x315   : > { %v2607_v3 = vadd.f32 %v2589_v59, %v2528_v43 }
 0x316   : > { %3724 = vmatmul.msk.bf16.gmra.mxu1 %vm297_vm1, %v4516_v54  ;;  %v2447_v54 = vadd.f32 %v2446_v29, %v2394_v38  ;;  %v3189_v38 = vpack.c.bf16 %v3184_v2, %v3183_v25 }
 0x317   : > { %v2621_v18 = vadd.f32 %v4775_v13, %v2607_v3  ;;  %3729 = vmatmul.msk.bf16.gmra.mxu2 %vm297_vm1, %v4728_v19 }
 0x318   : > { %3735 = vmatmul.msk.bf16.gmra.mxu3 %vm297_vm1, %v3186_v55 }
 0x319   : > { %3676 = vst.msk [vmem:[%s4670_s22 + $0x78] sm:$0xff] %vm297_vm1, %v2621_v18 }
 0x31a   : > { %v2513_v52 = vpop.f32.mrf.mxu2 }
 0x31b   : > { %v2529_v53 = vadd.f32 %v2513_v52, %v2445_v34  ;;  %v2592_v46 = vpop.f32.mrf.mxu3  ;;  %v2397_v6 = vpop.f32.mrf.mxu0 }
 0x31c   : > { %v2451_v33 = vpop.f32.mrf.mxu1 }
 0x31d   : > { %v2608_v57 = vadd.f32 %v2592_v46, %v2529_v53 }
 0x31e   : > { %3719 = vmatmul.msk.bf16.gmra.mxu0 %vm297_vm1, %v4628_v9  ;;  %v2450_v9 = vadd.f32 %v2449_v1, %v2397_v6 }
 0x31f   : > { %v2622_v36 = vadd.f32 %v4775_v13, %v2608_v57 }
 0x321   : > { %3677 = vst.msk [vmem:[%s4670_s22 + $0x80] sm:$0xff] %vm297_vm1, %v2622_v36 }
 0x322   : > { %v2515_v19 = vpop.f32.mrf.mxu2 }
 0x323   : > { %v2530_v17 = vadd.f32 %v2515_v19, %v2447_v54  ;;  %v2594_v27 = vpop.f32.mrf.mxu3  ;;  %v2399_v20 = vpop.f32.mrf.mxu0 }
 0x324   : > { %v2750_v4 = vpop.f32.mrf.mxu1 }
 0x325   : > { %v2609_v48 = vadd.f32 %v2594_v27, %v2530_v17 }
 0x326   : > { %3725 = vmatmul.msk.bf16.gmra.mxu1 %vm297_vm1, %v4544_v14  ;;  %v2452_v14 = vadd.f32 %v2451_v33, %v2399_v20 }
 0x327   : > { %v2623_v26 = vadd.f32 %v4775_v13, %v2609_v48  ;;  %3730 = vmatmul.msk.bf16.gmra.mxu2 %vm297_vm1, %v4745_v0 }
 0x328   : > { %3736 = vmatmul.msk.bf16.gmra.mxu3 %vm297_vm1, %v3187_v42 }
 0x329   : > { %3678 = vst.msk [vmem:[%s4670_s22 + $0x88] sm:$0xff] %vm297_vm1, %v2623_v26 }
 0x32a   : > { %v2518_v63 = vpop.f32.mrf.mxu2 }
 0x32b   : > { %v2531_v40 = vadd.f32 %v2518_v63, %v2450_v9  ;;  %v2597_v37 = vpop.f32.mrf.mxu3  ;;  %v2698_v10 = vpop.f32.mrf.mxu0 }
 0x32c   : > { %v2752_v16 = vpop.f32.mrf.mxu1 }
 0x32d   : > { %v2610_v50 = vadd.f32 %v2597_v37, %v2531_v40 }
 0x32e   : > { %3720 = vmatmul.msk.bf16.gmra.mxu0 %vm297_vm1, %v4646_v51  ;;  %v2751_v51 = vadd.f32 %v2750_v4, %v2698_v10 }
 0x32f   : > { %v2624_v41 = vadd.f32 %v4775_v13, %v2610_v50 }
 0x331   : > { %3679 = vst.msk [vmem:[%s4670_s22 + $0x90] sm:$0xff] %vm297_vm1, %v2624_v41 }
 0x332   : > { %v2520_v0 = vpop.f32.mrf.mxu2 }
 0x333   : > { %v2532_v58 = vadd.f32 %v2520_v0, %v2452_v14  ;;  %v2599_v5 = vpop.f32.mrf.mxu3  ;;  %v2700_v56 = vpop.f32.mrf.mxu0 }
 0x334   : > { %v2755_v60 = vpop.f32.mrf.mxu1 }
 0x335   : > { %v2611_v45 = vadd.f32 %v2599_v5, %v2532_v58 }
 0x336   : > { %3726 = vmatmul.msk.bf16.gmra.mxu1 %vm297_vm1, %v4579_v28 }
 0x337   : > { %v2625_v49 = vadd.f32 %v4775_v13, %v2611_v45  ;;  %3731 = vmatmul.msk.bf16.gmra.mxu2 %vm297_vm1, %v4762_v61  ;;  %v2753_v61 = vadd.f32 %v2752_v16, %v2700_v56 }
 0x338   : > { %3737 = vmatmul.msk.bf16.gmra.mxu3 %vm297_vm1, %v3188_v47 }
 0x339   : > { %3680 = vst.msk [vmem:[%s4670_s22 + $0x98] sm:$0xff] %vm297_vm1, %v2625_v49 }
 0x33a   : > { %v2819_v21 = vpop.f32.mrf.mxu2 }
 0x33b   : > { %v2844_v39 = vadd.f32 %v2819_v21, %v2751_v51  ;;  %v2898_v32 = vpop.f32.mrf.mxu3  ;;  %v2703_v13 = vpop.f32.mrf.mxu0 }
 0x33c   : > { %v2757_v12 = vpop.f32.mrf.mxu1 }
 0x33d   : > { %v2923_v62 = vadd.f32 %v2898_v32, %v2844_v39 }
 0x33e   : > { %3721 = vmatmul.msk.bf16.gmra.mxu0 %vm297_vm1, %v4693_v44  ;;  %v2756_v44 = vadd.f32 %v2755_v60, %v2703_v13 }
 0x33f   : > { %v2937_v28 = vadd.f32 %v4848_v11, %v2923_v62 }
 0x341   : > { %3705 = vst.msk [vmem:[%s4670_s22 + $0xa0] sm:$0xff] %vm297_vm1, %v2937_v28 }
 0x342   : > { %v2821_v29 = vpop.f32.mrf.mxu2 }
 0x343   : > { %v2845_v30 = vadd.f32 %v2821_v29, %v2753_v61  ;;  %v2900_v31 = vpop.f32.mrf.mxu3  ;;  %v2705_v35 = vpop.f32.mrf.mxu0 }
 0x344   : > { %v2760_v43 = vpop.f32.mrf.mxu1  ;;  %v2758_v46 = vadd.f32 %v2757_v12, %v2705_v35 }
 0x345   : > { %v2924_v59 = vadd.f32 %v2900_v31, %v2845_v30 }
 0x347   : > { %v2938_v1 = vadd.f32 %v4848_v11, %v2924_v59  ;;  %3732 = vmatmul.msk.bf16.gmra.mxu2 %vm297_vm1, %v4783_v22 }
 0x348   : > { %3738 = vmatmul.msk.bf16.gmra.mxu3 %vm297_vm1, %v3189_v38 }
 0x349   : > { %3706 = vst.msk [vmem:[%s4670_s22 + $0xa8] sm:$0xff] %vm297_vm1, %v2938_v1 }
 0x34a   : > { %v2824_v3 = vpop.f32.mrf.mxu2 }
 0x34b   : > { %v2846_v24 = vadd.f32 %v2824_v3, %v2756_v44  ;;  %v2903_v55 = vpop.f32.mrf.mxu3  ;;  %v2708_v18 = vpop.f32.mrf.mxu0 }
 0x34c   : > { %v2762_v34 = vpop.f32.mrf.mxu1  ;;  %v2761_v17 = vadd.f32 %v2760_v43, %v2708_v18 }
 0x34d   : > { %v2925_v52 = vadd.f32 %v2903_v55, %v2846_v24 }
 0x34f   : > { %v2939_v53 = vadd.f32 %v4848_v11, %v2925_v52 }
 0x351   : > { %3707 = vst.msk [vmem:[%s4670_s22 + $0xb0] sm:$0xff] %vm297_vm1, %v2939_v53 }
 0x352   : > { %v2826_v6 = vpop.f32.mrf.mxu2 }
 0x353   : > { %v2847_v33 = vadd.f32 %v2826_v6, %v2758_v46  ;;  %v2905_v22 = vpop.f32.mrf.mxu3  ;;  %v2710_v57 = vpop.f32.mrf.mxu0 }
 0x354   : > { %v2765_v36 = vpop.f32.mrf.mxu1  ;;  %v2763_v26 = vadd.f32 %v2762_v34, %v2710_v57  ;;  %v4888_v34 = vld [vmem:[%s4927_s4] ss:$0 sm:$0xff] }
 0x355   : > { %v2926_v54 = vadd.f32 %v2905_v22, %v2847_v33 }
 0x357   : > { %v2940_v19 = vadd.f32 %v4848_v11, %v2926_v54 }
 0x359   : > { %3708 = vst.msk [vmem:[%s4670_s22 + $0xb8] sm:$0xff] %vm297_vm1, %v2940_v19 }
 0x35a   : > { %v2829_v27 = vpop.f32.mrf.mxu2 }
 0x35b   : > { %v2848_v15 = vadd.f32 %v2829_v27, %v2761_v17  ;;  %v2908_v20 = vpop.f32.mrf.mxu3  ;;  %v2713_v4 = vpop.f32.mrf.mxu0 }
 0x35c   : > { %v2767_v48 = vpop.f32.mrf.mxu1  ;;  %v2766_v41 = vadd.f32 %v2765_v36, %v2713_v4 }
 0x35d   : > { %v2927_v7 = vadd.f32 %v2908_v20, %v2848_v15 }
 0x35f   : > { %v2941_v42 = vadd.f32 %v4848_v11, %v2927_v7 }
 0x361   : > { %3709 = vst.msk [vmem:[%s4670_s22 + $0xc0] sm:$0xff] %vm297_vm1, %v2941_v42 }
 0x362   : > { %v2831_v9 = vpop.f32.mrf.mxu2 }
 0x363   : > { %v2849_v63 = vadd.f32 %v2831_v9, %v2763_v26  ;;  %v2910_v40 = vpop.f32.mrf.mxu3  ;;  %v2715_v37 = vpop.f32.mrf.mxu0 }
 0x364   : > { %v2770_v10 = vpop.f32.mrf.mxu1  ;;  %v2768_v45 = vadd.f32 %v2767_v48, %v2715_v37 }
 0x365   : > { %v2928_v16 = vadd.f32 %v2910_v40, %v2849_v63 }
 0x367   : > { %v2942_v50 = vadd.f32 %v4848_v11, %v2928_v16 }
 0x369   : > { %3710 = vst.msk [vmem:[%s4670_s22 + $0xc8] sm:$0xff] %vm297_vm1, %v2942_v50 }
 0x36a   : > { %v2834_v14 = vpop.f32.mrf.mxu2 }
 0x36b   : > { %v2850_v0 = vadd.f32 %v2834_v14, %v2766_v41  ;;  %v2913_v58 = vpop.f32.mrf.mxu3  ;;  %v2718_v5 = vpop.f32.mrf.mxu0 }
 0x36c   : > { %v2772_v23 = vpop.f32.mrf.mxu1  ;;  %v2771_v13 = vadd.f32 %v2770_v10, %v2718_v5 }
 0x36d   : > { %v2929_v56 = vadd.f32 %v2913_v58, %v2850_v0 }
 0x36f   : > { %v2943_v60 = vadd.f32 %v4848_v11, %v2929_v56 }
 0x371   : > { %3711 = vst.msk [vmem:[%s4670_s22 + $0xd0] sm:$0xff] %vm297_vm1, %v2943_v60 }
 0x372   : > { %v2836_v8 = vpop.f32.mrf.mxu2 }
 0x373   : > { %v2851_v47 = vadd.f32 %v2836_v8, %v2768_v45  ;;  %v2915_v49 = vpop.f32.mrf.mxu3  ;;  %v2720_v51 = vpop.f32.mrf.mxu0 }
 0x374   : > { %v3071_v39 = vpop.f32.mrf.mxu1  ;;  %v2773_v2 = vadd.f32 %v2772_v23, %v2720_v51 }
 0x375   : > { %v2930_v21 = vadd.f32 %v2915_v49, %v2851_v47 }
 0x377   : > { %v2944_v32 = vadd.f32 %v4848_v11, %v2930_v21 }
 0x379   : > { %3712 = vst.msk [vmem:[%s4670_s22 + $0xd8] sm:$0xff] %vm297_vm1, %v2944_v32 }
 0x37a   : > { %v2839_v12 = vpop.f32.mrf.mxu2 }
 0x37b   : > { %v2852_v62 = vadd.f32 %v2839_v12, %v2771_v13  ;;  %v2918_v28 = vpop.f32.mrf.mxu3  ;;  %v3019_v61 = vpop.f32.mrf.mxu0 }
 0x37c   : > { %v3073_v31 = vpop.f32.mrf.mxu1  ;;  %v3072_v44 = vadd.f32 %v3071_v39, %v3019_v61 }
 0x37d   : > { %v2931_v29 = vadd.f32 %v2918_v28, %v2852_v62 }
 0x37f   : > { %v2945_v30 = vadd.f32 %v4848_v11, %v2931_v29 }
 0x381   : > { %3713 = vst.msk [vmem:[%s4670_s22 + $0xe0] sm:$0xff] %vm297_vm1, %v2945_v30 }
 0x382   : > { %v2841_v35 = vpop.f32.mrf.mxu2 }
 0x383   : > { %v2853_v43 = vadd.f32 %v2841_v35, %v2773_v2  ;;  %v2920_v59 = vpop.f32.mrf.mxu3  ;;  %v3021_v25 = vpop.f32.mrf.mxu0 }
 0x384   : > { %v3076_v3 = vpop.f32.mrf.mxu1  ;;  %v3074_v6 = vadd.f32 %v3073_v31, %v3021_v25 }
 0x385   : > { %v2932_v38 = vadd.f32 %v2920_v59, %v2853_v43 }
 0x387   : > { %v2946_v1 = vadd.f32 %v4848_v11, %v2932_v38 }
 0x389   : > { %3714 = vst.msk [vmem:[%s4670_s22 + $0xe8] sm:$0xff] %vm297_vm1, %v2946_v1 }
 0x38a   : > { %v3140_v24 = vpop.f32.mrf.mxu2 }
 0x38b   : > { %v3165_v55 = vadd.f32 %v3140_v24, %v3072_v44  ;;  %v3219_v18 = vpop.f32.mrf.mxu3  ;;  %v3024_v52 = vpop.f32.mrf.mxu0 }
 0x38c   : > { %v3078_v57 = vpop.f32.mrf.mxu1  ;;  %v3077_v17 = vadd.f32 %v3076_v3, %v3024_v52 }
 0x38d   : > { %v3244_v53 = vadd.f32 %v3219_v18, %v3165_v55 }
 0x38f   : > { %v3258_v46 = vadd.f32 %v4888_v34, %v3244_v53 }
 0x391   : > { %3739 = vst.msk [vmem:[%s4670_s22 + $0xf0] sm:$0xff] %vm297_vm1, %v3258_v46 }
 0x392   : > { %v3142_v11 = vpop.f32.mrf.mxu2 }
 0x393   : > { %v3166_v33 = vadd.f32 %v3142_v11, %v3074_v6  ;;  %v3221_v22 = vpop.f32.mrf.mxu3  ;;  %v3026_v36 = vpop.f32.mrf.mxu0 }
 0x394   : > { %v3081_v7 = vpop.f32.mrf.mxu1  ;;  %v3079_v26 = vadd.f32 %v3078_v57, %v3026_v36 }
 0x395   : > { %v3245_v54 = vadd.f32 %v3221_v22, %v3166_v33 }
 0x397   : > { %v3259_v19 = vadd.f32 %v4888_v34, %v3245_v54 }
 0x399   : > { %3740 = vst.msk [vmem:[%s4670_s22 + $0xf8] sm:$0xff] %vm297_vm1, %v3259_v19 }
 0x39a   : > { %v3145_v27 = vpop.f32.mrf.mxu2 }
 0x39b   : > { %v3167_v15 = vadd.f32 %v3145_v27, %v3077_v17  ;;  %v3224_v20 = vpop.f32.mrf.mxu3  ;;  %v3029_v4 = vpop.f32.mrf.mxu0 }
 0x39c   : > { %v3083_v50 = vpop.f32.mrf.mxu1  ;;  %v3082_v41 = vadd.f32 %v3081_v7, %v3029_v4 }
 0x39d   : > { %v3246_v48 = vadd.f32 %v3224_v20, %v3167_v15 }
 0x39f   : > { %v3260_v42 = vadd.f32 %v4888_v34, %v3246_v48 }
 0x3a1   : > { %3741 = vst.msk [vmem:[%s4670_s22 + $0x100] sm:$0xff] %vm297_vm1, %v3260_v42 }
 0x3a2   : > { %v3147_v9 = vpop.f32.mrf.mxu2 }
 0x3a3   : > { %v3168_v63 = vadd.f32 %v3147_v9, %v3079_v26  ;;  %v3226_v40 = vpop.f32.mrf.mxu3  ;;  %v3031_v10 = vpop.f32.mrf.mxu0 }
 0x3a4   : > { %v3084_v60 = vadd.f32 %v3083_v50, %v3031_v10  ;;  %v3086_v45 = vpop.f32.mrf.mxu1 }
 0x3a5   : > { %v3247_v37 = vadd.f32 %v3226_v40, %v3168_v63 }
 0x3a7   : > { %v3261_v16 = vadd.f32 %v4888_v34, %v3247_v37 }
 0x3a9   : > { %3742 = vst.msk [vmem:[%s4670_s22 + $0x108] sm:$0xff] %vm297_vm1, %v3261_v16 }
 0x3aa   : > { %v3150_v14 = vpop.f32.mrf.mxu2 }
 0x3ab   : > { %v3169_v0 = vadd.f32 %v3150_v14, %v3082_v41  ;;  %v3229_v58 = vpop.f32.mrf.mxu3  ;;  %v3034_v56 = vpop.f32.mrf.mxu0 }
 0x3ac   : > { %v3087_v39 = vadd.f32 %v3086_v45, %v3034_v56  ;;  %v3088_v28 = vpop.f32.mrf.mxu1 }
 0x3ad   : > { %v3248_v5 = vadd.f32 %v3229_v58, %v3169_v0 }
 0x3af   : > { %v3262_v23 = vadd.f32 %v4888_v34, %v3248_v5 }
 0x3b1   : > { %3743 = vst.msk [vmem:[%s4670_s22 + $0x110] sm:$0xff] %vm297_vm1, %v3262_v23 }
 0x3b2   : > { %v3152_v8 = vpop.f32.mrf.mxu2 }
 0x3b3   : > { %v3170_v47 = vadd.f32 %v3152_v8, %v3084_v60  ;;  %v3231_v49 = vpop.f32.mrf.mxu3  ;;  %v3036_v32 = vpop.f32.mrf.mxu0 }
 0x3b4   : > { %v3089_v30 = vadd.f32 %v3088_v28, %v3036_v32  ;;  %v3091_v25 = vpop.f32.mrf.mxu1 }
 0x3b5   : > { %v3249_v51 = vadd.f32 %v3231_v49, %v3170_v47 }
 0x3b7   : > { %v3263_v21 = vadd.f32 %v4888_v34, %v3249_v51 }
 0x3b9   : > { %3744 = vst.msk [vmem:[%s4670_s22 + $0x118] sm:$0xff] %vm297_vm1, %v3263_v21 }
 0x3ba   : > { %v3155_v13 = vpop.f32.mrf.mxu2 }
 0x3bb   : > { %v3171_v12 = vadd.f32 %v3155_v13, %v3087_v39  ;;  %v3234_v62 = vpop.f32.mrf.mxu3  ;;  %v3039_v43 = vpop.f32.mrf.mxu0 }
 0x3bc   : > { %v3092_v1 = vadd.f32 %v3091_v25, %v3039_v43  ;;  %v3093_v53 = vpop.f32.mrf.mxu1 }
 0x3bd   : > { %v3250_v61 = vadd.f32 %v3234_v62, %v3171_v12 }
 0x3bf   : > { %v3264_v29 = vadd.f32 %v4888_v34, %v3250_v61 }
 0x3c1   : > { %3745 = vst.msk [vmem:[%s4670_s22 + $0x120] sm:$0xff] %vm297_vm1, %v3264_v29 }
 0x3c2   : > { %v3157_v31 = vpop.f32.mrf.mxu2 }
 0x3c3   : > { %v3172_v2 = vadd.f32 %v3157_v31, %v3089_v30  ;;  %v3236_v35 = vpop.f32.mrf.mxu3  ;;  %v3041_v18 = vpop.f32.mrf.mxu0 }
 0x3c4   : > { %v3094_v46 = vadd.f32 %v3093_v53, %v3041_v18 }
 0x3c5   : > { %v3251_v59 = vadd.f32 %v3236_v35, %v3172_v2 }
 0x3c7   : > { %v3265_v38 = vadd.f32 %v4888_v34, %v3251_v59 }
 0x3c9   : > { %3746 = vst.msk [vmem:[%s4670_s22 + $0x128] sm:$0xff] %vm297_vm1, %v3265_v38 }
 0x3ca   : > { %v3160_v44 = vpop.f32.mrf.mxu2 }
 0x3cb   : > { %v3173_v3 = vadd.f32 %v3160_v44, %v3092_v1  ;;  %v3239_v24 = vpop.f32.mrf.mxu3 }
 0x3cd   : > { %v3252_v55 = vadd.f32 %v3239_v24, %v3173_v3 }
 0x3cf   : > { %v3266_v52 = vadd.f32 %v4888_v34, %v3252_v55 }
 0x3d1   : > { %3747 = vst.msk [vmem:[%s4670_s22 + $0x130] sm:$0xff] %vm297_vm1, %v3266_v52 }
 0x3d2   : > { %v3162_v6 = vpop.f32.mrf.mxu2 }
 0x3d3   : > { %v3174_v11 = vadd.f32 %v3162_v6, %v3094_v46  ;;  %v3241_v33 = vpop.f32.mrf.mxu3 }
 0x3d5   : > { %v3253_v22 = vadd.f32 %v3241_v33, %v3174_v11 }
 0x3d7   : > { %v3267_v57 = vadd.f32 %v4888_v34, %v3253_v22 }
 0x3d9   : > { %3748 = vst.msk [vmem:[%s4670_s22 + $0x138] sm:$0xff] %vm297_vm1, %v3267_v57 }
 0x3da PF: > { %s16_s21 = sadd.s32 1, %s3776_s21  }
 0x3db   : > { %p13_p4 = scmp.ge.s32.totalorder %s16_s21, 4  }
 0x3dd   :  { %15 = sbr.rel (!%p13_p4) target bundleno = 1 (0x1), region = 110 }

</bundles_post_ra>
